<compile_context>
chip_gen: v7x
topology: tpu7x:2x2x1
jax: 0.10.0
libtpu: 0.0.40
codegen_flags: <defaults>
</compile_context>

<pallas_src>
import functools
import math

import jax
import jax.numpy as jnp
from jax import lax
from jax.experimental import pallas as pl
from jax.experimental.pallas import tpu as pltpu

EPS = 1e-5  # PyTorch nn.LayerNorm default


# ----------------------------- math helpers ---------------------------------
def _gelu(x):
    # Exact (erf-based) GELU, matching torch.nn.GELU() default.
    return 0.5 * x * (1.0 + lax.erf(x * 0.7071067811865476))


def _layernorm(x, w, b):
    # x: (..., H); w, b: (1, H)
    mu = jnp.mean(x, axis=-1, keepdims=True)
    var = jnp.mean((x - mu) ** 2, axis=-1, keepdims=True)
    return (x - mu) * lax.rsqrt(var + EPS) * w + b


# ------------------------------ Pallas kernel --------------------------------
def encoder_block_kernel(x_ref,
                         ln1_w, ln1_b,
                         wqkv, bqkv, wo, bo,
                         ln2_w, ln2_b,
                         w1, b1, w2, b2,
                         o_ref,
                         qkv_scr,
                         *, num_heads):
    # x_ref / o_ref: (1, S, H) f32; wqkv/wo/w1/w2 are bf16; biases/LN are f32.
    # qkv_scr: (S, 3H) bf16 VMEM scratch (bounds live ranges across head loop).
    x_in = x_ref[0]                                   # (S, H) f32
    S, H = x_in.shape
    dh = H // num_heads

    # ---- LayerNorm 1 + fused QKV projection (one (S,H)@(H,3H) bf16 matmul) --
    xn = _layernorm(x_in, ln1_w[...], ln1_b[...])
    qkv = jnp.dot(xn.astype(jnp.bfloat16), wqkv[...],
                  preferred_element_type=jnp.float32) + bqkv[...]
    qkv_scr[...] = qkv.astype(jnp.bfloat16)           # stage in VMEM (bf16)

    # ---- Multi-head self-attention ------------------------------------------
    # The 1/sqrt(dh) scale is already folded into the Q weights/bias.
    # QK^T via dot_general contracting last dims (no explicit transpose);
    # softmax normalization is deferred past the PV matmul (EUP reciprocal).
    ctx_heads = []
    for h in range(num_heads):
        lo = h * dh
        q_h = qkv_scr[:, lo:lo + dh]                  # (S, dh) bf16 (pre-scaled)
        k_h = qkv_scr[:, H + lo:H + lo + dh]
        v_h = qkv_scr[:, 2 * H + lo:2 * H + lo + dh]

        scores = lax.dot_general(                     # (S, S) = q_h @ k_h^T
            q_h, k_h, (((1,), (1,)), ((), ())),
            preferred_element_type=jnp.float32)

        m = jnp.max(scores, axis=-1, keepdims=True)
        e = jnp.exp(scores - m)                       # unnormalized probs
        denom = jnp.sum(e, axis=-1, keepdims=True)

        ctx_h = jnp.dot(e.astype(jnp.bfloat16), v_h,  # (S, dh)
                        preferred_element_type=jnp.float32)
        ctx_h = ctx_h * pl.reciprocal(denom, approx=True)
        ctx_heads.append(ctx_h.astype(jnp.bfloat16))

    # Lane-concat heads -> one (S, H) context, single K=128 out-proj matmul.
    ctx = jnp.concatenate(ctx_heads, axis=-1)         # (S, H) bf16
    attn = jnp.dot(ctx, wo[...],
                   preferred_element_type=jnp.float32) + bo[...]

    # dropout = identity (eval / inference)
    x = x_in + attn                                   # residual 1

    # ---- LayerNorm 2 + MLP (Linear -> GELU -> Linear), bf16 matmuls ---------
    yn = _layernorm(x, ln2_w[...], ln2_b[...])
    hmid = _gelu(jnp.dot(yn.astype(jnp.bfloat16), w1[...],
                         preferred_element_type=jnp.float32) + b1[...])
    y = jnp.dot(hmid.astype(jnp.bfloat16), w2[...],
                preferred_element_type=jnp.float32) + b2[...]

    o_ref[0] = x + y                                  # residual 2


# -------------------------------- wrapper ------------------------------------
def _full_spec(shape):
    nd = len(shape)
    return pl.BlockSpec(shape, lambda b, _nd=nd: (0,) * _nd)


def prepare_kernel_params(p):
    """One-time weight prep: fuse QKV, fold the attention scale into Q,
    cast matmul weights to bf16 (biases / LN params stay f32)."""
    H = p["wq"].shape[0]
    dh = H // p["num_heads"]
    scale = 1.0 / math.sqrt(dh)
    return {
        "num_heads": p["num_heads"],
        "ln1_w": p["ln1_w"], "ln1_b": p["ln1_b"],
        "wqkv": jnp.concatenate(
            [p["wq"] * scale, p["wk"], p["wv"]], axis=1).astype(jnp.bfloat16),
        "bqkv": jnp.concatenate(
            [p["bq"] * scale, p["bk"], p["bv"]], axis=1),
        "wo": p["wo"].astype(jnp.bfloat16), "bo": p["bo"],
        "ln2_w": p["ln2_w"], "ln2_b": p["ln2_b"],
        "w1": p["w1"].astype(jnp.bfloat16), "b1": p["b1"],
        "w2": p["w2"].astype(jnp.bfloat16), "b2": p["b2"],
    }


def encoder_block_pallas(x, kp):
    # x: (B, S, H) float32; kp: output of prepare_kernel_params.
    B, S, H = x.shape
    weights = (kp["ln1_w"], kp["ln1_b"],
               kp["wqkv"], kp["bqkv"], kp["wo"], kp["bo"],
               kp["ln2_w"], kp["ln2_b"],
               kp["w1"], kp["b1"], kp["w2"], kp["b2"])
    in_specs = [pl.BlockSpec((1, S, H), lambda b: (b, 0, 0))]
    in_specs += [_full_spec(w.shape) for w in weights]

    kernel = functools.partial(encoder_block_kernel, num_heads=kp["num_heads"])
    return pl.pallas_call(
        kernel,
        out_shape=jax.ShapeDtypeStruct((B, S, H), jnp.float32),
        grid=(B,),
        in_specs=in_specs,
        out_specs=pl.BlockSpec((1, S, H), lambda b: (b, 0, 0)),
        scratch_shapes=[pltpu.VMEM((S, 3 * H), jnp.bfloat16)],
        compiler_params=pltpu.CompilerParams(
            dimension_semantics=("parallel",)),
    )(x, *weights)


# ------------------------- pure-JAX reference (check) ------------------------
def encoder_block_reference(x, p):
    nh = p["num_heads"]
    B, S, H = x.shape
    dh = H // nh

    xn = _layernorm(x, p["ln1_w"], p["ln1_b"])
    q = xn @ p["wq"] + p["bq"]
    k = xn @ p["wk"] + p["bk"]
    v = xn @ p["wv"] + p["bv"]

    qh = q.reshape(B, S, nh, dh).transpose(0, 2, 1, 3)
    kh = k.reshape(B, S, nh, dh).transpose(0, 2, 1, 3)
    vh = v.reshape(B, S, nh, dh).transpose(0, 2, 1, 3)

    scores = jnp.einsum("bhqd,bhkd->bhqk", qh, kh) / math.sqrt(dh)
    probs = jax.nn.softmax(scores, axis=-1)
    ctx = jnp.einsum("bhqk,bhkd->bhqd", probs, vh)
    ctx = ctx.transpose(0, 2, 1, 3).reshape(B, S, H)
    attn = ctx @ p["wo"] + p["bo"]

    x1 = x + attn
    yn = _layernorm(x1, p["ln2_w"], p["ln2_b"])
    hmid = _gelu(yn @ p["w1"] + p["b1"])
    y = hmid @ p["w2"] + p["b2"]
    return x1 + y


# --------------------------- deterministic params ----------------------------
def init_params(key, *, num_heads, hidden_dim, mlp_dim):
    # Linear weights stored pre-transposed to (in, out) = PyTorch weight.T,
    # biases stored as (1, out) rows (TPU-friendly 2-D layout).
    ks = iter(jax.random.split(key, 16))

    def dense(k, din, dout):
        return 0.02 * jax.random.normal(k, (din, dout), jnp.float32)

    def bias(k, d):
        return 0.02 * jax.random.normal(k, (1, d), jnp.float32)

    H = hidden_dim
    return {
        "num_heads": num_heads,
        "ln1_w": jnp.ones((1, H), jnp.float32),
        "ln1_b": jnp.zeros((1, H), jnp.float32),
        # MultiheadAttention in_proj split into q/k/v, plus out_proj.
        "wq": dense(next(ks), H, H), "bq": bias(next(ks), H),
        "wk": dense(next(ks), H, H), "bk": bias(next(ks), H),
        "wv": dense(next(ks), H, H), "bv": bias(next(ks), H),
        "wo": dense(next(ks), H, H), "bo": bias(next(ks), H),
        "ln2_w": jnp.ones((1, H), jnp.float32),
        "ln2_b": jnp.zeros((1, H), jnp.float32),
        # MLPBlock: Linear(H, mlp) -> GELU -> Linear(mlp, H)
        "w1": dense(next(ks), H, mlp_dim), "b1": bias(next(ks), mlp_dim),
        "w2": dense(next(ks), mlp_dim, H), "b2": bias(next(ks), H),
    }


if __name__ == "__main__":
    # Small but lane-dense config: batch=2, seq=128, hidden=128 (4 heads of
    # head_dim 32), mlp_dim=256.
    cfg = dict(num_heads=4, hidden_dim=128, mlp_dim=256)
    B, S = 2, 128

    key = jax.random.PRNGKey(0)
    k_x, k_p = jax.random.split(key)
    x = jax.random.normal(k_x, (B, S, cfg["hidden_dim"]), jnp.float32)
    params = init_params(k_p, **cfg)
    kparams = prepare_kernel_params(params)   # one-time fuse/fold/bf16 cast

    out = encoder_block_pallas(x, kparams)
    out = jax.block_until_ready(out)

    ref = encoder_block_reference(x, params)
    assert out.shape == (B, S, cfg["hidden_dim"])
    max_diff = jnp.max(jnp.abs(out - ref))
    # bf16 MXU operands + approx reciprocal -> relaxed (vs f32) tolerance.
    assert jnp.allclose(out, ref, atol=2e-2, rtol=2e-2), \
        f"mismatch: max abs diff {max_diff}"

    print("KERNEL_OK")
</pallas_src>

<mosaic_0001>
module attributes {stable_mosaic.version = 11 : i64} {
  func.func @encoder_block_kernel(%arg0: i32, %arg1: memref<1x128x128xf32, #tpu.memory_space<vmem>>, %arg2: memref<1x128xf32, #tpu.memory_space<vmem>>, %arg3: memref<1x128xf32, #tpu.memory_space<vmem>>, %arg4: memref<128x384xbf16, #tpu.memory_space<vmem>>, %arg5: memref<1x384xf32, #tpu.memory_space<vmem>>, %arg6: memref<128x128xbf16, #tpu.memory_space<vmem>>, %arg7: memref<1x128xf32, #tpu.memory_space<vmem>>, %arg8: memref<1x128xf32, #tpu.memory_space<vmem>>, %arg9: memref<1x128xf32, #tpu.memory_space<vmem>>, %arg10: memref<128x256xbf16, #tpu.memory_space<vmem>>, %arg11: memref<1x256xf32, #tpu.memory_space<vmem>>, %arg12: memref<256x128xbf16, #tpu.memory_space<vmem>>, %arg13: memref<1x128xf32, #tpu.memory_space<vmem>>, %arg14: memref<1x128x128xf32, #tpu.memory_space<vmem>>, %arg15: memref<128x384xbf16, #tpu.memory_space<vmem>>) attributes {dimension_semantics = [#tpu.dimension_semantics<parallel>], iteration_bounds = array<i64: 2>, scalar_prefetch = 0 : i64, scratch_operands = 1 : i64, tpu.core_type = #tpu.core_type<tc>, window_params = [{transform_indices = @transform_0, window_bounds = array<i64: 1, 128, 128>}, {pipeline_mode = #tpu.pipeline_mode<synchronous>, transform_indices = @transform_1, window_bounds = array<i64: 1, 128>}, {pipeline_mode = #tpu.pipeline_mode<synchronous>, transform_indices = @transform_2, window_bounds = array<i64: 1, 128>}, {pipeline_mode = #tpu.pipeline_mode<synchronous>, transform_indices = @transform_3, window_bounds = array<i64: 128, 384>}, {pipeline_mode = #tpu.pipeline_mode<synchronous>, transform_indices = @transform_4, window_bounds = array<i64: 1, 384>}, {pipeline_mode = #tpu.pipeline_mode<synchronous>, transform_indices = @transform_5, window_bounds = array<i64: 128, 128>}, {pipeline_mode = #tpu.pipeline_mode<synchronous>, transform_indices = @transform_6, window_bounds = array<i64: 1, 128>}, {pipeline_mode = #tpu.pipeline_mode<synchronous>, transform_indices = @transform_7, window_bounds = array<i64: 1, 128>}, {pipeline_mode = #tpu.pipeline_mode<synchronous>, transform_indices = @transform_8, window_bounds = array<i64: 1, 128>}, {pipeline_mode = #tpu.pipeline_mode<synchronous>, transform_indices = @transform_9, window_bounds = array<i64: 128, 256>}, {pipeline_mode = #tpu.pipeline_mode<synchronous>, transform_indices = @transform_10, window_bounds = array<i64: 1, 256>}, {pipeline_mode = #tpu.pipeline_mode<synchronous>, transform_indices = @transform_11, window_bounds = array<i64: 256, 128>}, {pipeline_mode = #tpu.pipeline_mode<synchronous>, transform_indices = @transform_12, window_bounds = array<i64: 1, 128>}, {transform_indices = @transform_13, window_bounds = array<i64: 1, 128, 128>}]} {
    %c0 = arith.constant 0 : index
    %c0_0 = arith.constant 0 : index
    %c0_1 = arith.constant 0 : index
    %0 = vector.load %arg1[%c0, %c0_0, %c0_1] : memref<1x128x128xf32, #tpu.memory_space<vmem>>, vector<1x128x128xf32>
    %1 = vector.shape_cast %0 : vector<1x128x128xf32> to vector<128x128xf32>
    %c0_2 = arith.constant 0 : index
    %c0_3 = arith.constant 0 : index
    %2 = vector.load %arg2[%c0_2, %c0_3] : memref<1x128xf32, #tpu.memory_space<vmem>>, vector<1x128xf32>
    %c0_4 = arith.constant 0 : index
    %c0_5 = arith.constant 0 : index
    %3 = vector.load %arg3[%c0_4, %c0_5] : memref<1x128xf32, #tpu.memory_space<vmem>>, vector<1x128xf32>
    %cst = arith.constant dense<0.000000e+00> : vector<128xf32>
    %4 = vector.multi_reduction <add>, %1, %cst [1] : vector<128x128xf32> to vector<128xf32>
    %5 = vector.shape_cast %4 : vector<128xf32> to vector<128x1xf32>
    %cst_6 = arith.constant 1.280000e+02 : f32
    %6 = vector.broadcast %cst_6 : f32 to vector<128x1xf32>
    %7 = arith.divf %5, %6 : vector<128x1xf32>
    %8 = vector.broadcast %7 : vector<128x1xf32> to vector<128x128xf32>
    %9 = arith.subf %1, %8 : vector<128x128xf32>
    %10 = arith.mulf %9, %9 : vector<128x128xf32>
    %cst_7 = arith.constant dense<0.000000e+00> : vector<128xf32>
    %11 = vector.multi_reduction <add>, %10, %cst_7 [1] : vector<128x128xf32> to vector<128xf32>
    %12 = vector.shape_cast %11 : vector<128xf32> to vector<128x1xf32>
    %cst_8 = arith.constant 1.280000e+02 : f32
    %13 = vector.broadcast %cst_8 : f32 to vector<128x1xf32>
    %14 = arith.divf %12, %13 : vector<128x1xf32>
    %15 = vector.broadcast %7 : vector<128x1xf32> to vector<128x128xf32>
    %16 = arith.subf %1, %15 : vector<128x128xf32>
    %cst_9 = arith.constant 9.99999974E-6 : f32
    %17 = vector.broadcast %cst_9 : f32 to vector<128x1xf32>
    %18 = arith.addf %14, %17 : vector<128x1xf32>
    %19 = math.rsqrt %18 : vector<128x1xf32>
    %20 = vector.broadcast %19 : vector<128x1xf32> to vector<128x128xf32>
    %21 = arith.mulf %16, %20 : vector<128x128xf32>
    %22 = vector.broadcast %2 : vector<1x128xf32> to vector<128x128xf32>
    %23 = arith.mulf %21, %22 : vector<128x128xf32>
    %24 = vector.broadcast %3 : vector<1x128xf32> to vector<128x128xf32>
    %25 = arith.addf %23, %24 : vector<128x128xf32>
    %26 = arith.truncf %25 : vector<128x128xf32> to vector<128x128xbf16>
    %c0_10 = arith.constant 0 : index
    %c0_11 = arith.constant 0 : index
    %27 = vector.load %arg4[%c0_10, %c0_11] : memref<128x384xbf16, #tpu.memory_space<vmem>>, vector<128x384xbf16>
    %cst_12 = arith.constant dense<0.000000e+00> : vector<128x384xf32>
    %28 = tpu.matmul %26, %27, %cst_12 {dimension_numbers = #tpu.dot_dimension_numbers<[1], [0], [0], [1], [0, 0, 1, 1], [], []>} : vector<128x128xbf16>, vector<128x384xbf16>, vector<128x384xf32> -> vector<128x384xf32>
    %c0_13 = arith.constant 0 : index
    %c0_14 = arith.constant 0 : index
    %29 = vector.load %arg5[%c0_13, %c0_14] : memref<1x384xf32, #tpu.memory_space<vmem>>, vector<1x384xf32>
    %30 = vector.broadcast %29 : vector<1x384xf32> to vector<128x384xf32>
    %31 = arith.addf %28, %30 : vector<128x384xf32>
    %32 = arith.truncf %31 : vector<128x384xf32> to vector<128x384xbf16>
    %c0_15 = arith.constant 0 : index
    %c0_16 = arith.constant 0 : index
    %33 = vector.load %arg15[%c0_15, %c0_16] : memref<128x384xbf16, #tpu.memory_space<vmem>>, vector<128x384xbf16>
    tpu.vector_store %arg15[%c0_15, %c0_16], %32 {strides = array<i32>} : memref<128x384xbf16, #tpu.memory_space<vmem>>, vector<128x384xbf16>,
    %c0_17 = arith.constant 0 : index
    %c0_18 = arith.constant 0 : index
    %34 = vector.load %arg15[%c0_17, %c0_18] : memref<128x384xbf16, #tpu.memory_space<vmem>>, vector<128x32xbf16>
    %c0_19 = arith.constant 0 : index
    %c128 = arith.constant 128 : index
    %35 = vector.load %arg15[%c0_19, %c128] : memref<128x384xbf16, #tpu.memory_space<vmem>>, vector<128x32xbf16>
    %c0_20 = arith.constant 0 : index
    %c256 = arith.constant 256 : index
    %36 = vector.load %arg15[%c0_20, %c256] : memref<128x384xbf16, #tpu.memory_space<vmem>>, vector<128x32xbf16>
    %cst_21 = arith.constant dense<0.000000e+00> : vector<128x128xf32>
    %37 = tpu.matmul %34, %35, %cst_21 {dimension_numbers = #tpu.dot_dimension_numbers<[1], [1], [0], [0], [0, 0, 1, 0], [], []>} : vector<128x32xbf16>, vector<128x32xbf16>, vector<128x128xf32> -> vector<128x128xf32>
    %cst_22 = arith.constant dense<0xFF800000> : vector<128xf32>
    %38 = vector.multi_reduction <maximumf>, %37, %cst_22 [1] : vector<128x128xf32> to vector<128xf32>
    %39 = vector.shape_cast %38 : vector<128xf32> to vector<128x1xf32>
    %40 = vector.broadcast %39 : vector<128x1xf32> to vector<128x128xf32>
    %41 = arith.subf %37, %40 : vector<128x128xf32>
    %42 = math.exp %41 : vector<128x128xf32>
    %cst_23 = arith.constant dense<0.000000e+00> : vector<128xf32>
    %43 = vector.multi_reduction <add>, %42, %cst_23 [1] : vector<128x128xf32> to vector<128xf32>
    %44 = vector.shape_cast %43 : vector<128xf32> to vector<128x1xf32>
    %45 = arith.truncf %42 : vector<128x128xf32> to vector<128x128xbf16>
    %cst_24 = arith.constant dense<0.000000e+00> : vector<128x32xf32>
    %46 = tpu.matmul %45, %36, %cst_24 {dimension_numbers = #tpu.dot_dimension_numbers<[1], [0], [0], [1], [0, 0, 1, 1], [], []>} : vector<128x128xbf16>, vector<128x32xbf16>, vector<128x32xf32> -> vector<128x32xf32>
    %47 = tpu.reciprocal %44 {approx = true} : vector<128x1xf32> -> vector<128x1xf32>
    %48 = vector.broadcast %47 : vector<128x1xf32> to vector<128x32xf32>
    %49 = arith.mulf %46, %48 : vector<128x32xf32>
    %50 = arith.truncf %49 : vector<128x32xf32> to vector<128x32xbf16>
    %c0_25 = arith.constant 0 : index
    %c32 = arith.constant 32 : index
    %51 = vector.load %arg15[%c0_25, %c32] : memref<128x384xbf16, #tpu.memory_space<vmem>>, vector<128x32xbf16>
    %c0_26 = arith.constant 0 : index
    %c160 = arith.constant 160 : index
    %52 = vector.load %arg15[%c0_26, %c160] : memref<128x384xbf16, #tpu.memory_space<vmem>>, vector<128x32xbf16>
    %c0_27 = arith.constant 0 : index
    %c288 = arith.constant 288 : index
    %53 = vector.load %arg15[%c0_27, %c288] : memref<128x384xbf16, #tpu.memory_space<vmem>>, vector<128x32xbf16>
    %cst_28 = arith.constant dense<0.000000e+00> : vector<128x128xf32>
    %54 = tpu.matmul %51, %52, %cst_28 {dimension_numbers = #tpu.dot_dimension_numbers<[1], [1], [0], [0], [0, 0, 1, 0], [], []>} : vector<128x32xbf16>, vector<128x32xbf16>, vector<128x128xf32> -> vector<128x128xf32>
    %cst_29 = arith.constant dense<0xFF800000> : vector<128xf32>
    %55 = vector.multi_reduction <maximumf>, %54, %cst_29 [1] : vector<128x128xf32> to vector<128xf32>
    %56 = vector.shape_cast %55 : vector<128xf32> to vector<128x1xf32>
    %57 = vector.broadcast %56 : vector<128x1xf32> to vector<128x128xf32>
    %58 = arith.subf %54, %57 : vector<128x128xf32>
    %59 = math.exp %58 : vector<128x128xf32>
    %cst_30 = arith.constant dense<0.000000e+00> : vector<128xf32>
    %60 = vector.multi_reduction <add>, %59, %cst_30 [1] : vector<128x128xf32> to vector<128xf32>
    %61 = vector.shape_cast %60 : vector<128xf32> to vector<128x1xf32>
    %62 = arith.truncf %59 : vector<128x128xf32> to vector<128x128xbf16>
    %cst_31 = arith.constant dense<0.000000e+00> : vector<128x32xf32>
    %63 = tpu.matmul %62, %53, %cst_31 {dimension_numbers = #tpu.dot_dimension_numbers<[1], [0], [0], [1], [0, 0, 1, 1], [], []>} : vector<128x128xbf16>, vector<128x32xbf16>, vector<128x32xf32> -> vector<128x32xf32>
    %64 = tpu.reciprocal %61 {approx = true} : vector<128x1xf32> -> vector<128x1xf32>
    %65 = vector.broadcast %64 : vector<128x1xf32> to vector<128x32xf32>
    %66 = arith.mulf %63, %65 : vector<128x32xf32>
    %67 = arith.truncf %66 : vector<128x32xf32> to vector<128x32xbf16>
    %c0_32 = arith.constant 0 : index
    %c64 = arith.constant 64 : index
    %68 = vector.load %arg15[%c0_32, %c64] : memref<128x384xbf16, #tpu.memory_space<vmem>>, vector<128x32xbf16>
    %c0_33 = arith.constant 0 : index
    %c192 = arith.constant 192 : index
    %69 = vector.load %arg15[%c0_33, %c192] : memref<128x384xbf16, #tpu.memory_space<vmem>>, vector<128x32xbf16>
    %c0_34 = arith.constant 0 : index
    %c320 = arith.constant 320 : index
    %70 = vector.load %arg15[%c0_34, %c320] : memref<128x384xbf16, #tpu.memory_space<vmem>>, vector<128x32xbf16>
    %cst_35 = arith.constant dense<0.000000e+00> : vector<128x128xf32>
    %71 = tpu.matmul %68, %69, %cst_35 {dimension_numbers = #tpu.dot_dimension_numbers<[1], [1], [0], [0], [0, 0, 1, 0], [], []>} : vector<128x32xbf16>, vector<128x32xbf16>, vector<128x128xf32> -> vector<128x128xf32>
    %cst_36 = arith.constant dense<0xFF800000> : vector<128xf32>
    %72 = vector.multi_reduction <maximumf>, %71, %cst_36 [1] : vector<128x128xf32> to vector<128xf32>
    %73 = vector.shape_cast %72 : vector<128xf32> to vector<128x1xf32>
    %74 = vector.broadcast %73 : vector<128x1xf32> to vector<128x128xf32>
    %75 = arith.subf %71, %74 : vector<128x128xf32>
    %76 = math.exp %75 : vector<128x128xf32>
    %cst_37 = arith.constant dense<0.000000e+00> : vector<128xf32>
    %77 = vector.multi_reduction <add>, %76, %cst_37 [1] : vector<128x128xf32> to vector<128xf32>
    %78 = vector.shape_cast %77 : vector<128xf32> to vector<128x1xf32>
    %79 = arith.truncf %76 : vector<128x128xf32> to vector<128x128xbf16>
    %cst_38 = arith.constant dense<0.000000e+00> : vector<128x32xf32>
    %80 = tpu.matmul %79, %70, %cst_38 {dimension_numbers = #tpu.dot_dimension_numbers<[1], [0], [0], [1], [0, 0, 1, 1], [], []>} : vector<128x128xbf16>, vector<128x32xbf16>, vector<128x32xf32> -> vector<128x32xf32>
    %81 = tpu.reciprocal %78 {approx = true} : vector<128x1xf32> -> vector<128x1xf32>
    %82 = vector.broadcast %81 : vector<128x1xf32> to vector<128x32xf32>
    %83 = arith.mulf %80, %82 : vector<128x32xf32>
    %84 = arith.truncf %83 : vector<128x32xf32> to vector<128x32xbf16>
    %c0_39 = arith.constant 0 : index
    %c96 = arith.constant 96 : index
    %85 = vector.load %arg15[%c0_39, %c96] : memref<128x384xbf16, #tpu.memory_space<vmem>>, vector<128x32xbf16>
    %c0_40 = arith.constant 0 : index
    %c224 = arith.constant 224 : index
    %86 = vector.load %arg15[%c0_40, %c224] : memref<128x384xbf16, #tpu.memory_space<vmem>>, vector<128x32xbf16>
    %c0_41 = arith.constant 0 : index
    %c352 = arith.constant 352 : index
    %87 = vector.load %arg15[%c0_41, %c352] : memref<128x384xbf16, #tpu.memory_space<vmem>>, vector<128x32xbf16>
    %cst_42 = arith.constant dense<0.000000e+00> : vector<128x128xf32>
    %88 = tpu.matmul %85, %86, %cst_42 {dimension_numbers = #tpu.dot_dimension_numbers<[1], [1], [0], [0], [0, 0, 1, 0], [], []>} : vector<128x32xbf16>, vector<128x32xbf16>, vector<128x128xf32> -> vector<128x128xf32>
    %cst_43 = arith.constant dense<0xFF800000> : vector<128xf32>
    %89 = vector.multi_reduction <maximumf>, %88, %cst_43 [1] : vector<128x128xf32> to vector<128xf32>
    %90 = vector.shape_cast %89 : vector<128xf32> to vector<128x1xf32>
    %91 = vector.broadcast %90 : vector<128x1xf32> to vector<128x128xf32>
    %92 = arith.subf %88, %91 : vector<128x128xf32>
    %93 = math.exp %92 : vector<128x128xf32>
    %cst_44 = arith.constant dense<0.000000e+00> : vector<128xf32>
    %94 = vector.multi_reduction <add>, %93, %cst_44 [1] : vector<128x128xf32> to vector<128xf32>
    %95 = vector.shape_cast %94 : vector<128xf32> to vector<128x1xf32>
    %96 = arith.truncf %93 : vector<128x128xf32> to vector<128x128xbf16>
    %cst_45 = arith.constant dense<0.000000e+00> : vector<128x32xf32>
    %97 = tpu.matmul %96, %87, %cst_45 {dimension_numbers = #tpu.dot_dimension_numbers<[1], [0], [0], [1], [0, 0, 1, 1], [], []>} : vector<128x128xbf16>, vector<128x32xbf16>, vector<128x32xf32> -> vector<128x32xf32>
    %98 = tpu.reciprocal %95 {approx = true} : vector<128x1xf32> -> vector<128x1xf32>
    %99 = vector.broadcast %98 : vector<128x1xf32> to vector<128x32xf32>
    %100 = arith.mulf %97, %99 : vector<128x32xf32>
    %101 = arith.truncf %100 : vector<128x32xf32> to vector<128x32xbf16>
    %102 = tpu.concatenate %50, %67, %84, %101 in 1 : vector<128x32xbf16>, vector<128x32xbf16>, vector<128x32xbf16>, vector<128x32xbf16> -> vector<128x128xbf16>
    %c0_46 = arith.constant 0 : index
    %c0_47 = arith.constant 0 : index
    %103 = vector.load %arg6[%c0_46, %c0_47] : memref<128x128xbf16, #tpu.memory_space<vmem>>, vector<128x128xbf16>
    %cst_48 = arith.constant dense<0.000000e+00> : vector<128x128xf32>
    %104 = tpu.matmul %102, %103, %cst_48 {dimension_numbers = #tpu.dot_dimension_numbers<[1], [0], [0], [1], [0, 0, 1, 1], [], []>} : vector<128x128xbf16>, vector<128x128xbf16>, vector<128x128xf32> -> vector<128x128xf32>
    %c0_49 = arith.constant 0 : index
    %c0_50 = arith.constant 0 : index
    %105 = vector.load %arg7[%c0_49, %c0_50] : memref<1x128xf32, #tpu.memory_space<vmem>>, vector<1x128xf32>
    %106 = vector.broadcast %105 : vector<1x128xf32> to vector<128x128xf32>
    %107 = arith.addf %104, %106 : vector<128x128xf32>
    %108 = arith.addf %1, %107 : vector<128x128xf32>
    %c0_51 = arith.constant 0 : index
    %c0_52 = arith.constant 0 : index
    %109 = vector.load %arg8[%c0_51, %c0_52] : memref<1x128xf32, #tpu.memory_space<vmem>>, vector<1x128xf32>
    %c0_53 = arith.constant 0 : index
    %c0_54 = arith.constant 0 : index
    %110 = vector.load %arg9[%c0_53, %c0_54] : memref<1x128xf32, #tpu.memory_space<vmem>>, vector<1x128xf32>
    %cst_55 = arith.constant dense<0.000000e+00> : vector<128xf32>
    %111 = vector.multi_reduction <add>, %108, %cst_55 [1] : vector<128x128xf32> to vector<128xf32>
    %112 = vector.shape_cast %111 : vector<128xf32> to vector<128x1xf32>
    %cst_56 = arith.constant 1.280000e+02 : f32
    %113 = vector.broadcast %cst_56 : f32 to vector<128x1xf32>
    %114 = arith.divf %112, %113 : vector<128x1xf32>
    %115 = vector.broadcast %114 : vector<128x1xf32> to vector<128x128xf32>
    %116 = arith.subf %108, %115 : vector<128x128xf32>
    %117 = arith.mulf %116, %116 : vector<128x128xf32>
    %cst_57 = arith.constant dense<0.000000e+00> : vector<128xf32>
    %118 = vector.multi_reduction <add>, %117, %cst_57 [1] : vector<128x128xf32> to vector<128xf32>
    %119 = vector.shape_cast %118 : vector<128xf32> to vector<128x1xf32>
    %cst_58 = arith.constant 1.280000e+02 : f32
    %120 = vector.broadcast %cst_58 : f32 to vector<128x1xf32>
    %121 = arith.divf %119, %120 : vector<128x1xf32>
    %122 = vector.broadcast %114 : vector<128x1xf32> to vector<128x128xf32>
    %123 = arith.subf %108, %122 : vector<128x128xf32>
    %cst_59 = arith.constant 9.99999974E-6 : f32
    %124 = vector.broadcast %cst_59 : f32 to vector<128x1xf32>
    %125 = arith.addf %121, %124 : vector<128x1xf32>
    %126 = math.rsqrt %125 : vector<128x1xf32>
    %127 = vector.broadcast %126 : vector<128x1xf32> to vector<128x128xf32>
    %128 = arith.mulf %123, %127 : vector<128x128xf32>
    %129 = vector.broadcast %109 : vector<1x128xf32> to vector<128x128xf32>
    %130 = arith.mulf %128, %129 : vector<128x128xf32>
    %131 = vector.broadcast %110 : vector<1x128xf32> to vector<128x128xf32>
    %132 = arith.addf %130, %131 : vector<128x128xf32>
    %133 = arith.truncf %132 : vector<128x128xf32> to vector<128x128xbf16>
    %c0_60 = arith.constant 0 : index
    %c0_61 = arith.constant 0 : index
    %134 = vector.load %arg10[%c0_60, %c0_61] : memref<128x256xbf16, #tpu.memory_space<vmem>>, vector<128x256xbf16>
    %cst_62 = arith.constant dense<0.000000e+00> : vector<128x256xf32>
    %135 = tpu.matmul %133, %134, %cst_62 {dimension_numbers = #tpu.dot_dimension_numbers<[1], [0], [0], [1], [0, 0, 1, 1], [], []>} : vector<128x128xbf16>, vector<128x256xbf16>, vector<128x256xf32> -> vector<128x256xf32>
    %c0_63 = arith.constant 0 : index
    %c0_64 = arith.constant 0 : index
    %136 = vector.load %arg11[%c0_63, %c0_64] : memref<1x256xf32, #tpu.memory_space<vmem>>, vector<1x256xf32>
    %137 = vector.broadcast %136 : vector<1x256xf32> to vector<128x256xf32>
    %138 = arith.addf %135, %137 : vector<128x256xf32>
    %cst_65 = arith.constant 5.000000e-01 : f32
    %139 = vector.broadcast %cst_65 : f32 to vector<128x256xf32>
    %140 = arith.mulf %139, %138 : vector<128x256xf32>
    %cst_66 = arith.constant 0.707106769 : f32
    %141 = vector.broadcast %cst_66 : f32 to vector<128x256xf32>
    %142 = arith.mulf %138, %141 : vector<128x256xf32>
    %143 = math.erf %142 : vector<128x256xf32>
    %cst_67 = arith.constant 1.000000e+00 : f32
    %144 = vector.broadcast %cst_67 : f32 to vector<128x256xf32>
    %145 = arith.addf %144, %143 : vector<128x256xf32>
    %146 = arith.mulf %140, %145 : vector<128x256xf32>
    %147 = arith.truncf %146 : vector<128x256xf32> to vector<128x256xbf16>
    %c0_68 = arith.constant 0 : index
    %c0_69 = arith.constant 0 : index
    %148 = vector.load %arg12[%c0_68, %c0_69] : memref<256x128xbf16, #tpu.memory_space<vmem>>, vector<256x128xbf16>
    %cst_70 = arith.constant dense<0.000000e+00> : vector<128x128xf32>
    %149 = tpu.matmul %147, %148, %cst_70 {dimension_numbers = #tpu.dot_dimension_numbers<[1], [0], [0], [1], [0, 0, 1, 1], [], []>} : vector<128x256xbf16>, vector<256x128xbf16>, vector<128x128xf32> -> vector<128x128xf32>
    %c0_71 = arith.constant 0 : index
    %c0_72 = arith.constant 0 : index
    %150 = vector.load %arg13[%c0_71, %c0_72] : memref<1x128xf32, #tpu.memory_space<vmem>>, vector<1x128xf32>
    %151 = vector.broadcast %150 : vector<1x128xf32> to vector<128x128xf32>
    %152 = arith.addf %149, %151 : vector<128x128xf32>
    %153 = arith.addf %108, %152 : vector<128x128xf32>
    %c0_73 = arith.constant 0 : index
    %c0_74 = arith.constant 0 : index
    %c0_75 = arith.constant 0 : index
    %154 = vector.load %arg14[%c0_73, %c0_74, %c0_75] : memref<1x128x128xf32, #tpu.memory_space<vmem>>, vector<1x128x128xf32>
    %155 = vector.shape_cast %154 : vector<1x128x128xf32> to vector<128x128xf32>
    %156 = vector.shape_cast %153 : vector<128x128xf32> to vector<1x128x128xf32>
    tpu.vector_store %arg14[%c0_73, %c0_74, %c0_75], %156 {strides = array<i32>} : memref<1x128x128xf32, #tpu.memory_space<vmem>>, vector<1x128x128xf32>,
    return
  }
  func.func @transform_0(%arg0: i32) -> (i32, i32, i32) {
    %c0_i32 = arith.constant 0 : i32
    %c0_i32_0 = arith.constant 0 : i32
    %c0_i32_1 = arith.constant 0 : i32
    return %arg0, %c0_i32, %c0_i32_0 : i32, i32, i32
  }
  func.func @transform_1(%arg0: i32) -> (i32, i32) {
    %c0_i32 = arith.constant 0 : i32
    %c0_i32_0 = arith.constant 0 : i32
    %c0_i32_1 = arith.constant 0 : i32
    return %c0_i32, %c0_i32_0 : i32, i32
  }
  func.func @transform_2(%arg0: i32) -> (i32, i32) {
    %c0_i32 = arith.constant 0 : i32
    %c0_i32_0 = arith.constant 0 : i32
    %c0_i32_1 = arith.constant 0 : i32
    return %c0_i32, %c0_i32_0 : i32, i32
  }
  func.func @transform_3(%arg0: i32) -> (i32, i32) {
    %c0_i32 = arith.constant 0 : i32
    %c0_i32_0 = arith.constant 0 : i32
    %c0_i32_1 = arith.constant 0 : i32
    return %c0_i32, %c0_i32_0 : i32, i32
  }
  func.func @transform_4(%arg0: i32) -> (i32, i32) {
    %c0_i32 = arith.constant 0 : i32
    %c0_i32_0 = arith.constant 0 : i32
    %c0_i32_1 = arith.constant 0 : i32
    return %c0_i32, %c0_i32_0 : i32, i32
  }
  func.func @transform_5(%arg0: i32) -> (i32, i32) {
    %c0_i32 = arith.constant 0 : i32
    %c0_i32_0 = arith.constant 0 : i32
    %c0_i32_1 = arith.constant 0 : i32
    return %c0_i32, %c0_i32_0 : i32, i32
  }
  func.func @transform_6(%arg0: i32) -> (i32, i32) {
    %c0_i32 = arith.constant 0 : i32
    %c0_i32_0 = arith.constant 0 : i32
    %c0_i32_1 = arith.constant 0 : i32
    return %c0_i32, %c0_i32_0 : i32, i32
  }
  func.func @transform_7(%arg0: i32) -> (i32, i32) {
    %c0_i32 = arith.constant 0 : i32
    %c0_i32_0 = arith.constant 0 : i32
    %c0_i32_1 = arith.constant 0 : i32
    return %c0_i32, %c0_i32_0 : i32, i32
  }
  func.func @transform_8(%arg0: i32) -> (i32, i32) {
    %c0_i32 = arith.constant 0 : i32
    %c0_i32_0 = arith.constant 0 : i32
    %c0_i32_1 = arith.constant 0 : i32
    return %c0_i32, %c0_i32_0 : i32, i32
  }
  func.func @transform_9(%arg0: i32) -> (i32, i32) {
    %c0_i32 = arith.constant 0 : i32
    %c0_i32_0 = arith.constant 0 : i32
    %c0_i32_1 = arith.constant 0 : i32
    return %c0_i32, %c0_i32_0 : i32, i32
  }
  func.func @transform_10(%arg0: i32) -> (i32, i32) {
    %c0_i32 = arith.constant 0 : i32
    %c0_i32_0 = arith.constant 0 : i32
    %c0_i32_1 = arith.constant 0 : i32
    return %c0_i32, %c0_i32_0 : i32, i32
  }
  func.func @transform_11(%arg0: i32) -> (i32, i32) {
    %c0_i32 = arith.constant 0 : i32
    %c0_i32_0 = arith.constant 0 : i32
    %c0_i32_1 = arith.constant 0 : i32
    return %c0_i32, %c0_i32_0 : i32, i32
  }
  func.func @transform_12(%arg0: i32) -> (i32, i32) {
    %c0_i32 = arith.constant 0 : i32
    %c0_i32_0 = arith.constant 0 : i32
    %c0_i32_1 = arith.constant 0 : i32
    return %c0_i32, %c0_i32_0 : i32, i32
  }
  func.func @transform_13(%arg0: i32) -> (i32, i32, i32) {
    %c0_i32 = arith.constant 0 : i32
    %c0_i32_0 = arith.constant 0 : i32
    %c0_i32_1 = arith.constant 0 : i32
    return %arg0, %c0_i32, %c0_i32_0 : i32, i32, i32
  }
}

</mosaic_0001>

<bundles_post_ra>
// kernel: tpu_custom_call.1
= control target key start
LH: loop header
LB: loop body
LE: loop exit
PB: predicated region body
PF: predicated region fallthrough
CT: control target
= control target key end

     0   :  { %s8052_s0 = inlined_call_operand.hbm [shape: f32[2,128,128], index: 0, kind: input, shape index: {}]   ;;  %s8053_s1 = inlined_call_operand.vmem [shape: f32[1,128], index: 1, kind: input, shape index: {}]   ;;  %s8054_s2 = inlined_call_operand.vmem [shape: f32[1,128], index: 2, kind: input, shape index: {}]   ;;  %s8055_s3 = inlined_call_operand.hbm [shape: bf16[128,384], index: 3, kind: input, shape index: {}]   ;;  %s8056_s4 = inlined_call_operand.vmem [shape: f32[1,384], index: 4, kind: input, shape index: {}]   ;;  %s8057_s5 = inlined_call_operand.hbm [shape: bf16[128,128], index: 5, kind: input, shape index: {}]   ;;  %s8058_s6 = inlined_call_operand.vmem [shape: f32[1,128], index: 6, kind: input, shape index: {}]   ;;  %s8059_s7 = inlined_call_operand.vmem [shape: f32[1,128], index: 7, kind: input, shape index: {}]   ;;  %s8060_s8 = inlined_call_operand.vmem [shape: f32[1,128], index: 8, kind: input, shape index: {}]   ;;  %s8061_s9 = inlined_call_operand.hbm [shape: bf16[128,256], index: 9, kind: input, shape index: {}]   ;;  %s8062_s10 = inlined_call_operand.vmem [shape: f32[1,256], index: 10, kind: input, shape index: {}]   ;;  %s8063_s11 = inlined_call_operand.hbm [shape: bf16[256,128], index: 11, kind: input, shape index: {}]   ;;  %s8064_s12 = inlined_call_operand.vmem [shape: f32[1,128], index: 12, kind: input, shape index: {}]   ;;  %s8065_s13 = inlined_call_operand.hbm [shape: f32[2,128,128], index: 13, kind: output, shape index: {}]  }
   0x1   :  { %8089 = sst [smem:[#allocation59_spill]] %s8055_s3 }
   0x2   :  { %8090 = sst [smem:[#allocation60_spill]] %s8060_s8 }
   0x3   :  { %8091 = sst [smem:[#allocation61_spill]] %s8062_s10 }
   0x4   :  { %8092 = sst [smem:[#allocation62_spill]] %s8064_s12 }
   0x5   :  { %8093 = sst [smem:[#allocation63_spill]] %s8065_s13 }
   0x6   :  { %18 = vsyncpa [#allocation4], 0 }
   0x7   :  { %20 = vsyncpa [#allocation4 + $0x1], 0 }
   0x8   :  { %21 = vsyncpa [#allocation7], 0 }
   0x9   :  { %22 = vsyncpa [#allocation10], 0 }
   0xa   :  { %23 = vsyncpa [#allocation5], 0 }
   0xb   :  { %25 = vsyncpa [#allocation5 + $0x1], 0  ;;  %s5966_s25 = smov 0   ;;  %s5968_s26 = smov 0  }
   0xc   :  { %s5970_s27 = smov 0   ;;  %s5972_s28 = smov 0  }
   0xd LB: > { %8094 = sst [smem:[#allocation17_spill]] %s5864_s25  ;;  %s5987_s29 = sadd.s32 4294967295, %s5876_s28   ;;  %s5876_s28 = sphi %s5972_s28, %s8210_s28   ;;  %s5872_s27 = sphi %s5970_s27, %s8209_s27   ;;  %s5868_s26 = sphi %s5968_s26, %s8208_s26   ;;  %s5864_s25 = sphi %s5966_s25, %s8207_s25  }
   0xe   : > { %s4363_s30 = sadd.s32 4294967294, %s5876_s28   ;;  %p51_p0 = scmp.ne.s32.totalorder %s5868_s26, %s5864_s25 }
   0xf   : > { %p8068_p1 = scmp.eq.s32.totalorder %s5987_s29, 0  ;;  %p333_p3 = scmp.eq.s32.totalorder %s4363_s30, 1 }
  0x10   : > { %p4364_p5 = scmp.ge.s32.totalorder %s5876_s28, 1  ;;  %p340_p7 = scmp.lt.s32.totalorder %s5876_s28, 3 }
  0x11   : > { %p5996_p4 = por %p8068_p1, %p51_p0  ;;  %p6001_p6 = por %p333_p3, %p51_p0 }
  0x12   : > { %p6006_p8 = pnand %p4364_p5, %p340_p7  ;;  %s5878_s17 = smov [#allocation6]  }
  0x13   : > { %s8095_s14 = scalar_select %p5996_p4, 1, 0 }
  0x14   : > { %s8096_s15 = scalar_select %p6001_p6, 1, 0 }
  0x15   : > { %s8098_s16 = scalar_select %p6006_p8, 1, 0 }
  0x16   : > { %8097 = sst [smem:[#allocation18_spill]] %s8096_s15  ;;  %s358_s18 = sshll.u32 %s5878_s17, 4  ;;  %s6010_s18 = int_to_ptr.vmem [resolvable:$true] %s358_s18 }
  0x17   : > { %p5101_p9 = pneg %p6006_p8  ;;  %s5879_s20 = smov [#allocation9]  }
  0x18   : > { %s396_s21 = sshll.u32 %s5879_s20, 4  ;;  %s8100_s3 = sld [smem:[#allocation59_spill]]  ;;  %s6021_s21 = int_to_ptr.vmem [resolvable:$true] %s396_s21 }
  0x19   : > { %p6017_p11 = pnand %p5101_p9, %p8068_p1 }
  0x1b   : > { %p6031_p13 = pneg %p6017_p11 }
  0x1e   : > { %s5660_s24 = scalar_lea.hbm %s8100_s3, 3072 }
  0x1f   : > { %p5661_p12 = scmp.ne.s32.totalorder %s8100_s3, %s5660_s24  ;;  %p5667_p5 = scmp.lt.u32.totalorder %s5660_s24, %s8100_s3 }
  0x21   : > { %p5663_p0 = pnand %p6031_p13, %p5661_p12 }
  0x23   : > { %p5664_p3 = pneg %p5663_p0 }
  0x25   : > { %p5669_p7 = pnand %p5667_p5, %p5664_p3 }
  0x27   : > { %5672 = shalt.err (!%p5669_p7)
}
  0x28   : > { %s5673_s22 = scalar_lea.vmem %s6010_s18, 3072  ;;  %p5681_p2 = scmp.lt.s32.totalorder %s6010_s18, %s6010_s18 }
  0x29   : > { %p5674_p9 = scmp.ne.s32.totalorder %s6010_s18, %s5673_s22  ;;  %p5682_p6 = scmp.lt.s32.totalorder %s5673_s22, %s5673_s22 }
  0x2b   : > { %p5676_p10 = pnand %p5674_p9, %p6031_p13  ;;  %p5683_p12 = por %p5682_p6, %p5681_p2 }
  0x2d   : > { %p5677_p1 = pneg %p5676_p10 }
  0x2f   : > { %p5684_p0 = pnand %p5683_p12, %p5677_p1 }
  0x31   : > { %5687 = shalt.err (!%p5684_p0)
}
  0x32   : > { %s5880_s23 = smov 192   ;;  %s5881_s25 = smov 12  }
  0x33   : > { %5104 = dma.hbm_to_vmem [thread:$0]  (!%p6017_p11), %s8100_s3, 3072, %s6010_s18, [#allocation7], %s5880_s23, %s5880_s23, %s5881_s25  }
  0x34   : > { %s5688_s13 = scalar_lea.hbm %s8061_s9, 2048 }
  0x35   : > { %p5689_p2 = scmp.ne.s32.totalorder %s8061_s9, %s5688_s13  ;;  %p5695_p10 = scmp.lt.u32.totalorder %s5688_s13, %s8061_s9 }
  0x37   : > { %p5691_p1 = pnand %p5689_p2, %p6031_p13 }
  0x39   : > { %p5692_p6 = pneg %p5691_p1 }
  0x3b   : > { %p5697_p3 = pnand %p5695_p10, %p5692_p6 }
  0x3d   : > { %5700 = shalt.err (!%p5697_p3)
}
  0x3e   : > { %s5701_s18 = scalar_lea.vmem %s6021_s21, 2048  ;;  %p5709_p12 = scmp.lt.s32.totalorder %s6021_s21, %s6021_s21 }
  0x3f   : > { %p5702_p5 = scmp.ne.s32.totalorder %s6021_s21, %s5701_s18  ;;  %p5710_p0 = scmp.lt.s32.totalorder %s5701_s18, %s5701_s18 }
  0x41   : > { %p5704_p7 = pnand %p5702_p5, %p6031_p13  ;;  %p5711_p2 = por %p5710_p0, %p5709_p12 }
  0x43   : > { %p5705_p9 = pneg %p5704_p7 }
  0x45   : > { %p5712_p1 = pnand %p5711_p2, %p5705_p9 }
  0x47   : > { %5715 = shalt.err (!%p5712_p1)
}
  0x48   : > { %s8072_s10 = smov 128   ;;  %s8073_s8 = smov 8  }
  0x49   : > { %5110 = dma.hbm_to_vmem [thread:$0]  (!%p6017_p11), %s8061_s9, 2048, %s6021_s21, [#allocation10], %s8072_s10, %s8072_s10, %s8073_s8  }
  0x4a   : > { %s5884_s23 = smov [#allocation8]   ;;  %s5716_s17 = scalar_lea.hbm %s8057_s5, 1024 }
  0x4b   : > { %s374_s25 = sshll.u32 %s5884_s23, 4  ;;  %p5717_p6 = scmp.ne.s32.totalorder %s8057_s5, %s5716_s17  ;;  %s375_s25 = int_to_ptr.vmem [resolvable:$true] %s374_s25 }
  0x4c   : > { %p5723_p5 = scmp.lt.u32.totalorder %s5716_s17, %s8057_s5 }
  0x4d   : > { %p5719_p10 = pnand %p5717_p6, %p6031_p13 }
  0x4f   : > { %p5720_p3 = pneg %p5719_p10 }
  0x51   : > { %p5725_p7 = pnand %p5723_p5, %p5720_p3 }
  0x53   : > { %5728 = shalt.err (!%p5725_p7)
}
  0x54   : > { %s5729_s21 = scalar_lea.vmem %s375_s25, 1024  ;;  %p5737_p2 = scmp.lt.s32.totalorder %s375_s25, %s375_s25 }
  0x55   : > { %p5730_p9 = scmp.ne.s32.totalorder %s375_s25, %s5729_s21  ;;  %p5738_p1 = scmp.lt.s32.totalorder %s5729_s21, %s5729_s21 }
  0x57   : > { %p5732_p12 = pnand %p5730_p9, %p6031_p13  ;;  %p5739_p4 = por %p5738_p1, %p5737_p2 }
  0x59   : > { %p5733_p0 = pneg %p5732_p12 }
  0x5b   : > { %p5740_p8 = pnand %p5739_p4, %p5733_p0 }
  0x5d   : > { %5743 = shalt.err (!%p5740_p8)
}
  0x5e   : > { %s5885_s12 = smov 64   ;;  %s5886_s13 = smov 4  }
  0x5f   : > { %5107 = dma.hbm_to_vmem [thread:$0]  (!%p6017_p11), %s8057_s5, 1024, %s375_s25, [#allocation7], %s5885_s12, %s5885_s12, %s5886_s13  }
  0x60   : > { %s5887_s24 = smov [#allocation11]   ;;  %s5744_s22 = scalar_lea.hbm %s8063_s11, 2048 }
  0x61   : > { %s412_s30 = sshll.u32 %s5887_s24, 4  ;;  %p5745_p4 = scmp.ne.s32.totalorder %s8063_s11, %s5744_s22  ;;  %s413_s30 = int_to_ptr.vmem [resolvable:$true] %s412_s30 }
  0x62   : > { %p5751_p10 = scmp.lt.u32.totalorder %s5744_s22, %s8063_s11 }
  0x63   : > { %p5747_p8 = pnand %p5745_p4, %p6031_p13 }
  0x65   : > { %p5748_p6 = pneg %p5747_p8 }
  0x67   : > { %p5753_p3 = pnand %p5751_p10, %p5748_p6 }
  0x69   : > { %5756 = shalt.err (!%p5753_p3)
}
  0x6a   : > { %s5757_s25 = scalar_lea.vmem %s413_s30, 2048  ;;  %p5765_p12 = scmp.lt.s32.totalorder %s413_s30, %s413_s30 }
  0x6b   : > { %p5758_p5 = scmp.ne.s32.totalorder %s413_s30, %s5757_s25  ;;  %p5766_p0 = scmp.lt.s32.totalorder %s5757_s25, %s5757_s25 }
  0x6d   : > { %p5760_p7 = pnand %p5758_p5, %p6031_p13  ;;  %p5767_p2 = por %p5766_p0, %p5765_p12 }
  0x6f   : > { %p5761_p9 = pneg %p5760_p7 }
  0x71   : > { %p5768_p1 = pnand %p5767_p2, %p5761_p9 }
  0x73   : > { %5771 = shalt.err (!%p5768_p1)
}
  0x74   : > { %5113 = dma.hbm_to_vmem [thread:$0]  (!%p6017_p11), %s8063_s11, 2048, %s413_s30, [#allocation10], %s5885_s12, %s5885_s12, %s5886_s13  }
  0x75   : > { %s6115_s15 = sadd.s32 1, %s5876_s28   ;;  %s38_s10 = sadd.s32 1, %s5872_s27 }
  0x76   : > { %s35_s19 = ssub.s32 %s5876_s28, %s6115_s15  ;;  %p45_p13 = scmp.ne.s32.totalorder %s5872_s27, %s5868_s26 }
  0x77   : > { %p36_p4 = scmp.eq.s32.totalorder %s35_s19, 0  ;;  %p46_p8 = scmp.eq.s32.totalorder %s5876_s28, 0 }
  0x78   : > { %p8102_p6 = scmp.eq.s32.totalorder %s5987_s29, 1  ;;  %p5126_p3 = scmp.lt.s32.totalorder %s5876_s28, 2 }
  0x79   : > { %s6131_s24 = scalar_select %p36_p4, %s5872_s27, %s38_s10  }
  0x7a   : > { %p6125_p10 = por %p8102_p6, %p45_p13  ;;  %p47_p5 = por %p46_p8, %p45_p13 }
  0x7b   : > { %s429_s17 = sand.u32 1, %s5872_s27   ;;  %s4487_s12 = sshll.u32 %s5876_s28, 11 }
  0x7c   : > { %s4370_s20 = sshll.u32 %s429_s17, 7  ;;  %s6138_s22 = scalar_lea.hbm %s8052_s0, %s4487_s12 }
  0x7d   : > { %s433_s18 = scalar_lea.vmem [#allocation3], %s4370_s20  ;;  %p6142_p11 = pnand %p5126_p3, %p47_p5 }
  0x7e   : > { %s440_s21 = sshll.u32 %s433_s18, 4  ;;  %s6146_s3 = scalar_lea.sflag [#allocation4], %s429_s17  ;;  %s6140_s21 = int_to_ptr.vmem [resolvable:$true] %s440_s21 }
  0x7f   : > { %s5772_s23 = scalar_lea.hbm %s6138_s22, 2048  ;;  %p5774_p9 = pneg %p6142_p11 }
  0x80   : > { %p5773_p7 = scmp.ne.s32.totalorder %s6138_s22, %s5772_s23  ;;  %s5777_s20 = scalar_lea.hbm %s8052_s0, 4096 }
  0x81   : > { %p5778_p2 = scmp.lt.u32.totalorder %s6138_s22, %s8052_s0  ;;  %p5779_p1 = scmp.lt.u32.totalorder %s5777_s20, %s5772_s23 }
  0x82   : > { %p5775_p12 = pnand %p5774_p9, %p5773_p7  ;;  %p5781_p4 = scmp.lt.u32.totalorder %s5772_s23, %s6138_s22 }
  0x83   : > { %p5780_p13 = por %p5779_p1, %p5778_p2 }
  0x84   : > { %p5776_p0 = pneg %p5775_p12 }
  0x85   : > { %p5782_p8 = por %p5781_p4, %p5780_p13 }
  0x87   : > { %p5783_p6 = pnand %p5782_p8, %p5776_p0 }
  0x89   : > { %5786 = shalt.err (!%p5783_p6)
}
  0x8a   : > { %s5787_s17 = scalar_lea.vmem %s6140_s21, 2048  ;;  %s5888_s30 = smov [#allocation3]  }
  0x8b   : > { %p5788_p3 = scmp.ne.s32.totalorder %s6140_s21, %s5787_s17  ;;  %s5792_s18 = sshll.u32 %s5888_s30, 4  ;;  %s5793_s18 = int_to_ptr.vmem [resolvable:$false] %s5792_s18 }
  0x8c   : > { %s5794_s10 = scalar_lea.vmem %s5793_s18, 4096  ;;  %p5795_p12 = scmp.lt.s32.totalorder %s6140_s21, %s5793_s18 }
  0x8d   : > { %p5790_p5 = pnand %p5788_p3, %p5774_p9  ;;  %p5796_p2 = scmp.lt.s32.totalorder %s5794_s10, %s5787_s17 }
  0x8f   : > { %p5791_p7 = pneg %p5790_p5  ;;  %p5797_p1 = por %p5796_p2, %p5795_p12 }
  0x91   : > { %p5798_p13 = pnand %p5797_p1, %p5791_p7 }
  0x93   : > { %5801 = shalt.err (!%p5798_p13)
}
  0x94   : > { %s8105_s23 = smov 8   ;;  %s8106_s19 = smov 128  }
  0x95   : > { %5117 = dma.hbm_to_vmem [thread:$0]  (!%p6142_p11), %s6138_s22, 2048, %s6140_s21, %s6146_s3, %s8106_s19, %s8106_s19, %s8105_s23  }
  0x96   : > { %p8107_p9 = scmp.ne.s32.totalorder %s8098_s16, 0 }
  0x98   : > { %452 = sbr.rel (%p8107_p9) target bundleno = 4019 (0xfb3), region = 72 }
  0x9f   : > { %s6180_s20 = sand.u32 1, %s5868_s26   ;;  %p8108_p0 = scmp.ne.s32.totalorder %s8095_s14, 0 }
  0xa0   : > { %s4374_s12 = sshll.u32 %s6180_s20, 7  ;;  %s455_s13 = scalar_lea.sflag [#allocation4], %s6180_s20 }
  0xa1   : > { %s6186_s25 = scalar_lea.vmem [#allocation3], %s4374_s12 }
  0xa2   : > { %5847 = dma.done.wait (%p8108_p0), %s455_s13, 2048  }
  0xa3   : > { %5849 = vsyncadd (%p8108_p0), %s455_s13, 4294965248  ;;  %p8109_p11 = scmp.eq.s32.totalorder %s5987_s29, 0 }
  0xa5   : > { %5851 = dma.done.wait (%p8109_p11), [#allocation7], 4096   ;;  %p8110_p4 = pmov %p8109_p11 }
  0xa7   : > { %5853 = vsyncadd (%p8110_p4), [#allocation7], 4294963200  ;;  %p8111_p8 = pmov %p8110_p4 }
  0xa8   : > { %p8112_p6 = pmov %p8110_p4 }
  0xa9   : > { %5855 = dma.done.wait (%p8111_p8), [#allocation10], 4096  }
  0xaa   : > { %5857 = vsyncadd (%p8112_p6), [#allocation10], 4294963200  ;;  %v518_v0 = vld [vmem:[%s6186_s25] sm:$0xff]  ;;  %v520_v1 = vld [vmem:[%s6186_s25 + $0x10] sm:$0xff]  ;;  %vm1224_vm0 = vcmask 261120   ;;  %s5890_s30 = smov 96  }
  0xab   : > { %536 = vadd.xlane.f32.xlu0 %v518_v0  ;;  %540 = vadd.xlane.f32.xlu1 %v520_v1  ;;  %v519_v2 = vld [vmem:[%s6186_s25 + $0x8] sm:$0xff]  ;;  %v521_v3 = vld [vmem:[%s6186_s25 + $0x18] sm:$0xff]  ;;  %v522_v4 = vld [vmem:[%s6186_s25 + $0x20] sm:$0xff]  ;;  %s5891_s18 = smov 64   ;;  %s5892_s10 = smov 32   ;;  %vm3121_vm1 = vcmask 523264  }
  0xac   : > { %v523_v5 = vld [vmem:[%s6186_s25 + $0x28] sm:$0xff]  ;;  %v6207_v6 = vld [vmem:[%s6186_s25 + $0x30] sm:$0xff]  ;;  %v6210_v7 = vld [vmem:[%s6186_s25 + $0x38] sm:$0xff]  ;;  %vm3138_vm2 = vcmask 785408   ;;  %s8195_s22 = sld [smem:[#allocation60_spill]]  ;;  %s8197_s17 = sld [smem:[#allocation61_spill]] }
  0xad   : > { %v6213_v8 = vld [vmem:[%s6186_s25 + $0x40] sm:$0xff]  ;;  %v6216_v9 = vld [vmem:[%s6186_s25 + $0x48] sm:$0xff]  ;;  %v6221_v10 = vld [vmem:[%s6186_s25 + $0x50] sm:$0xff]  ;;  %s7954_s23 = scalar_lea.vmem [#allocation12], %s4374_s12  ;;  %s4488_s12 = sshll.u32 %s5987_s29, 11 }
  0xae   : > { %v6224_v11 = vld [vmem:[%s6186_s25 + $0x58] sm:$0xff]  ;;  %v6229_v12 = vld [vmem:[%s6186_s25 + $0x60] sm:$0xff]  ;;  %v6232_v13 = vld [vmem:[%s6186_s25 + $0x68] sm:$0xff]  ;;  %s4252_s19 = sshll.u32 %s7954_s23, 4  ;;  %s8202_s14 = sld [smem:[#allocation63_spill]]  ;;  %s8005_s19 = int_to_ptr.vmem [resolvable:$true] %s4252_s19 }
  0xaf   : > { %538 = vadd.xlane.f32.xlu0 %v519_v2  ;;  %542 = vadd.xlane.f32.xlu1 %v521_v3  ;;  %v6237_v14 = vld [vmem:[%s6186_s25 + $0x70] sm:$0xff]  ;;  %v6240_v15 = vld [vmem:[%s6186_s25 + $0x78] sm:$0xff]  ;;  %v5182_v17 = vld [vmem:[#allocation6] ss:$12 sps:$4 sm:$0xff]   ;;  %s4239_s29 = scalar_lea.sflag [#allocation5], %s6180_s20  ;;  %s5893_s21 = smov [#allocation12]  }
  0xb0   : > { %v5180_v16 = vld [vmem:[#allocation6 + $0x4] ss:$12 sps:$4 sm:$0xff]   ;;  %v5183_v18 = vld [vmem:[#allocation6 + $0x1c] ss:$12 sps:$4 sm:$0xff]   ;;  %s5806_s3 = sshll.u32 %s5893_s21, 4  ;;  %s5807_s3 = int_to_ptr.vmem [resolvable:$false] %s5806_s3 }
  0xb1   : > { %v5185_v19 = vld [vmem:[#allocation6 + $0x8] ss:$12 sps:$4 sm:$0xff]   ;;  %942 = vmatprep.subr.bf16.mxu0 %v5180_v16  ;;  %v5186_v58 = vld [vmem:[#allocation6 + $0x18] ss:$12 sps:$4 sm:$0xff]   ;;  %p5809_p12 = scmp.lt.s32.totalorder %s8005_s19, %s5807_s3 }
  0xb2   : > { %943 = vmatpush1.bf16.msra.mxu0 %v5182_v17  ;;  %4713 = vmatprep.subr.bf16.mxu1 %v5185_v19 }
  0xb3   : > { %544 = vadd.xlane.f32.xlu0 %v522_v4  ;;  %546 = vadd.xlane.f32.xlu1 %v523_v5 }
  0xb4   : > { %944 = vmatprep.subr.bf16.mxu0 %v5183_v18  ;;  %4714 = vmatpush3.bf16.msra.mxu1 %v5185_v19  ;;  %v5191_v18 = vld [vmem:[#allocation6 + $0x4c] ss:$12 sps:$4 sm:$0xff]   ;;  %s8003_s16 = scalar_lea.hbm %s8202_s14, %s4488_s12 }
  0xb5   : > { %v5193_v19 = vld [vmem:[#allocation6 + $0x38] ss:$12 sps:$4 sm:$0xff]  }
  0xb6   : > { %945 = vmatpush1.bf16.msra.mxu0 %v5186_v58 }
  0xb7   : > { %548 = vadd.xlane.f32.xlu0 %v6207_v6  ;;  %550 = vadd.xlane.f32.xlu1 %v6210_v7 }
  0xbb   : > { %552 = vadd.xlane.f32.xlu0 %v6213_v8  ;;  %554 = vadd.xlane.f32.xlu1 %v6216_v9 }
  0xbf   : > { %556 = vadd.xlane.f32.xlu0 %v6221_v10  ;;  %558 = vadd.xlane.f32.xlu1 %v6224_v11 }
  0xc3   : > { %560 = vadd.xlane.f32.xlu0 %v6229_v12  ;;  %562 = vadd.xlane.f32.xlu1 %v6232_v13 }
  0xc7   : > { %564 = vadd.xlane.f32.xlu0 %v6237_v14  ;;  %566 = vadd.xlane.f32.xlu1 %v6240_v15 }
 0x138   : > { %v537_v20 = vpop.xlane.xlu0 %536  ;;  %v541_v21 = vpop.xlane.xlu1 %540 }
 0x139   : > { %v569_v22 = vmul.f32 0.0078125, %v537_v20  ;;  %v571_v23 = vmul.f32 0.0078125, %v541_v21 }
 0x13b   : > { %v6246_v24 = vsub.f32 %v518_v0, %v569_v22  ;;  %v6248_v25 = vsub.f32 %v520_v1, %v571_v23  ;;  %v5187_v0 = vld [vmem:[#allocation6 + $0x34] ss:$12 sps:$4 sm:$0xff]  }
 0x13c   : > { %v539_v26 = vpop.xlane.xlu0 %538  ;;  %v543_v27 = vpop.xlane.xlu1 %542  ;;  %v5189_v1 = vld [vmem:[#allocation6 + $0x20] ss:$12 sps:$4 sm:$0xff]   ;;  %946 = vmatprep.subr.bf16.mxu0 %v5187_v0  ;;  %v5194_v22 = vld [vmem:[#allocation6 + $0x48] ss:$12 sps:$4 sm:$0xff]  }
 0x13d   : > { %v570_v28 = vmul.f32 0.0078125, %v539_v26  ;;  %v601_v29 = vmul.f32 %v6246_v24, %v6246_v24  ;;  %v572_v30 = vmul.f32 0.0078125, %v543_v27  ;;  %v603_v31 = vmul.f32 %v6248_v25, %v6248_v25  ;;  %4715 = vmatprep.subr.bf16.mxu1 %v5189_v1 }
 0x13e   : > { %4716 = vmatpush3.bf16.msra.mxu1 %v5189_v1 }
 0x13f   : > { %617 = vadd.xlane.f32.xlu0 %v601_v29  ;;  %v6254_v32 = vsub.f32 %v519_v2, %v570_v28  ;;  %v6256_v33 = vsub.f32 %v521_v3, %v572_v30  ;;  %4717 = vmatprep.subr.bf16.mxu1 %v5193_v19  ;;  %v5195_v29 = vld [vmem:[#allocation6 + $0x64] ss:$12 sps:$4 sm:$0xff]  }
 0x140   : > { %v545_v34 = vpop.xlane.xlu0 %544  ;;  %v547_v35 = vpop.xlane.xlu1 %546  ;;  %v5197_v30 = vld [vmem:[#allocation6 + $0x50] ss:$12 sps:$4 sm:$0xff]  }
 0x141   : > { %v573_v36 = vmul.f32 0.0078125, %v545_v34  ;;  %v602_v37 = vmul.f32 %v6254_v32, %v6254_v32  ;;  %v574_v38 = vmul.f32 0.0078125, %v547_v35  ;;  %v604_v39 = vmul.f32 %v6256_v33, %v6256_v33 }
 0x142   : > { %4718 = vmatpush3.bf16.msra.mxu1 %v5193_v19 }
 0x143   : > { %621 = vadd.xlane.f32.xlu0 %v603_v31  ;;  %619 = vadd.xlane.f32.xlu1 %v602_v37  ;;  %v6262_v40 = vsub.f32 %v522_v4, %v573_v36  ;;  %v6264_v41 = vsub.f32 %v523_v5, %v574_v38  ;;  %v5198_v31 = vld [vmem:[#allocation6 + $0x60] ss:$12 sps:$4 sm:$0xff]   ;;  %v5201_v36 = vld [vmem:[#allocation6 + $0x68] ss:$12 sps:$4 sm:$0xff]   ;;  %v5202_v37 = vld [vmem:[#allocation6 + $0x78] ss:$12 sps:$4 sm:$0xff]  }
 0x144   : > { %v549_v42 = vpop.xlane.xlu0 %548  ;;  %v551_v43 = vpop.xlane.xlu1 %550  ;;  %4719 = vmatprep.subr.bf16.mxu1 %v5197_v30  ;;  %v5205_v38 = vld [vmem:[#allocation6 + $0x80] ss:$12 sps:$4 sm:$0xff]  }
 0x145   : > { %v575_v44 = vmul.f32 0.0078125, %v549_v42  ;;  %v605_v45 = vmul.f32 %v6262_v40, %v6262_v40  ;;  %v576_v46 = vmul.f32 0.0078125, %v551_v43  ;;  %v606_v47 = vmul.f32 %v6264_v41, %v6264_v41  ;;  %v5207_v42 = vld [vmem:[#allocation6 + $0xac] ss:$12 sps:$4 sm:$0xff]  }
 0x146   : > { %4720 = vmatpush3.bf16.msra.mxu1 %v5197_v30  ;;  %v5209_v43 = vld [vmem:[#allocation6 + $0x98] ss:$12 sps:$4 sm:$0xff]  }
 0x147   : > { %623 = vadd.xlane.f32.xlu1 %v604_v39  ;;  %625 = vadd.xlane.f32.xlu0 %v605_v45  ;;  %v6271_v48 = vsub.f32 %v6207_v6, %v575_v44  ;;  %v6274_v49 = vsub.f32 %v6210_v7, %v576_v46  ;;  %v5190_v7 = vld [vmem:[#allocation6 + $0x30] ss:$12 sps:$4 sm:$0xff]   ;;  %v5210_v44 = vld [vmem:[#allocation6 + $0xa8] ss:$12 sps:$4 sm:$0xff]   ;;  %v8076_v46 = vmov 0  }
 0x148   : > { %v553_v50 = vpop.xlane.xlu0 %552  ;;  %v555_v51 = vpop.xlane.xlu1 %554  ;;  %947 = vmatpush1.bf16.msra.mxu0 %v5190_v7  ;;  %4721 = vmatprep.subr.bf16.mxu1 %v5201_v36  ;;  %v5206_v39 = vld [vmem:[#allocation6 + $0x90] ss:$12 sps:$4 sm:$0xff]  }
 0x149   : > { %v577_v52 = vmul.f32 0.0078125, %v553_v50  ;;  %v607_v53 = vmul.f32 %v6271_v48, %v6271_v48  ;;  %v578_v54 = vmul.f32 0.0078125, %v555_v51  ;;  %v608_v55 = vmul.f32 %v6274_v49, %v6274_v49  ;;  %948 = vmatprep.subr.bf16.mxu0 %v5191_v18  ;;  %v5211_v45 = vld [vmem:[#allocation6 + $0xb0] ss:$12 sps:$4 sm:$0xff]   ;;  %974 = vmatprep.mubr.bf16.mxu0 %v8076_v46 }
 0x14a   : > { %4722 = vmatpush3.bf16.msra.mxu1 %v5201_v36 }
 0x14b   : > { %627 = vadd.xlane.f32.xlu1 %v606_v47  ;;  %629 = vadd.xlane.f32.xlu0 %v607_v53  ;;  %v6281_v56 = vsub.f32 %v6213_v8, %v577_v52  ;;  %v6284_v57 = vsub.f32 %v6216_v9, %v578_v54 }
 0x14c   : > { %v557_v59 = vpop.xlane.xlu0 %556  ;;  %v559_v60 = vpop.xlane.xlu1 %558  ;;  %949 = vmatpush1.bf16.msra.mxu0 %v5194_v22  ;;  %4723 = vmatprep.subr.bf16.mxu1 %v5205_v38  ;;  %v6325_v22 = vld [vmem:[%s8053_s1] ss:$0 sm:$0xff] }
 0x14d   : > { %v579_v61 = vmul.f32 0.0078125, %v557_v59  ;;  %v609_v62 = vmul.f32 %v6281_v56, %v6281_v56  ;;  %v580_v63 = vmul.f32 0.0078125, %v559_v60  ;;  %v610_v2 = vmul.f32 %v6284_v57, %v6284_v57  ;;  %950 = vmatprep.subr.bf16.mxu0 %v5195_v29 }
 0x14e   : > { %4724 = vmatpush3.bf16.msra.mxu1 %v5205_v38 }
 0x14f   : > { %631 = vadd.xlane.f32.xlu1 %v608_v55  ;;  %633 = vadd.xlane.f32.xlu0 %v609_v62  ;;  %v6291_v3 = vsub.f32 %v6221_v10, %v579_v61  ;;  %v6294_v4 = vsub.f32 %v6224_v11, %v580_v63 }
 0x150   : > { %v561_v5 = vpop.xlane.xlu0 %560  ;;  %v563_v6 = vpop.xlane.xlu1 %562  ;;  %951 = vmatpush1.bf16.msra.mxu0 %v5198_v31  ;;  %4725 = vmatprep.subr.bf16.mxu1 %v5209_v43 }
 0x151   : > { %v581_v8 = vmul.f32 0.0078125, %v561_v5  ;;  %v611_v9 = vmul.f32 %v6291_v3, %v6291_v3  ;;  %v582_v16 = vmul.f32 0.0078125, %v563_v6  ;;  %v612_v10 = vmul.f32 %v6294_v4, %v6294_v4 }
 0x152   : > { %4726 = vmatpush3.bf16.msra.mxu1 %v5209_v43 }
 0x153   : > { %635 = vadd.xlane.f32.xlu1 %v610_v2  ;;  %637 = vadd.xlane.f32.xlu0 %v611_v9  ;;  %v6301_v11 = vsub.f32 %v6229_v12, %v581_v8  ;;  %v6304_v17 = vsub.f32 %v6232_v13, %v582_v16 }
 0x154   : > { %v565_v20 = vpop.xlane.xlu0 %564  ;;  %v567_v21 = vpop.xlane.xlu1 %566  ;;  %4727 = vmatprep.subr.bf16.mxu1 %v5211_v45 }
 0x155   : > { %v583_v23 = vmul.f32 0.0078125, %v565_v20  ;;  %v613_v26 = vmul.f32 %v6301_v11, %v6301_v11  ;;  %v584_v27 = vmul.f32 0.0078125, %v567_v21  ;;  %v614_v12 = vmul.f32 %v6304_v17, %v6304_v17 }
 0x156   : > { %4728 = vmatpush3.bf16.msra.mxu1 %v5211_v45 }
 0x157   : > { %639 = vadd.xlane.f32.xlu1 %v612_v10  ;;  %641 = vadd.xlane.f32.xlu0 %v613_v26  ;;  %v6311_v13 = vsub.f32 %v6237_v14, %v583_v23  ;;  %v6314_v28 = vsub.f32 %v6240_v15, %v584_v27  ;;  %v5199_v14 = vld [vmem:[#allocation6 + $0x7c] ss:$12 sps:$4 sm:$0xff]   ;;  %v5203_v15 = vld [vmem:[#allocation6 + $0x94] ss:$12 sps:$4 sm:$0xff]  }
 0x158   : > { %952 = vmatprep.subr.bf16.mxu0 %v5199_v14  ;;  %v6332_v14 = vld [vmem:[%s8054_s2] ss:$0 sm:$0xff] }
 0x159   : > { %v615_v34 = vmul.f32 %v6311_v13, %v6311_v13  ;;  %v616_v35 = vmul.f32 %v6314_v28, %v6314_v28  ;;  %953 = vmatpush1.bf16.msra.mxu0 %v5202_v37 }
 0x15a   : > { %954 = vmatprep.subr.bf16.mxu0 %v5203_v15 }
 0x15b   : > { %643 = vadd.xlane.f32.xlu1 %v614_v12  ;;  %645 = vadd.xlane.f32.xlu0 %v615_v34 }
 0x15d   : > { %955 = vmatpush1.bf16.msra.mxu0 %v5206_v39 }
 0x15e   : > { %956 = vmatprep.subr.bf16.mxu0 %v5207_v42 }
 0x15f   : > { %647 = vadd.xlane.f32.xlu1 %v616_v35 }
 0x161   : > { %957 = vmatpush1.bf16.msra.mxu0 %v5210_v44 }
 0x1cc   : > { %v618_v47 = vpop.xlane.xlu0 %617 }
 0x1cd   : > { %v649_v50 = vmul.f32 0.0078125, %v618_v47 }
 0x1cf   : > { %v665_v51 = vadd.f32 1e-05, %v649_v50 }
 0x1d0   : > { %v620_v52 = vpop.xlane.xlu1 %619  ;;  %v622_v53 = vpop.xlane.xlu0 %621 }
 0x1d1   : > { %5260 = vrsqrt.f32 %v665_v51  ;;  %v650_v54 = vmul.f32 0.0078125, %v620_v52  ;;  %v651_v55 = vmul.f32 0.0078125, %v622_v53 }
 0x1d3   : > { %v666_v58 = vadd.f32 1e-05, %v650_v54  ;;  %v667_v59 = vadd.f32 1e-05, %v651_v55 }
 0x1d4   : > { %v624_v60 = vpop.xlane.xlu1 %623  ;;  %v626_v61 = vpop.xlane.xlu0 %625 }
 0x1d5   : > { %5262 = vrsqrt.f32 %v666_v58  ;;  %v652_v62 = vmul.f32 0.0078125, %v624_v60  ;;  %v653_v63 = vmul.f32 0.0078125, %v626_v61 }
 0x1d6   : > { %5264 = vrsqrt.f32 %v667_v59 }
 0x1d7   : > { %v668_v0 = vadd.f32 1e-05, %v652_v62  ;;  %v669_v1 = vadd.f32 1e-05, %v653_v63 }
 0x1d8   : > { %v628_v2 = vpop.xlane.xlu1 %627  ;;  %v630_v5 = vpop.xlane.xlu0 %629 }
 0x1d9   : > { %5266 = vrsqrt.f32 %v668_v0  ;;  %v654_v6 = vmul.f32 0.0078125, %v628_v2  ;;  %v655_v7 = vmul.f32 0.0078125, %v630_v5 }
 0x1da   : > { %5268 = vrsqrt.f32 %v669_v1 }
 0x1db   : > { %v5261_v8 = vpop.eup %5260  ;;  %v670_v9 = vadd.f32 1e-05, %v654_v6  ;;  %v671_v16 = vadd.f32 1e-05, %v655_v7 }
 0x1dc   : > { %v632_v10 = vpop.xlane.xlu1 %631  ;;  %v634_v18 = vpop.xlane.xlu0 %633  ;;  %v697_v19 = vmul.f32 %v5261_v8, %v6246_v24 }
 0x1dd   : > { %5270 = vrsqrt.f32 %v670_v9  ;;  %v656_v20 = vmul.f32 0.0078125, %v632_v10  ;;  %v657_v21 = vmul.f32 0.0078125, %v634_v18 }
 0x1de   : > { %5272 = vrsqrt.f32 %v671_v16  ;;  %v719_v34 = vmul.f32 %v6325_v22, %v697_v19 }
 0x1df   : > { %v5263_v23 = vpop.eup %5262  ;;  %v672_v26 = vadd.f32 1e-05, %v656_v20  ;;  %v673_v27 = vadd.f32 1e-05, %v657_v21 }
 0x1e0   : > { %v5265_v12 = vpop.eup %5264  ;;  %v636_v29 = vpop.xlane.xlu1 %635  ;;  %v698_v31 = vmul.f32 %v5263_v23, %v6254_v32  ;;  %v741_v45 = vadd.f32 %v6332_v14, %v719_v34 }
 0x1e1   : > { %v638_v30 = vpop.xlane.xlu0 %637  ;;  %5274 = vrsqrt.f32 %v672_v26  ;;  %v658_v24 = vmul.f32 0.0078125, %v636_v29  ;;  %v699_v36 = vmul.f32 %v5265_v12, %v6248_v25 }
 0x1e2   : > { %v659_v35 = vmul.f32 0.0078125, %v638_v30  ;;  %5276 = vrsqrt.f32 %v673_v27  ;;  %v720_v37 = vmul.f32 %v6325_v22, %v698_v31 }
 0x1e3   : > { %v5267_v15 = vpop.eup %5266  ;;  %v674_v38 = vadd.f32 1e-05, %v658_v24  ;;  %v721_v32 = vmul.f32 %v6325_v22, %v699_v36 }
 0x1e4   : > { %v675_v39 = vadd.f32 1e-05, %v659_v35  ;;  %v5269_v42 = vpop.eup %5268  ;;  %v640_v43 = vpop.xlane.xlu1 %639  ;;  %v742_v47 = vadd.f32 %v6332_v14, %v720_v37  ;;  %v700_v50 = vmul.f32 %v5267_v15, %v6256_v33 }
 0x1e5   : > { %v642_v44 = vpop.xlane.xlu0 %641  ;;  %5278 = vrsqrt.f32 %v674_v38  ;;  %v660_v51 = vmul.f32 0.0078125, %v640_v43  ;;  %v701_v54 = vmul.f32 %v5269_v42, %v6262_v40  ;;  %v743_v60 = vadd.f32 %v6332_v14, %v721_v32 }
 0x1e6   : > { %v661_v25 = vmul.f32 0.0078125, %v642_v44  ;;  %5280 = vrsqrt.f32 %v675_v39  ;;  %v757_v52 = vpack.c.bf16 %v742_v47, %v741_v45  ;;  %v722_v53 = vmul.f32 %v6325_v22, %v700_v50 }
 0x1e7   : > { %v5271_v55 = vpop.eup %5270  ;;  %v676_v58 = vadd.f32 1e-05, %v660_v51  ;;  %v723_v1 = vmul.f32 %v6325_v22, %v701_v54 }
 0x1e8   : > { %v677_v59 = vadd.f32 1e-05, %v661_v25  ;;  %v5273_v61 = vpop.eup %5272  ;;  %v644_v62 = vpop.xlane.xlu1 %643  ;;  %975 = vmatmul.mubr.bf16.vlgmr.msra.gmra.mrb[0].mxu0 %v757_v52  ;;  %4729 = vmatprep.mubr.bf16.mxu1 %v757_v52  ;;  %v744_v33 = vadd.f32 %v6332_v14, %v722_v53  ;;  %v702_v0 = vmul.f32 %v5271_v55, %v6264_v41 }
 0x1e9   : > { %v646_v63 = vpop.xlane.xlu0 %645  ;;  %5282 = vrsqrt.f32 %v676_v58  ;;  %v662_v2 = vmul.f32 0.0078125, %v644_v62  ;;  %984 = vmatprep.mubr.bf16.mxu0 %v8076_v46  ;;  %v703_v40 = vmul.f32 %v5273_v61, %v6271_v48  ;;  %v745_v19 = vadd.f32 %v6332_v14, %v723_v1 }
 0x1ea   : > { %v663_v5 = vmul.f32 0.0078125, %v646_v63  ;;  %5284 = vrsqrt.f32 %v677_v59  ;;  %v758_v6 = vpack.c.bf16 %v744_v33, %v743_v60  ;;  %v724_v7 = vmul.f32 %v6325_v22, %v702_v0 }
 0x1eb   : > { %v5275_v8 = vpop.eup %5274  ;;  %v678_v9 = vadd.f32 1e-05, %v662_v2  ;;  %v725_v10 = vmul.f32 %v6325_v22, %v703_v40 }
 0x1ec   : > { %v679_v16 = vadd.f32 1e-05, %v663_v5  ;;  %v5277_v18 = vpop.eup %5276  ;;  %v648_v41 = vpop.xlane.xlu1 %647  ;;  %4730 = vmatmul.mubr.bf16.vlgmr.msra.gmra.mrb[0].mxu1 %v758_v6  ;;  %v746_v20 = vadd.f32 %v6332_v14, %v724_v7  ;;  %v704_v21 = vmul.f32 %v5275_v8, %v6274_v49 }
 0x1ed   : > { %5286 = vrsqrt.f32 %v678_v9  ;;  %v664_v48 = vmul.f32 0.0078125, %v648_v41  ;;  %v705_v23 = vmul.f32 %v5277_v18, %v6281_v56  ;;  %v747_v30 = vadd.f32 %v6332_v14, %v725_v10 }
 0x1ee   : > { %5288 = vrsqrt.f32 %v679_v16  ;;  %v759_v26 = vpack.c.bf16 %v746_v20, %v745_v19  ;;  %v726_v27 = vmul.f32 %v6325_v22, %v704_v21 }
 0x1ef   : > { %v5279_v12 = vpop.eup %5278  ;;  %v680_v29 = vadd.f32 1e-05, %v664_v48  ;;  %v727_v49 = vmul.f32 %v6325_v22, %v705_v23 }
 0x1f0   : > { %v5281_v31 = vpop.eup %5280  ;;  %985 = vmatmul.mubr.bf16.gmra.mrb[4].mxu0 %v758_v6  ;;  %4733 = vmatprep.mubr.bf16.mxu1 %v759_v26  ;;  %v748_v34 = vadd.f32 %v6332_v14, %v726_v27  ;;  %v706_v24 = vmul.f32 %v5279_v12, %v6284_v57 }
 0x1f1   : > { %5290 = vrsqrt.f32 %v680_v29  ;;  %994 = vmatprep.mubr.bf16.mxu0 %v8076_v46  ;;  %v707_v56 = vmul.f32 %v5281_v31, %v6291_v3  ;;  %v749_v39 = vadd.f32 %v6332_v14, %v727_v49 }
 0x1f2   : > { %v760_v35 = vpack.c.bf16 %v748_v34, %v747_v30  ;;  %v728_v36 = vmul.f32 %v6325_v22, %v706_v24 }
 0x1f3   : > { %v5283_v37 = vpop.eup %5282  ;;  %v729_v15 = vmul.f32 %v6325_v22, %v707_v56 }
 0x1f4   : > { %v5285_v38 = vpop.eup %5284  ;;  %4734 = vmatmul.mubr.bf16.gmra.mrb[4].mxu1 %v760_v35  ;;  %v750_v32 = vadd.f32 %v6332_v14, %v728_v36  ;;  %v708_v57 = vmul.f32 %v5283_v37, %v6294_v4 }
 0x1f5   : > { %v709_v42 = vmul.f32 %v5285_v38, %v6301_v11  ;;  %v751_v45 = vadd.f32 %v6332_v14, %v729_v15 }
 0x1f6   : > { %v761_v43 = vpack.c.bf16 %v750_v32, %v749_v39  ;;  %v730_v44 = vmul.f32 %v6325_v22, %v708_v57 }
 0x1f7   : > { %v5287_v3 = vpop.eup %5286  ;;  %v731_v25 = vmul.f32 %v6325_v22, %v709_v42 }
 0x1f8   : > { %v5289_v47 = vpop.eup %5288  ;;  %995 = vmatmul.mubr.bf16.gmra.mrb[8].mxu0 %v759_v26  ;;  %4737 = vmatprep.mubr.bf16.mxu1 %v761_v43  ;;  %v752_v50 = vadd.f32 %v6332_v14, %v730_v44  ;;  %v710_v51 = vmul.f32 %v5287_v3, %v6304_v17 }
 0x1f9   : > { %1004 = vmatprep.mubr.bf16.mxu0 %v8076_v46  ;;  %v711_v4 = vmul.f32 %v5289_v47, %v6311_v13  ;;  %v753_v54 = vadd.f32 %v6332_v14, %v731_v25 }
 0x1fa   : > { %v762_v11 = vpack.c.bf16 %v752_v50, %v751_v45  ;;  %v732_v52 = vmul.f32 %v6325_v22, %v710_v51 }
 0x1fb   : > { %v5291_v53 = vpop.eup %5290  ;;  %v733_v59 = vmul.f32 %v6325_v22, %v711_v4 }
 0x1fc   : > { %4738 = vmatmul.mubr.bf16.gmra.mrb[8].mxu1 %v762_v11  ;;  %v754_v55 = vadd.f32 %v6332_v14, %v732_v52  ;;  %v712_v58 = vmul.f32 %v5291_v53, %v6314_v28  ;;  %v799_v28 = vlaneseq }
 0x1fd   : > { %v755_v13 = vadd.f32 %v6332_v14, %v733_v59 }
 0x1fe   : > { %v763_v17 = vpack.c.bf16 %v754_v55, %v753_v54  ;;  %v734_v60 = vmul.f32 %v6325_v22, %v712_v58  ;;  %v6386_v22 = vshrl.u32 %v799_v28, 7 }
 0x200   : > { %1005 = vmatmul.mubr.bf16.gmra.mrb[12].mxu0 %v760_v35  ;;  %4741 = vmatprep.mubr.bf16.mxu1 %v763_v17  ;;  %v756_v61 = vadd.f32 %v6332_v14, %v734_v60  ;;  %8113 = vst [vmem:[#allocation19_spill] sm:$0xff] %v6386_v22  ;;  %v8075_v63 = vsub.s32 0, %v6386_v22  ;;  %v797_v14 = vld [vmem:[%s8056_s4] sm:$0x7]  ;;  %v8074_v33 = vsub.s32 1, %v6386_v22  ;;  %v809_v1 = vsub.s32 2, %v6386_v22 }
 0x201   : > { %1014 = vmatprep.mubr.bf16.mxu0 %v8076_v46 }
 0x202   : > { %v764_v62 = vpack.c.bf16 %v756_v61, %v755_v13  ;;  %v6395_v0 = vrot.slane %v797_v14, %v8075_v63  ;;  %v6400_v5 = vrot.slane %v797_v14, %v8074_v33  ;;  %v6404_v16 = vrot.slane %v797_v14, %v809_v1 }
 0x204   : > { %4742 = vmatmul.mubr.bf16.gmra.mrb[12].mxu1 %v764_v62 }
 0x208   : > { %1015 = vmatmul.mubr.bf16.gmra.mrb[16].mxu0 %v761_v43 }
 0x209   : > { %1024 = vmatprep.mubr.bf16.mxu0 %v8076_v46 }
 0x210   : > { %1025 = vmatmul.mubr.bf16.gmra.mrb[20].mxu0 %v762_v11 }
 0x211   : > { %1034 = vmatprep.mubr.bf16.mxu0 %v8076_v46 }
 0x218   : > { %1035 = vmatmul.mubr.bf16.gmra.mrb[24].mxu0 %v763_v17 }
 0x219   : > { %1044 = vmatprep.mubr.bf16.mxu0 %v8076_v46 }
 0x220   : > { %1045 = vmatmul.mubr.bf16.gmra.mrb[28].mxu0 %v764_v62 }
 0x2bb   : > { %v976_v2 = vpop.f32.mrb[0].mxu0 }
 0x2bc   : > { %v978_v40 = vpop.f32.mrb[1].mxu0  ;;  %v977_v7 = vadd.f32 %v976_v2, %v6395_v0 }
 0x2bd   : > { %v980_v6 = vpop.f32.mrb[2].mxu0  ;;  %v979_v10 = vadd.f32 %v978_v40, %v6400_v5 }
 0x2be   : > { %v981_v8 = vadd.f32 %v980_v6, %v6395_v0  ;;  %v982_v9 = vpop.f32.mrb[3].mxu0 }
 0x2bf   : > { %v983_v18 = vadd.f32 %v982_v9, %v6400_v5  ;;  %v4731_v41 = vpop.f32.mrb[0].mxu1 }
 0x2c0   : > { %v6408_v19 = vpack.c.bf16 %v981_v8, %v977_v7  ;;  %v1089_v20 = vpop.f32.mrb[1].mxu1  ;;  %v1098_v23 = vadd.f32 %v4731_v41, %v6404_v16 }
 0x2c1   : > { %v6410_v21 = vpack.c.bf16 %v983_v18, %v979_v10  ;;  %v4732_v48 = vpop.f32.mrb[2].mxu1  ;;  %v1090_v12 = vadd.f32 %v1089_v20, %v6404_v16 }
 0x2c2   : > { %v1101_v26 = vadd.f32 %v4732_v48, %v6404_v16  ;;  %v1092_v27 = vpop.f32.mrb[3].mxu1  ;;  %4761 = vmatprep.mubr.msk.bf16.mxu0 %vm1224_vm0, %v6408_v19 }
 0x2c3   : > { %v1093_v29 = vadd.f32 %v1092_v27, %v6404_v16  ;;  %1659 = vrot.lane.b32.xlu0 %v6410_v21, %s5890_s30  ;;  %v986_v30 = vpop.f32.mrb[4].mxu0  ;;  %5049 = vmatprep.subr.msk.bf16.mxu0 %vm1224_vm0, %v6410_v21  ;;  %v1250_v31 = vsel %vm1224_vm0, %v6410_v21, 0 }
 0x2c4   : > { %v6424_v34 = vpack.c.bf16 %v1101_v26, %v1098_v23  ;;  %v987_v24 = vadd.f32 %v986_v30, %v6395_v0  ;;  %v988_v49 = vpop.f32.mrb[5].mxu0  ;;  %4746 = vmatpush3.bf16.xpose.msra.mxu0 %v1250_v31 }
 0x2c5   : > { %v6427_v56 = vpack.c.bf16 %v1093_v29, %v1090_v12  ;;  %v990_v35 = vpop.f32.mrb[6].mxu0  ;;  %v989_v15 = vadd.f32 %v988_v49, %v6400_v5 }
 0x2c6   : > { %v991_v36 = vadd.f32 %v990_v35, %v6395_v0  ;;  %v992_v37 = vpop.f32.mrb[7].mxu0 }
 0x2c7   : > { %v993_v38 = vadd.f32 %v992_v37, %v6400_v5  ;;  %v4735_v39 = vpop.f32.mrb[4].mxu1  ;;  %4777 = vmatprep.subr.bf16.mxu1 %v6427_v56 }
 0x2c8   : > { %v6433_v32 = vpack.c.bf16 %v991_v36, %v987_v24  ;;  %v1105_v57 = vpop.f32.mrb[5].mxu1  ;;  %4778 = vmatpush3.bf16.msra.mxu1 %v6427_v56  ;;  %v1114_v44 = vadd.f32 %v4735_v39, %v6404_v16 }
 0x2c9   : > { %v6436_v42 = vpack.c.bf16 %v993_v38, %v989_v15  ;;  %v4736_v43 = vpop.f32.mrb[6].mxu1  ;;  %4779 = vmatprep.subr.bf16.mxu1 %v6424_v34  ;;  %v1106_v47 = vadd.f32 %v1105_v57, %v6404_v16 }
 0x2ca   : > { %v1117_v3 = vadd.f32 %v4736_v43, %v6404_v16  ;;  %v1108_v45 = vpop.f32.mrb[7].mxu1 }
 0x2cb   : > { %v1109_v50 = vadd.f32 %v1108_v45, %v6404_v16  ;;  %1661 = vrot.lane.b32.xlu1 %v6436_v42, %s5890_s30  ;;  %v996_v51 = vpop.f32.mrb[8].mxu0  ;;  %5050 = vmatprep.subr.msk.bf16.mxu0 %vm1224_vm0, %v6436_v42  ;;  %v1253_v25 = vsel %vm1224_vm0, %v6436_v42, 0 }
 0x2cc   : > { %v6449_v4 = vpack.c.bf16 %v1117_v3, %v1114_v44  ;;  %v997_v11 = vadd.f32 %v996_v51, %v6395_v0  ;;  %v998_v52 = vpop.f32.mrb[9].mxu0  ;;  %4748 = vmatpush3.bf16.xpose.msra.mxu0 %v1253_v25  ;;  %4780 = vmatpush3.bf16.msra.mxu1 %v6424_v34 }
 0x2cd   : > { %v6453_v53 = vpack.c.bf16 %v1109_v50, %v1106_v47  ;;  %v1000_v54 = vpop.f32.mrb[10].mxu0  ;;  %v999_v59 = vadd.f32 %v998_v52, %v6400_v5 }
 0x2ce   : > { %v1001_v55 = vadd.f32 %v1000_v54, %v6395_v0  ;;  %v1002_v58 = vpop.f32.mrb[11].mxu0 }
 0x2cf   : > { %v1003_v17 = vadd.f32 %v1002_v58, %v6400_v5  ;;  %v4739_v60 = vpop.f32.mrb[8].mxu1  ;;  %4781 = vmatprep.subr.bf16.mxu1 %v6453_v53 }
 0x2d0   : > { %v6459_v13 = vpack.c.bf16 %v1001_v55, %v997_v11  ;;  %v1121_v61 = vpop.f32.mrb[9].mxu1  ;;  %4782 = vmatpush3.bf16.msra.mxu1 %v6453_v53  ;;  %v1130_v14 = vadd.f32 %v4739_v60, %v6404_v16 }
 0x2d1   : > { %v6462_v62 = vpack.c.bf16 %v1003_v17, %v999_v59  ;;  %v4740_v28 = vpop.f32.mrb[10].mxu1  ;;  %4783 = vmatprep.subr.bf16.mxu1 %v6449_v4  ;;  %v1122_v40 = vadd.f32 %v1121_v61, %v6404_v16 }
 0x2d2   : > { %v1133_v1 = vadd.f32 %v4740_v28, %v6404_v16  ;;  %v1124_v2 = vpop.f32.mrb[11].mxu1 }
 0x2d3   : > { %v1125_v6 = vadd.f32 %v1124_v2, %v6404_v16  ;;  %1663 = vrot.lane.b32.xlu0 %v6462_v62, %s5890_s30  ;;  %v1006_v7 = vpop.f32.mrb[12].mxu0  ;;  %5051 = vmatprep.subr.msk.bf16.mxu0 %vm1224_vm0, %v6462_v62  ;;  %v1256_v8 = vsel %vm1224_vm0, %v6462_v62, 0 }
 0x2d4   : > { %v6475_v9 = vpack.c.bf16 %v1133_v1, %v1130_v14  ;;  %v1007_v10 = vadd.f32 %v1006_v7, %v6395_v0  ;;  %v1008_v18 = vpop.f32.mrb[13].mxu0  ;;  %4750 = vmatpush3.bf16.xpose.msra.mxu0 %v1256_v8  ;;  %4784 = vmatpush3.bf16.msra.mxu1 %v6449_v4 }
 0x2d5   : > { %v6479_v41 = vpack.c.bf16 %v1125_v6, %v1122_v40  ;;  %v1010_v20 = vpop.f32.mrb[14].mxu0  ;;  %v1009_v26 = vadd.f32 %v1008_v18, %v6400_v5 }
 0x2d6   : > { %v1011_v48 = vadd.f32 %v1010_v20, %v6395_v0  ;;  %v1012_v23 = vpop.f32.mrb[15].mxu0 }
 0x2d7   : > { %v1013_v27 = vadd.f32 %v1012_v23, %v6400_v5  ;;  %v4743_v12 = vpop.f32.mrb[12].mxu1  ;;  %4785 = vmatprep.subr.bf16.mxu1 %v6479_v41 }
 0x2d8   : > { %v6485_v29 = vpack.c.bf16 %v1011_v48, %v1007_v10  ;;  %v1137_v30 = vpop.f32.mrb[13].mxu1  ;;  %4786 = vmatpush3.bf16.msra.mxu1 %v6479_v41  ;;  %v1146_v49 = vadd.f32 %v4743_v12, %v6404_v16 }
 0x2d9   : > { %v6488_v31 = vpack.c.bf16 %v1013_v27, %v1009_v26  ;;  %v4744_v24 = vpop.f32.mrb[14].mxu1  ;;  %4787 = vmatprep.subr.bf16.mxu1 %v6475_v9  ;;  %v1138_v37 = vadd.f32 %v1137_v30, %v6404_v16 }
 0x2da   : > { %v1149_v35 = vadd.f32 %v4744_v24, %v6404_v16  ;;  %v1140_v36 = vpop.f32.mrb[15].mxu1 }
 0x2db   : > { %v1141_v15 = vadd.f32 %v1140_v36, %v6404_v16  ;;  %v1016_v38 = vpop.f32.mrb[16].mxu0  ;;  %5052 = vmatprep.subr.msk.bf16.mxu0 %vm1224_vm0, %v6488_v31  ;;  %v1259_v39 = vsel %vm1224_vm0, %v6488_v31, 0 }
 0x2dc   : > { %v6499_v57 = vpack.c.bf16 %v1149_v35, %v1146_v49  ;;  %v1017_v43 = vadd.f32 %v1016_v38, %v6395_v0  ;;  %v1018_v44 = vpop.f32.mrb[17].mxu0  ;;  %4752 = vmatpush3.bf16.xpose.msra.mxu0 %v1259_v39  ;;  %4788 = vmatpush3.bf16.msra.mxu1 %v6475_v9 }
 0x2dd   : > { %v6503_v3 = vpack.c.bf16 %v1141_v15, %v1138_v37  ;;  %v1020_v45 = vpop.f32.mrb[18].mxu0  ;;  %v1019_v50 = vadd.f32 %v1018_v44, %v6400_v5 }
 0x2de   : > { %v1021_v16 = vadd.f32 %v1020_v45, %v6395_v0  ;;  %v1022_v47 = vpop.f32.mrb[19].mxu0 }
 0x2df   : > { %v1023_v51 = vadd.f32 %v1022_v47, %v6400_v5  ;;  %4789 = vmatprep.subr.bf16.mxu1 %v6503_v3 }
 0x2e0   : > { %v6509_v25 = vpack.c.bf16 %v1021_v16, %v1017_v43  ;;  %4790 = vmatpush3.bf16.msra.mxu1 %v6503_v3 }
 0x2e1   : > { %v6512_v11 = vpack.c.bf16 %v1023_v51, %v1019_v50  ;;  %4791 = vmatprep.subr.bf16.mxu1 %v6499_v57 }
 0x2e3   : > { %v1026_v52 = vpop.f32.mrb[20].mxu0  ;;  %5053 = vmatprep.subr.msk.bf16.mxu0 %vm1224_vm0, %v6512_v11  ;;  %v1262_v54 = vsel %vm1224_vm0, %v6512_v11, 0 }
 0x2e4   : > { %v1027_v55 = vadd.f32 %v1026_v52, %v6395_v0  ;;  %v1028_v58 = vpop.f32.mrb[21].mxu0  ;;  %4754 = vmatpush3.bf16.xpose.msra.mxu0 %v1262_v54  ;;  %4792 = vmatpush3.bf16.msra.mxu1 %v6499_v57 }
 0x2e5   : > { %v1030_v59 = vpop.f32.mrb[22].mxu0  ;;  %v1029_v61 = vadd.f32 %v1028_v58, %v6400_v5 }
 0x2e6   : > { %v1031_v17 = vadd.f32 %v1030_v59, %v6395_v0  ;;  %v1032_v60 = vpop.f32.mrb[23].mxu0 }
 0x2e7   : > { %v1033_v28 = vadd.f32 %v1032_v60, %v6400_v5 }
 0x2e8   : > { %v6524_v14 = vpack.c.bf16 %v1031_v17, %v1027_v55 }
 0x2e9   : > { %v6526_v1 = vpack.c.bf16 %v1033_v28, %v1029_v61 }
 0x2eb   : > { %v1036_v2 = vpop.f32.mrb[24].mxu0  ;;  %5054 = vmatprep.subr.msk.bf16.mxu0 %vm1224_vm0, %v6526_v1  ;;  %v1265_v40 = vsel %vm1224_vm0, %v6526_v1, 0 }
 0x2ec   : > { %v1037_v6 = vadd.f32 %v1036_v2, %v6395_v0  ;;  %v1038_v7 = vpop.f32.mrb[25].mxu0  ;;  %4756 = vmatpush3.bf16.xpose.msra.mxu0 %v1265_v40 }
 0x2ed   : > { %v1040_v8 = vpop.f32.mrb[26].mxu0  ;;  %v1039_v20 = vadd.f32 %v1038_v7, %v6400_v5 }
 0x2ee   : > { %v1041_v10 = vadd.f32 %v1040_v8, %v6395_v0  ;;  %v1042_v18 = vpop.f32.mrb[27].mxu0 }
 0x2ef   : > { %v1043_v48 = vadd.f32 %v1042_v18, %v6400_v5 }
 0x2f0   : > { %v6536_v23 = vpack.c.bf16 %v1041_v10, %v1037_v6 }
 0x2f1   : > { %v6538_v26 = vpack.c.bf16 %v1043_v48, %v1039_v20 }
 0x2f3   : > { %v1046_v27 = vpop.f32.mrb[28].mxu0  ;;  %5055 = vmatprep.subr.msk.bf16.mxu0 %vm1224_vm0, %v6538_v26  ;;  %v1268_v12 = vsel %vm1224_vm0, %v6538_v26, 0 }
 0x2f4   : > { %v1047_v30 = vadd.f32 %v1046_v27, %v6395_v0  ;;  %v1048_v24 = vpop.f32.mrb[29].mxu0  ;;  %4758 = vmatpush3.bf16.xpose.msra.mxu0 %v1268_v12 }
 0x2f5   : > { %v1050_v49 = vpop.f32.mrb[30].mxu0  ;;  %v1049_v37 = vadd.f32 %v1048_v24, %v6400_v5 }
 0x2f6   : > { %v1051_v35 = vadd.f32 %v1050_v49, %v6395_v0  ;;  %v1052_v36 = vpop.f32.mrb[31].mxu0 }
 0x2f7   : > { %v1053_v15 = vadd.f32 %v1052_v36, %v6400_v5 }
 0x2f8   : > { %v6548_v38 = vpack.c.bf16 %v1051_v35, %v1047_v30 }
 0x2f9   : > { %v6550_v39 = vpack.c.bf16 %v1053_v15, %v1049_v37 }
 0x2fb   : > { %5056 = vmatprep.subr.msk.bf16.mxu0 %vm1224_vm0, %v6550_v39  ;;  %v1271_v43 = vsel %vm1224_vm0, %v6550_v39, 0 }
 0x2fc   : > { %4760 = vmatpush3.bf16.xpose.msra.mxu0 %v1271_v43 }
 0x303   : > { %4762 = vmatmul.mubr.msk.bf16.vlgmr.msra.gmra.mrb[32].mxu0 %vm1224_vm0, %v6433_v32 }
 0x304   : > { %4765 = vmatprep.mubr.msk.bf16.mxu0 %vm1224_vm0, %v6459_v13 }
 0x30b   : > { %4766 = vmatmul.mubr.msk.bf16.gmra.mrb[36].mxu0 %vm1224_vm0, %v6485_v29 }
 0x30c   : > { %4769 = vmatprep.mubr.msk.bf16.mxu0 %vm1224_vm0, %v6509_v25 }
 0x313   : > { %4770 = vmatmul.mubr.msk.bf16.gmra.mrb[40].mxu0 %vm1224_vm0, %v6524_v14 }
 0x314   : > { %4773 = vmatprep.mubr.msk.bf16.mxu0 %vm1224_vm0, %v6536_v23 }
 0x31b   : > { %4774 = vmatmul.mubr.msk.bf16.gmra.mrb[44].mxu0 %vm1224_vm0, %v6548_v38 }
 0x335   : > { %v6570_v0 = vpop.permute.xlu0 %1659 }
 0x336   : > { %5057 = vmatprep.subr.msk.bf16.mxu1 %vm1224_vm0, %v6570_v0 }
 0x33d   : > { %v1662_v40 = vpop.permute.xlu1 %1661 }
 0x345   : > { %v1664_v2 = vpop.permute.xlu0 %1663 }
 0x3d6   : > { %v6574_v5 = vpop.f32.mrb[32].mxu0 }
 0x3d7   : > { %1374 = vmax.xlane.f32.xlu0 %v6574_v5  ;;  %v6577_v44 = vpop.f32.mrb[33].mxu0 }
 0x3d8   : > { %v4764_v45 = vpop.f32.mrb[34].mxu0 }
 0x3d9   : > { %1376 = vmax.xlane.f32.xlu1 %v4764_v45  ;;  %v6579_v16 = vpop.f32.mrb[35].mxu0 }
 0x3db   : > { %1370 = vmax.xlane.f32.xlu0 %v6577_v44 }
 0x3dd   : > { %1372 = vmax.xlane.f32.xlu1 %v6579_v16 }
 0x3de   : > { %v6583_v47 = vpop.f32.mrb[36].mxu0 }
 0x3df   : > { %v6585_v50 = vpop.f32.mrb[37].mxu0 }
 0x3e0   : > { %v6587_v51 = vpop.f32.mrb[38].mxu0 }
 0x3e1   : > { %v6589_v52 = vpop.f32.mrb[39].mxu0 }
 0x3e6   : > { %v6591_v54 = vpop.f32.mrb[40].mxu0 }
 0x3e7   : > { %v6593_v55 = vpop.f32.mrb[41].mxu0 }
 0x3e8   : > { %v6595_v58 = vpop.f32.mrb[42].mxu0 }
 0x3e9   : > { %v6597_v59 = vpop.f32.mrb[43].mxu0 }
 0x3ee   : > { %1665 = vrot.lane.b32.xlu1 %v6488_v31, %s5890_s30  ;;  %v6601_v17 = vpop.f32.mrb[44].mxu0 }
 0x3ef   : > { %v6603_v60 = vpop.f32.mrb[45].mxu0 }
 0x3f0   : > { %v6605_v61 = vpop.f32.mrb[46].mxu0 }
 0x3f1   : > { %1667 = vrot.lane.b32.xlu0 %v6512_v11, %s5890_s30  ;;  %v6609_v28 = vpop.f32.mrb[47].mxu0 }
 0x410   : > { %1382 = vmax.xlane.f32.xlu0 %v6583_v47 }
 0x412   : > { %1378 = vmax.xlane.f32.xlu1 %v6585_v50 }
 0x414   : > { %1386 = vmax.xlane.f32.xlu0 %v6593_v55 }
 0x416   : > { %1384 = vmax.xlane.f32.xlu1 %v6587_v51 }
 0x418   : > { %1388 = vmax.xlane.f32.xlu0 %v6597_v59 }
 0x41a   : > { %1380 = vmax.xlane.f32.xlu1 %v6589_v52 }
 0x41c   : > { %1398 = vmax.xlane.f32.xlu0 %v6601_v17 }
 0x41e   : > { %1390 = vmax.xlane.f32.xlu1 %v6591_v54 }
 0x422   : > { %1392 = vmax.xlane.f32.xlu1 %v6595_v58 }
 0x426   : > { %1394 = vmax.xlane.f32.xlu1 %v6603_v60 }
 0x42a   : > { %1400 = vmax.xlane.f32.xlu1 %v6605_v61 }
 0x42e   : > { %1396 = vmax.xlane.f32.xlu1 %v6609_v28 }
 0x432   : > { %1671 = vrot.lane.b32.xlu0 %v6538_v26, %s5890_s30 }
 0x436   : > { %1673 = vrot.lane.b32.xlu0 %v6550_v39, %s5890_s30 }
 0x43a   : > { %1635 = vrot.lane.b32.xlu0 %v6408_v19, %s5890_s30 }
 0x43e   : > { %1639 = vrot.lane.b32.xlu0 %v6459_v13, %s5890_s30 }
 0x43f   : > { %1669 = vrot.lane.b32.xlu1 %v6526_v1, %s5890_s30 }
 0x442   : > { %1643 = vrot.lane.b32.xlu0 %v6509_v25, %s5890_s30 }
 0x443   : > { %1637 = vrot.lane.b32.xlu1 %v6433_v32, %s5890_s30 }
 0x446   : > { %1647 = vrot.lane.b32.xlu0 %v6536_v23, %s5890_s30 }
 0x447   : > { %1641 = vrot.lane.b32.xlu1 %v6485_v29, %s5890_s30 }
 0x44a   : > { %1948 = vrot.lane.b32.xlu0 %v6427_v56, %s5890_s30 }
 0x44b   : > { %1645 = vrot.lane.b32.xlu1 %v6524_v14, %s5890_s30 }
 0x44e   : > { %1952 = vrot.lane.b32.xlu0 %v6453_v53, %s5890_s30 }
 0x44f   : > { %1649 = vrot.lane.b32.xlu1 %v6548_v38, %s5890_s30 }
 0x452   : > { %1960 = vrot.lane.b32.xlu0 %v6503_v3, %s5890_s30 }
 0x453   : > { %1950 = vrot.lane.b32.xlu1 %v6424_v34, %s5890_s30 }
 0x456   : > { %2125 = vrot.lane.b32.xlu0 %v6410_v21, %s5891_s18 }
 0x457   : > { %1954 = vrot.lane.b32.xlu1 %v6449_v4, %s5890_s30 }
 0x45a   : > { %2127 = vrot.lane.b32.xlu0 %v6436_v42, %s5891_s18 }
 0x45b   : > { %1956 = vrot.lane.b32.xlu1 %v6479_v41, %s5890_s30 }
 0x45e   : > { %2131 = vrot.lane.b32.xlu0 %v6488_v31, %s5891_s18 }
 0x45f   : > { %1958 = vrot.lane.b32.xlu1 %v6475_v9, %s5890_s30 }
 0x463   : > { %1962 = vrot.lane.b32.xlu1 %v6499_v57, %s5890_s30 }
 0x464   : > { %v1375_v6 = vpop.xlane.xlu0 %1374 }
 0x465   : > { %v1404_v10 = vsub.f32 %v6574_v5, %v1375_v6 }
 0x466   : > { %v1377_v7 = vpop.xlane.xlu1 %1376 }
 0x467   : > { %v1405_v8 = vsub.f32 %v4764_v45, %v1377_v7  ;;  %2129 = vrot.lane.b32.xlu1 %v6462_v62, %s5891_s18  ;;  %v1422_v24 = vmul.f32 1.442695, %v1404_v10  ;;  %v1703_v45 = vsel %vm1224_vm0, %v1662_v40, 0 }
 0x468   : > { %v1371_v18 = vpop.xlane.xlu0 %1370 }
 0x469   : > { %v1424_v20 = vmul.f32 1.442695, %v1405_v8  ;;  %v1402_v48 = vsub.f32 %v6577_v44, %v1371_v18  ;;  %v1700_v44 = vsel %vm1224_vm0, %v6570_v0, 0 }
 0x46a   : > { %v1373_v27 = vpop.xlane.xlu1 %1372 }
 0x46b   : > { %v1418_v12 = vmul.f32 1.442695, %v1402_v48  ;;  %v1403_v30 = vsub.f32 %v6579_v16, %v1373_v27  ;;  %5292 = vpow2.f32 %v1424_v20  ;;  %v1706_v16 = vsel %vm1224_vm0, %v1664_v2, 0 }
 0x46c   : > { %v1668_v8 = vpop.permute.xlu0 %1667 }
 0x46d   : > { %v1420_v49 = vmul.f32 1.442695, %v1403_v30  ;;  %5294 = vpow2.f32 %v1418_v12  ;;  %v1712_v0 = vsel %vm1224_vm0, %v1668_v8, 0 }
 0x46e   : > { %v1666_v6 = vpop.permute.xlu1 %1665 }
 0x46f   : > { %5296 = vpow2.f32 %v1420_v49  ;;  %v1709_v7 = vsel %vm1224_vm0, %v1666_v6, 0 }
 0x470   : > { %5298 = vpow2.f32 %v1422_v24 }
 0x475   : > { %v6672_v35 = vpop.eup %5292 }
 0x477   : > { %v6674_v36 = vpop.eup %5294 }
 0x479   : > { %v6676_v37 = vpop.eup %5296 }
 0x47a   : > { %v6678_v15 = vpop.eup %5298  ;;  %v1482_v43 = vpack.c.bf16 %v6676_v37, %v6674_v36 }
 0x47b   : > { %v1483_v5 = vpack.c.bf16 %v6672_v35, %v6678_v15 }
 0x47c   : > { %4793 = vmatprep.mubr.bf16.mxu1 %v1482_v43 }
 0x47d   : > { %4794 = vmatmul.mubr.bf16.vlgmr.msra.gmra.mrb[16].mxu1 %v1483_v5 }
 0x47e   : > { %4810 = vmatpush3.bf16.xpose.msra.mxu1 %v1700_v44 }
 0x47f   : > { %5058 = vmatprep.subr.msk.bf16.mxu1 %vm1224_vm0, %v1662_v40 }
 0x486   : > { %4812 = vmatpush3.bf16.xpose.msra.mxu1 %v1703_v45 }
 0x487   : > { %5059 = vmatprep.subr.msk.bf16.mxu1 %vm1224_vm0, %v1664_v2 }
 0x48e   : > { %4814 = vmatpush3.bf16.xpose.msra.mxu1 %v1706_v16 }
 0x48f   : > { %5060 = vmatprep.subr.msk.bf16.mxu1 %vm1224_vm0, %v1666_v6 }
 0x496   : > { %4816 = vmatpush3.bf16.xpose.msra.mxu1 %v1709_v7 }
 0x497   : > { %5061 = vmatprep.subr.msk.bf16.mxu1 %vm1224_vm0, %v1668_v8 }
 0x49d   : > { %v1383_v10 = vpop.xlane.xlu0 %1382 }
 0x49e   : > { %4818 = vmatpush3.bf16.xpose.msra.mxu1 %v1712_v0  ;;  %v1408_v27 = vsub.f32 %v6583_v47, %v1383_v10 }
 0x49f   : > { %v1379_v40 = vpop.xlane.xlu1 %1378 }
 0x4a0   : > { %v1406_v18 = vsub.f32 %v6585_v50, %v1379_v40  ;;  %v1430_v16 = vmul.f32 1.442695, %v1408_v27 }
 0x4a1   : > { %v1387_v20 = vpop.xlane.xlu0 %1386 }
 0x4a2   : > { %v1426_v12 = vmul.f32 1.442695, %v1406_v18  ;;  %v1410_v24 = vsub.f32 %v6593_v55, %v1387_v20 }
 0x4a3   : > { %v1385_v48 = vpop.xlane.xlu1 %1384 }
 0x4a4   : > { %v1409_v2 = vsub.f32 %v6587_v51, %v1385_v48  ;;  %5300 = vpow2.f32 %v1426_v12  ;;  %v1434_v6 = vmul.f32 1.442695, %v1410_v24 }
 0x4a5   : > { %v1389_v30 = vpop.xlane.xlu0 %1388 }
 0x4a6   : > { %v1432_v49 = vmul.f32 1.442695, %v1409_v2  ;;  %v1411_v43 = vsub.f32 %v6597_v59, %v1389_v30 }
 0x4a7   : > { %v1381_v5 = vpop.xlane.xlu1 %1380 }
 0x4a8   : > { %v1436_v44 = vmul.f32 1.442695, %v1411_v43  ;;  %v1407_v45 = vsub.f32 %v6589_v52, %v1381_v5  ;;  %5302 = vpow2.f32 %v1432_v49 }
 0x4a9   : > { %v1399_v50 = vpop.xlane.xlu0 %1398 }
 0x4aa   : > { %v1428_v7 = vmul.f32 1.442695, %v1407_v45  ;;  %5304 = vpow2.f32 %v1436_v44  ;;  %v1416_v5 = vsub.f32 %v6601_v17, %v1399_v50 }
 0x4ab   : > { %v1391_v51 = vpop.xlane.xlu1 %1390 }
 0x4ac   : > { %5306 = vpow2.f32 %v1428_v7  ;;  %v1412_v47 = vsub.f32 %v6591_v54, %v1391_v51 }
 0x4ad   : > { %5308 = vpow2.f32 %v1430_v16  ;;  %v1672_v55 = vpop.permute.xlu0 %1671 }
 0x4ae   : > { %5310 = vpow2.f32 %v1434_v6  ;;  %v1438_v8 = vmul.f32 1.442695, %v1412_v47  ;;  %v6704_v40 = vpop.eup %5300 }
 0x4af   : > { %v1393_v59 = vpop.xlane.xlu1 %1392 }
 0x4b0   : > { %v1413_v0 = vsub.f32 %v6595_v58, %v1393_v59  ;;  %5312 = vpow2.f32 %v1438_v8 }
 0x4b1   : > { %v6702_v10 = vpop.permute.xlu0 %1673 }
 0x4b2   : > { %v1440_v52 = vmul.f32 1.442695, %v1413_v0  ;;  %v6706_v20 = vpop.eup %5302 }
 0x4b3   : > { %v1395_v18 = vpop.xlane.xlu1 %1394  ;;  %8114 = vst [vmem:[#allocation20_spill] sm:$0xff] %v6706_v20 }
 0x4b4   : > { %5314 = vpow2.f32 %v1440_v52  ;;  %v6708_v48 = vpop.eup %5304  ;;  %v1414_v27 = vsub.f32 %v6603_v60, %v1395_v18 }
 0x4b5   : > { %8115 = vst [vmem:[#allocation21_spill] sm:$0xff] %v6708_v48  ;;  %v1636_v54 = vpop.permute.xlu0 %1635 }
 0x4b6   : > { %v6710_v2 = vpop.eup %5306  ;;  %v1442_v45 = vmul.f32 1.442695, %v1414_v27 }
 0x4b7   : > { %v6713_v12 = vpop.eup %5308  ;;  %v1401_v58 = vpop.xlane.xlu1 %1400  ;;  %v1484_v30 = vpack.c.bf16 %v6710_v2, %v6704_v40 }
 0x4b8   : > { %v6717_v24 = vpop.eup %5310  ;;  %v1417_v49 = vsub.f32 %v6605_v61, %v1401_v58  ;;  %v1485_v43 = vpack.c.bf16 %v6706_v20, %v6713_v12  ;;  %v1446_v61 = vmul.f32 1.442695, %v1416_v5  ;;  %5316 = vpow2.f32 %v1442_v45 }
 0x4b9   : > { %8116 = vst [vmem:[#allocation22_spill] sm:$0xff] %v6717_v24  ;;  %4797 = vmatprep.mubr.bf16.mxu1 %v1484_v30  ;;  %v1640_v44 = vpop.permute.xlu0 %1639  ;;  %v1486_v60 = vpack.c.bf16 %v6708_v48, %v6717_v24  ;;  %v1718_v30 = vsel %vm1224_vm0, %v1672_v55, 0 }
 0x4ba   : > { %4798 = vmatmul.mubr.bf16.gmra.mrb[20].mxu1 %v1485_v43  ;;  %v1448_v16 = vmul.f32 1.442695, %v1417_v49  ;;  %v6726_v51 = vpop.eup %5312 }
 0x4bb   : > { %v1397_v6 = vpop.xlane.xlu1 %1396  ;;  %4801 = vmatprep.mubr.bf16.mxu1 %v1486_v60  ;;  %8117 = vst [vmem:[#allocation23_spill] sm:$0xff] %v6726_v51 }
 0x4bc   : > { %v1415_v7 = vsub.f32 %v6609_v28, %v1397_v6  ;;  %5318 = vpow2.f32 %v1448_v16  ;;  %v1721_v6 = vsel %vm1224_vm0, %v6702_v10, 0 }
 0x4bd   : > { %v1644_v47 = vpop.permute.xlu0 %1643 }
 0x4be   : > { %v6728_v8 = vpop.eup %5314  ;;  %v1444_v17 = vmul.f32 1.442695, %v1415_v7 }
 0x4bf   : > { %8118 = vst [vmem:[#allocation24_spill] sm:$0xff] %v6728_v8  ;;  %v1670_v50 = vpop.permute.xlu1 %1669  ;;  %v1487_v59 = vpack.c.bf16 %v6728_v8, %v6726_v51 }
 0x4c0   : > { %5320 = vpow2.f32 %v1444_v17  ;;  %5062 = vmatprep.subr.msk.bf16.mxu1 %vm1224_vm0, %v1670_v50  ;;  %v1715_v0 = vsel %vm1224_vm0, %v1670_v50, 0 }
 0x4c1   : > { %5322 = vpow2.f32 %v1446_v61  ;;  %4820 = vmatpush3.bf16.xpose.msra.mxu1 %v1715_v0  ;;  %v1648_v28 = vpop.permute.xlu0 %1647 }
 0x4c2   : > { %4802 = vmatmul.mubr.bf16.gmra.mrb[24].mxu1 %v1487_v59  ;;  %5063 = vmatprep.subr.msk.bf16.mxu1 %vm1224_vm0, %v1672_v55  ;;  %v6735_v58 = vpop.eup %5316 }
 0x4c3   : > { %v1638_v52 = vpop.permute.xlu1 %1637  ;;  %8119 = vst [vmem:[#allocation25_spill] sm:$0xff] %v6735_v58 }
 0x4c5   : > { %v1949_v18 = vpop.permute.xlu0 %1948 }
 0x4c6   : > { %4841 = vmatprep.subr.bf16.mxu0 %v1949_v18  ;;  %v6738_v49 = vpop.eup %5318 }
 0x4c7   : > { %v1642_v27 = vpop.permute.xlu1 %1641  ;;  %4842 = vmatpush3.bf16.msra.mxu0 %v1949_v18  ;;  %8120 = vst [vmem:[#allocation26_spill] sm:$0xff] %v6738_v49 }
 0x4c9   : > { %4822 = vmatpush3.bf16.xpose.msra.mxu1 %v1718_v30  ;;  %v1953_v61 = vpop.permute.xlu0 %1952 }
 0x4ca   : > { %v6740_v43 = vpop.eup %5320  ;;  %5064 = vmatprep.subr.msk.bf16.mxu1 %vm1224_vm0, %v6702_v10 }
 0x4cb   : > { %8121 = vst [vmem:[#allocation27_spill] sm:$0xff] %v6740_v43  ;;  %v6744_v5 = vpop.eup %5322  ;;  %v1646_v60 = vpop.permute.xlu1 %1645  ;;  %v1488_v45 = vpack.c.bf16 %v6740_v43, %v6735_v58 }
 0x4cc   : > { %8122 = vst [vmem:[#allocation28_spill] sm:$0xff] %v6744_v5  ;;  %v1489_v16 = vpack.c.bf16 %v6738_v49, %v6744_v5 }
 0x4cd   : > { %4805 = vmatprep.mubr.bf16.mxu1 %v1488_v45  ;;  %v1961_v10 = vpop.permute.xlu0 %1960 }
 0x4ce   : > { %4806 = vmatmul.mubr.bf16.gmra.mrb[28].mxu1 %v1489_v16 }
 0x4cf   : > { %v1650_v55 = vpop.permute.xlu1 %1649  ;;  %4825 = vmatprep.mubr.msk.bf16.mxu1 %vm1224_vm0, %v1636_v54 }
 0x4d1   : > { %4824 = vmatpush3.bf16.xpose.msra.mxu1 %v1721_v6 }
 0x4d3   : > { %v1951_v7 = vpop.permute.xlu1 %1950 }
 0x4d4   : > { %4843 = vmatprep.subr.bf16.mxu0 %v1951_v7 }
 0x4d5   : > { %4844 = vmatpush3.bf16.msra.mxu0 %v1951_v7 }
 0x4d6   : > { %4845 = vmatprep.subr.bf16.mxu0 %v1953_v61 }
 0x4d7   : > { %v1955_v17 = vpop.permute.xlu1 %1954 }
 0x4d8   : > { %4826 = vmatmul.mubr.msk.bf16.vlgmr.msra.gmra.mrb[32].mxu1 %vm1224_vm0, %v1638_v52 }
 0x4d9   : > { %4829 = vmatprep.mubr.msk.bf16.mxu1 %vm1224_vm0, %v1640_v44  ;;  %4846 = vmatpush3.bf16.msra.mxu0 %v1953_v61  ;;  %v6759_v44 = vpop.permute.xlu0 %2125 }
 0x4da   : > { %4847 = vmatprep.subr.bf16.mxu0 %v1955_v17 }
 0x4db   : > { %v1957_v50 = vpop.permute.xlu1 %1956 }
 0x4dd   : > { %4848 = vmatpush3.bf16.msra.mxu0 %v1955_v17 }
 0x4de   : > { %4849 = vmatprep.subr.bf16.mxu0 %v1957_v50 }
 0x4df   : > { %v1959_v54 = vpop.permute.xlu1 %1958 }
 0x4e0   : > { %4830 = vmatmul.mubr.msk.bf16.gmra.mrb[36].mxu1 %vm1224_vm0, %v1642_v27 }
 0x4e1   : > { %4833 = vmatprep.mubr.msk.bf16.mxu1 %vm1224_vm0, %v1644_v47  ;;  %4850 = vmatpush3.bf16.msra.mxu0 %v1957_v50 }
 0x4e2   : > { %4851 = vmatprep.subr.bf16.mxu0 %v1959_v54 }
 0x4e3   : > { %v1963_v59 = vpop.permute.xlu1 %1962 }
 0x4e5   : > { %4852 = vmatpush3.bf16.msra.mxu0 %v1959_v54 }
 0x4e6   : > { %4853 = vmatprep.subr.bf16.mxu0 %v1961_v10 }
 0x4e7   : > { %v6889_v58 = vpop.permute.xlu1 %2129 }
 0x4e8   : > { %4834 = vmatmul.mubr.msk.bf16.gmra.mrb[40].mxu1 %vm1224_vm0, %v1646_v60 }
 0x4e9   : > { %4837 = vmatprep.mubr.msk.bf16.mxu1 %vm1224_vm0, %v1648_v28  ;;  %4854 = vmatpush3.bf16.msra.mxu0 %v1961_v10 }
 0x4ea   : > { %4855 = vmatprep.subr.bf16.mxu0 %v1963_v59 }
 0x4ed   : > { %4856 = vmatpush3.bf16.msra.mxu0 %v1963_v59 }
 0x4ee   : > { %5065 = vmatprep.subr.msk.bf16.mxu0 %vm1224_vm0, %v6759_v44 }
 0x4f0   : > { %4838 = vmatmul.mubr.msk.bf16.gmra.mrb[44].mxu1 %vm1224_vm0, %v1650_v55 }
 0x550   : > { %v6764_v47 = vpop.f32.mrb[16].mxu1 }
 0x551   : > { %8123 = vst [vmem:[#allocation29_spill] sm:$0xff] %v6764_v47  ;;  %v6766_v0 = vpop.f32.mrb[17].mxu1 }
 0x552   : > { %8124 = vst [vmem:[#allocation30_spill] sm:$0xff] %v6766_v0  ;;  %v6768_v52 = vpop.f32.mrb[18].mxu1 }
 0x553   : > { %8125 = vst [vmem:[#allocation31_spill] sm:$0xff] %v6768_v52  ;;  %v6770_v18 = vpop.f32.mrb[19].mxu1 }
 0x554   : > { %8126 = vst [vmem:[#allocation32_spill] sm:$0xff] %v6770_v18 }
 0x58d   : > { %v6772_v27 = vpop.f32.mrb[20].mxu1 }
 0x58e   : > { %8127 = vst [vmem:[#allocation33_spill] sm:$0xff] %v6772_v27  ;;  %v6774_v28 = vpop.f32.mrb[21].mxu1 }
 0x58f   : > { %8128 = vst [vmem:[#allocation34_spill] sm:$0xff] %v6774_v28  ;;  %v6776_v30 = vpop.f32.mrb[22].mxu1 }
 0x590   : > { %8129 = vst [vmem:[#allocation35_spill] sm:$0xff] %v6776_v30  ;;  %v6778_v60 = vpop.f32.mrb[23].mxu1 }
 0x591   : > { %8130 = vst [vmem:[#allocation36_spill] sm:$0xff] %v6778_v60 }
 0x595   : > { %v6780_v45 = vpop.f32.mrb[24].mxu1 }
 0x596   : > { %8131 = vst [vmem:[#allocation37_spill] sm:$0xff] %v6780_v45  ;;  %v6782_v16 = vpop.f32.mrb[25].mxu1 }
 0x597   : > { %8132 = vst [vmem:[#allocation38_spill] sm:$0xff] %v6782_v16  ;;  %v6784_v55 = vpop.f32.mrb[26].mxu1 }
 0x598   : > { %8133 = vst [vmem:[#allocation39_spill] sm:$0xff] %v6784_v55  ;;  %v6786_v6 = vpop.f32.mrb[27].mxu1 }
 0x599   : > { %8134 = vst [vmem:[#allocation40_spill] sm:$0xff] %v6786_v6 }
 0x5a1   : > { %v6788_v7 = vpop.f32.mrb[28].mxu1 }
 0x5a2   : > { %8135 = vst [vmem:[#allocation41_spill] sm:$0xff] %v6788_v7  ;;  %v6790_v61 = vpop.f32.mrb[29].mxu1 }
 0x5a3   : > { %8136 = vst [vmem:[#allocation42_spill] sm:$0xff] %v6790_v61  ;;  %v6792_v17 = vpop.f32.mrb[30].mxu1 }
 0x5a4   : > { %8137 = vst [vmem:[#allocation43_spill] sm:$0xff] %v6792_v17  ;;  %v6794_v50 = vpop.f32.mrb[31].mxu1 }
 0x5a5   : > { %8138 = vst [vmem:[#allocation44_spill] sm:$0xff] %v6794_v50 }
 0x5ab   : > { %v6796_v54 = vpop.f32.mrb[32].mxu1 }
 0x5ac   : > { %1824 = vmax.xlane.f32.xlu0 %v6796_v54  ;;  %v6799_v10 = vpop.f32.mrb[33].mxu1 }
 0x5ad   : > { %v6801_v59 = vpop.f32.mrb[34].mxu1 }
 0x5ae   : > { %v1760_v33 = vpop.f32.mrb[35].mxu1 }
 0x5af   : > { %1822 = vmax.xlane.f32.xlu1 %v1760_v33 }
 0x5b0   : > { %1820 = vmax.xlane.f32.xlu0 %v6799_v10 }
 0x5b3   : > { %v6804_v63 = vpop.f32.mrb[36].mxu1 }
 0x5b4   : > { %1826 = vmax.xlane.f32.xlu0 %v6801_v59  ;;  %1832 = vmax.xlane.f32.xlu1 %v6804_v63  ;;  %v6808_v46 = vpop.f32.mrb[37].mxu1 }
 0x5b5   : > { %v6810_v22 = vpop.f32.mrb[38].mxu1 }
 0x5b6   : > { %v6812_v50 = vpop.f32.mrb[39].mxu1 }
 0x5b8   : > { %1828 = vmax.xlane.f32.xlu1 %v6808_v46  ;;  %1830 = vmax.xlane.f32.xlu0 %v6812_v50 }
 0x5bb   : > { %v6816_v61 = vpop.f32.mrb[40].mxu1 }
 0x5bc   : > { %1834 = vmax.xlane.f32.xlu1 %v6810_v22  ;;  %1840 = vmax.xlane.f32.xlu0 %v6816_v61  ;;  %v6820_v17 = vpop.f32.mrb[41].mxu1 }
 0x5bd   : > { %v6822_v7 = vpop.f32.mrb[42].mxu1 }
 0x5be   : > { %v6824_v43 = vpop.f32.mrb[43].mxu1 }
 0x5c0   : > { %1836 = vmax.xlane.f32.xlu1 %v6820_v17 }
 0x5c3   : > { %v6827_v55 = vpop.f32.mrb[44].mxu1 }
 0x5c4   : > { %1842 = vmax.xlane.f32.xlu1 %v6822_v7  ;;  %v6830_v45 = vpop.f32.mrb[45].mxu1 }
 0x5c5   : > { %1844 = vmax.xlane.f32.xlu0 %v6830_v45  ;;  %v6833_v16 = vpop.f32.mrb[46].mxu1 }
 0x5c6   : > { %v6835_v49 = vpop.f32.mrb[47].mxu1 }
 0x5c8   : > { %1838 = vmax.xlane.f32.xlu1 %v6824_v43 }
 0x5cc   : > { %1848 = vmax.xlane.f32.xlu1 %v6827_v55 }
 0x5d0   : > { %1850 = vmax.xlane.f32.xlu1 %v6833_v16 }
 0x5db   : > { %2135 = vrot.lane.b32.xlu0 %v6526_v1, %s5891_s18 }
 0x5e1   : > { %2133 = vrot.lane.b32.xlu1 %v6512_v11, %s5891_s18 }
 0x5e5   : > { %2111 = vrot.lane.b32.xlu1 %v6433_v32, %s5891_s18 }
 0x5e9   : > { %2115 = vrot.lane.b32.xlu1 %v6485_v29, %s5891_s18 }
 0x5ed   : > { %2119 = vrot.lane.b32.xlu1 %v6524_v14, %s5891_s18 }
 0x5f1   : > { %2123 = vrot.lane.b32.xlu1 %v6548_v38, %s5891_s18 }
 0x5f5   : > { %2408 = vrot.lane.b32.xlu1 %v6424_v34, %s5891_s18 }
 0x5f9   : > { %2412 = vrot.lane.b32.xlu1 %v6449_v4, %s5891_s18 }
 0x5fa   : > { %1846 = vmax.xlane.f32.xlu0 %v6835_v49 }
 0x5fd   : > { %2414 = vrot.lane.b32.xlu1 %v6479_v41, %s5891_s18 }
 0x601   : > { %2416 = vrot.lane.b32.xlu1 %v6475_v9, %s5891_s18 }
 0x605   : > { %2420 = vrot.lane.b32.xlu1 %v6499_v57, %s5891_s18 }
 0x609   : > { %2587 = vrot.lane.b32.xlu1 %v6462_v62, %s5892_s10  ;;  %v6881_v62 = vpop.permute.xlu0 %2127 }
 0x60d   : > { %v6887_v5 = vpop.permute.xlu0 %2131 }
 0x610   : > { %2137 = vrot.lane.b32.xlu0 %v6538_v26, %s5891_s18 }
 0x614   : > { %2139 = vrot.lane.b32.xlu0 %v6550_v39, %s5891_s18 }
 0x618   : > { %2109 = vrot.lane.b32.xlu0 %v6408_v19, %s5891_s18 }
 0x61c   : > { %2113 = vrot.lane.b32.xlu0 %v6459_v13, %s5891_s18 }
 0x620   : > { %2117 = vrot.lane.b32.xlu0 %v6509_v25, %s5891_s18 }
 0x624   : > { %2121 = vrot.lane.b32.xlu0 %v6536_v23, %s5891_s18 }
 0x628   : > { %2406 = vrot.lane.b32.xlu0 %v6427_v56, %s5891_s18 }
 0x62c   : > { %2410 = vrot.lane.b32.xlu0 %v6453_v53, %s5891_s18 }
 0x630   : > { %2418 = vrot.lane.b32.xlu0 %v6503_v3, %s5891_s18 }
 0x634   : > { %2583 = vrot.lane.b32.xlu0 %v6410_v21, %s5892_s10 }
 0x638   : > { %2585 = vrot.lane.b32.xlu0 %v6436_v42, %s5892_s10 }
 0x639   : > { %v1825_v6 = vpop.xlane.xlu0 %1824 }
 0x63a   : > { %v1854_v52 = vsub.f32 %v6796_v54, %v1825_v6 }
 0x63c   : > { %v1823_v30 = vpop.xlane.xlu1 %1822  ;;  %2589 = vrot.lane.b32.xlu0 %v6488_v31, %s5892_s10  ;;  %v1872_v8 = vmul.f32 1.442695, %v1854_v52 }
 0x63d   : > { %v1853_v60 = vsub.f32 %v1760_v33, %v1823_v30  ;;  %v1821_v27 = vpop.xlane.xlu0 %1820 }
 0x63e   : > { %v1852_v28 = vsub.f32 %v6799_v10, %v1821_v27 }
 0x63f   : > { %v1870_v18 = vmul.f32 1.442695, %v1853_v60 }
 0x640   : > { %v1868_v21 = vmul.f32 1.442695, %v1852_v28 }
 0x641   : > { %5324 = vpow2.f32 %v1870_v18  ;;  %v1833_v47 = vpop.xlane.xlu1 %1832  ;;  %v1827_v0 = vpop.xlane.xlu0 %1826 }
 0x642   : > { %5326 = vpow2.f32 %v1868_v21  ;;  %v1855_v42 = vsub.f32 %v6801_v59, %v1827_v0  ;;  %v1858_v24 = vsub.f32 %v6804_v63, %v1833_v47 }
 0x643   : > { %5328 = vpow2.f32 %v1872_v8 }
 0x644   : > { %v1874_v51 = vmul.f32 1.442695, %v1855_v42  ;;  %v1880_v18 = vmul.f32 1.442695, %v1858_v24  ;;  %v2166_v42 = vsel %vm1224_vm0, %v6759_v44, 0 }
 0x645   : > { %v1829_v48 = vpop.xlane.xlu1 %1828  ;;  %v1831_v31 = vpop.xlane.xlu0 %1830 }
 0x646   : > { %v1856_v33 = vsub.f32 %v6808_v46, %v1829_v48  ;;  %v1857_v30 = vsub.f32 %v6812_v50, %v1831_v31  ;;  %5330 = vpow2.f32 %v1874_v51 }
 0x648   : > { %v1876_v27 = vmul.f32 1.442695, %v1856_v33  ;;  %v1878_v28 = vmul.f32 1.442695, %v1857_v30 }
 0x649   : > { %v1835_v60 = vpop.xlane.xlu1 %1834  ;;  %v1841_v24 = vpop.xlane.xlu0 %1840 }
 0x64a   : > { %5332 = vpow2.f32 %v1876_v27  ;;  %v1859_v52 = vsub.f32 %v6810_v22, %v1835_v60  ;;  %v1862_v10 = vsub.f32 %v6816_v61, %v1841_v24 }
 0x64b   : > { %v6902_v6 = vpop.eup %5324  ;;  %5334 = vpow2.f32 %v1878_v28 }
 0x64c   : > { %v6904_v0 = vpop.eup %5326  ;;  %v1882_v63 = vmul.f32 1.442695, %v1859_v52  ;;  %5336 = vpow2.f32 %v1880_v18  ;;  %v1888_v27 = vmul.f32 1.442695, %v1862_v10 }
 0x64d   : > { %v1837_v8 = vpop.xlane.xlu1 %1836  ;;  %v1932_v46 = vpack.c.bf16 %v6902_v6, %v6904_v0  ;;  %v6908_v48 = vpop.eup %5328 }
 0x64e   : > { %5338 = vpow2.f32 %v1882_v63  ;;  %v1860_v51 = vsub.f32 %v6820_v17, %v1837_v8 }
 0x64f   : > { %4857 = vmatprep.mubr.bf16.mxu0 %v1932_v46  ;;  %v2172_v46 = vsel %vm1224_vm0, %v6889_v58, 0 }
 0x650   : > { %v6911_v47 = vpop.eup %5330  ;;  %v1884_v21 = vmul.f32 1.442695, %v1860_v51 }
 0x651   : > { %v1843_v22 = vpop.xlane.xlu1 %1842  ;;  %v1933_v54 = vpack.c.bf16 %v6911_v47, %v6908_v48 }
 0x652   : > { %v1863_v50 = vsub.f32 %v6822_v7, %v1843_v22  ;;  %5340 = vpow2.f32 %v1884_v21 }
 0x653   : > { %4858 = vmatmul.mubr.bf16.vlgmr.msra.gmra.mrb[48].mxu0 %v1933_v54 }
 0x654   : > { %v6917_v59 = vpop.eup %5332  ;;  %v1890_v17 = vmul.f32 1.442695, %v1863_v50  ;;  %4874 = vmatpush3.bf16.xpose.msra.mxu0 %v2166_v42  ;;  %v2175_v50 = vsel %vm1224_vm0, %v6887_v5, 0 }
 0x655   : > { %v6921_v31 = vpop.eup %5334  ;;  %v1839_v33 = vpop.xlane.xlu1 %1838  ;;  %5066 = vmatprep.subr.msk.bf16.mxu0 %vm1224_vm0, %v6881_v62 }
 0x656   : > { %v1861_v7 = vsub.f32 %v6824_v43, %v1839_v33  ;;  %v1934_v61 = vpack.c.bf16 %v6921_v31, %v6917_v59  ;;  %v6928_v30 = vpop.eup %5336  ;;  %5342 = vpow2.f32 %v1890_v17  ;;  %v2169_v43 = vsel %vm1224_vm0, %v6881_v62, 0 }
 0x658   : > { %v6930_v28 = vpop.eup %5338  ;;  %v1886_v44 = vmul.f32 1.442695, %v1861_v7  ;;  %4861 = vmatprep.mubr.bf16.mxu0 %v1934_v61 }
 0x659   : > { %v1935_v18 = vpack.c.bf16 %v6930_v28, %v6928_v30  ;;  %v1849_v60 = vpop.xlane.xlu1 %1848 }
 0x65a   : > { %5344 = vpow2.f32 %v1886_v44 }
 0x65b   : > { %5346 = vpow2.f32 %v1888_v27  ;;  %4862 = vmatmul.mubr.bf16.gmra.mrb[52].mxu0 %v1935_v18 }
 0x65c   : > { %4876 = vmatpush3.bf16.xpose.msra.mxu0 %v2169_v43  ;;  %v6938_v52 = vpop.eup %5340 }
 0x65d   : > { %5067 = vmatprep.subr.msk.bf16.mxu0 %vm1224_vm0, %v6889_v58  ;;  %v1851_v22 = vpop.xlane.xlu1 %1850  ;;  %v1845_v58 = vpop.xlane.xlu0 %1844 }
 0x65e   : > { %v1864_v17 = vsub.f32 %v6830_v45, %v1845_v58  ;;  %v1867_v33 = vsub.f32 %v6833_v16, %v1851_v22 }
 0x660   : > { %v6940_v63 = vpop.eup %5342  ;;  %v1892_v7 = vmul.f32 1.442695, %v1864_v17  ;;  %v1898_v61 = vmul.f32 1.442695, %v1867_v33 }
 0x661   : > { %v2134_v54 = vpop.permute.xlu1 %2133  ;;  %v2136_v21 = vpop.permute.xlu0 %2135 }
 0x662   : > { %v2178_v10 = vsel %vm1224_vm0, %v2134_v54, 0  ;;  %v2181_v42 = vsel %vm1224_vm0, %v2136_v21, 0  ;;  %5348 = vpow2.f32 %v1892_v7 }
 0x663   : > { %5350 = vpow2.f32 %v1898_v61 }
 0x664   : > { %v6942_v8 = vpop.eup %5344  ;;  %4878 = vmatpush3.bf16.xpose.msra.mxu0 %v2172_v46 }
 0x665   : > { %v6946_v24 = vpop.eup %5346  ;;  %v1936_v62 = vpack.c.bf16 %v6942_v8, %v6938_v52  ;;  %5068 = vmatprep.subr.msk.bf16.mxu0 %vm1224_vm0, %v6887_v5  ;;  %v1866_v5 = vsub.f32 %v6827_v55, %v1849_v60  ;;  %v2112_v46 = vpop.permute.xlu1 %2111 }
 0x666   : > { %v1937_v51 = vpack.c.bf16 %v6940_v63, %v6946_v24 }
 0x667   : > { %4865 = vmatprep.mubr.bf16.mxu0 %v1936_v62  ;;  %v1896_v18 = vmul.f32 1.442695, %v1866_v5 }
 0x668   : > { %4866 = vmatmul.mubr.bf16.gmra.mrb[56].mxu0 %v1937_v51 }
 0x669   : > { %v2116_v55 = vpop.permute.xlu1 %2115 }
 0x66c   : > { %4880 = vmatpush3.bf16.xpose.msra.mxu0 %v2175_v50  ;;  %v6967_v51 = vpop.eup %5348 }
 0x66d   : > { %5069 = vmatprep.subr.msk.bf16.mxu0 %vm1224_vm0, %v2134_v54  ;;  %v6970_v22 = vpop.eup %5350  ;;  %v2120_v58 = vpop.permute.xlu1 %2119 }
 0x671   : > { %v2124_v33 = vpop.permute.xlu1 %2123 }
 0x674   : > { %4882 = vmatpush3.bf16.xpose.msra.mxu0 %v2178_v10 }
 0x675   : > { %5070 = vmatprep.subr.msk.bf16.mxu0 %vm1224_vm0, %v2136_v21  ;;  %v2409_v7 = vpop.permute.xlu1 %2408 }
 0x67c   : > { %4884 = vmatpush3.bf16.xpose.msra.mxu0 %v2181_v42 }
 0x687   : > { %v1847_v27 = vpop.xlane.xlu0 %1846 }
 0x688   : > { %v1865_v44 = vsub.f32 %v6835_v49, %v1847_v27  ;;  %v2413_v27 = vpop.permute.xlu1 %2412 }
 0x68a   : > { %v1894_v43 = vmul.f32 1.442695, %v1865_v44 }
 0x68b   : > { %v2138_v62 = vpop.permute.xlu0 %2137 }
 0x68c   : > { %5352 = vpow2.f32 %v1894_v43  ;;  %5071 = vmatprep.subr.msk.bf16.mxu0 %vm1224_vm0, %v2138_v62  ;;  %v2184_v45 = vsel %vm1224_vm0, %v2138_v62, 0 }
 0x68d   : > { %5354 = vpow2.f32 %v1896_v18  ;;  %4886 = vmatpush3.bf16.xpose.msra.mxu0 %v2184_v45  ;;  %v2415_v18 = vpop.permute.xlu1 %2414 }
 0x68f   : > { %v2140_v16 = vpop.permute.xlu0 %2139 }
 0x690   : > { %5072 = vmatprep.subr.msk.bf16.mxu0 %vm1224_vm0, %v2140_v16  ;;  %v2187_v49 = vsel %vm1224_vm0, %v2140_v16, 0 }
 0x691   : > { %v2417_v43 = vpop.permute.xlu1 %2416 }
 0x693   : > { %v2110_v60 = vpop.permute.xlu0 %2109 }
 0x695   : > { %4888 = vmatpush3.bf16.xpose.msra.mxu0 %v2187_v49  ;;  %v2421_v62 = vpop.permute.xlu1 %2420 }
 0x696   : > { %v6972_v50 = vpop.eup %5352 }
 0x697   : > { %v6974_v54 = vpop.eup %5354  ;;  %v2114_v10 = vpop.permute.xlu0 %2113  ;;  %v1938_v21 = vpack.c.bf16 %v6972_v50, %v6967_v51 }
 0x698   : > { %v1939_v42 = vpack.c.bf16 %v6970_v22, %v6974_v54 }
 0x699   : > { %4869 = vmatprep.mubr.bf16.mxu0 %v1938_v21 }
 0x69a   : > { %4870 = vmatmul.mubr.bf16.gmra.mrb[60].mxu0 %v1939_v42 }
 0x69b   : > { %4889 = vmatprep.mubr.msk.bf16.mxu0 %vm1224_vm0, %v2110_v60  ;;  %v2118_v17 = vpop.permute.xlu0 %2117 }
 0x69f   : > { %v2122_v5 = vpop.permute.xlu0 %2121 }
 0x6a2   : > { %4890 = vmatmul.mubr.msk.bf16.vlgmr.msra.gmra.mrb[64].mxu0 %vm1224_vm0, %v2112_v46 }
 0x6a3   : > { %4893 = vmatprep.mubr.msk.bf16.mxu0 %vm1224_vm0, %v2114_v10  ;;  %v2407_v61 = vpop.permute.xlu0 %2406 }
 0x6a4   : > { %4905 = vmatprep.subr.bf16.mxu1 %v2407_v61 }
 0x6a5   : > { %4906 = vmatpush3.bf16.msra.mxu1 %v2407_v61 }
 0x6a6   : > { %4907 = vmatprep.subr.bf16.mxu1 %v2409_v7 }
 0x6a7   : > { %v2411_v44 = vpop.permute.xlu0 %2410 }
 0x6a9   : > { %4908 = vmatpush3.bf16.msra.mxu1 %v2409_v7 }
 0x6aa   : > { %4894 = vmatmul.mubr.msk.bf16.gmra.mrb[68].mxu0 %vm1224_vm0, %v2116_v55  ;;  %4909 = vmatprep.subr.bf16.mxu1 %v2411_v44 }
 0x6ab   : > { %4897 = vmatprep.mubr.msk.bf16.mxu0 %vm1224_vm0, %v2118_v17  ;;  %v2419_v46 = vpop.permute.xlu0 %2418 }
 0x6ad   : > { %4910 = vmatpush3.bf16.msra.mxu1 %v2411_v44 }
 0x6ae   : > { %4911 = vmatprep.subr.bf16.mxu1 %v2413_v27 }
 0x6af   : > { %v6988_v45 = vpop.permute.xlu0 %2583 }
 0x6b1   : > { %4912 = vmatpush3.bf16.msra.mxu1 %v2413_v27 }
 0x6b2   : > { %4898 = vmatmul.mubr.msk.bf16.gmra.mrb[72].mxu0 %vm1224_vm0, %v2120_v58  ;;  %4913 = vmatprep.subr.bf16.mxu1 %v2415_v18 }
 0x6b3   : > { %4901 = vmatprep.mubr.msk.bf16.mxu0 %vm1224_vm0, %v2122_v5 }
 0x6b5   : > { %4914 = vmatpush3.bf16.msra.mxu1 %v2415_v18 }
 0x6b6   : > { %4915 = vmatprep.subr.bf16.mxu1 %v2417_v43 }
 0x6b9   : > { %4916 = vmatpush3.bf16.msra.mxu1 %v2417_v43 }
 0x6ba   : > { %4902 = vmatmul.mubr.msk.bf16.gmra.mrb[76].mxu0 %vm1224_vm0, %v2124_v33  ;;  %4917 = vmatprep.subr.bf16.mxu1 %v2419_v46 }
 0x6bd   : > { %4918 = vmatpush3.bf16.msra.mxu1 %v2419_v46 }
 0x6be   : > { %4919 = vmatprep.subr.bf16.mxu1 %v2421_v62 }
 0x6c1   : > { %4920 = vmatpush3.bf16.msra.mxu1 %v2421_v62 }
 0x6c2   : > { %5073 = vmatprep.subr.msk.bf16.mxu1 %vm1224_vm0, %v6988_v45 }
 0x726   : > { %v6992_v16 = vpop.f32.mrb[48].mxu0 }
 0x727   : > { %v6994_v55 = vpop.f32.mrb[49].mxu0 }
 0x728   : > { %v6996_v60 = vpop.f32.mrb[50].mxu0 }
 0x729   : > { %v6998_v49 = vpop.f32.mrb[51].mxu0 }
 0x72e   : > { %v7000_v58 = vpop.f32.mrb[52].mxu0 }
 0x72f   : > { %8139 = vst [vmem:[#allocation45_spill] sm:$0xff] %v7000_v58  ;;  %v7002_v10 = vpop.f32.mrb[53].mxu0 }
 0x730   : > { %8140 = vst [vmem:[#allocation46_spill] sm:$0xff] %v7002_v10  ;;  %v7004_v21 = vpop.f32.mrb[54].mxu0 }
 0x731   : > { %8141 = vst [vmem:[#allocation47_spill] sm:$0xff] %v7004_v21  ;;  %v7006_v42 = vpop.f32.mrb[55].mxu0 }
 0x732   : > { %8142 = vst [vmem:[#allocation48_spill] sm:$0xff] %v7006_v42 }
 0x73b   : > { %v7008_v17 = vpop.f32.mrb[56].mxu0 }
 0x73c   : > { %8143 = vst [vmem:[#allocation49_spill] sm:$0xff] %v7008_v17  ;;  %v7010_v33 = vpop.f32.mrb[57].mxu0 }
 0x73d   : > { %8144 = vst [vmem:[#allocation50_spill] sm:$0xff] %v7010_v33  ;;  %v7012_v5 = vpop.f32.mrb[58].mxu0 }
 0x73e   : > { %8145 = vst [vmem:[#allocation51_spill] sm:$0xff] %v7012_v5  ;;  %v7014_v7 = vpop.f32.mrb[59].mxu0 }
 0x73f   : > { %8146 = vst [vmem:[#allocation52_spill] sm:$0xff] %v7014_v7 }
 0x76d   : > { %v7016_v61 = vpop.f32.mrb[60].mxu0 }
 0x76e   : > { %8147 = vst [vmem:[#allocation53_spill] sm:$0xff] %v7016_v61  ;;  %v7018_v27 = vpop.f32.mrb[61].mxu0 }
 0x76f   : > { %8148 = vst [vmem:[#allocation54_spill] sm:$0xff] %v7018_v27  ;;  %v7020_v44 = vpop.f32.mrb[62].mxu0 }
 0x770   : > { %8149 = vst [vmem:[#allocation55_spill] sm:$0xff] %v7020_v44  ;;  %v7022_v18 = vpop.f32.mrb[63].mxu0 }
 0x771   : > { %8150 = vst [vmem:[#allocation56_spill] sm:$0xff] %v7022_v18 }
 0x775   : > { %v7024_v43 = vpop.f32.mrb[64].mxu0 }
 0x776   : > { %2290 = vmax.xlane.f32.xlu0 %v7024_v43  ;;  %v2223_v46 = vpop.f32.mrb[65].mxu0 }
 0x777   : > { %v7027_v62 = vpop.f32.mrb[66].mxu0 }
 0x778   : > { %v2226_v17 = vpop.f32.mrb[67].mxu0 }
 0x779   : > { %2288 = vmax.xlane.f32.xlu1 %v2226_v17 }
 0x77a   : > { %2286 = vmax.xlane.f32.xlu0 %v2223_v46 }
 0x77d   : > { %v7029_v5 = vpop.f32.mrb[68].mxu0 }
 0x77e   : > { %2292 = vmax.xlane.f32.xlu0 %v7027_v62  ;;  %2298 = vmax.xlane.f32.xlu1 %v7029_v5  ;;  %v7033_v61 = vpop.f32.mrb[69].mxu0 }
 0x77f   : > { %v7035_v44 = vpop.f32.mrb[70].mxu0 }
 0x780   : > { %v7037_v18 = vpop.f32.mrb[71].mxu0 }
 0x782   : > { %2294 = vmax.xlane.f32.xlu1 %v7033_v61  ;;  %2296 = vmax.xlane.f32.xlu0 %v7037_v18 }
 0x785   : > { %v7041_v27 = vpop.f32.mrb[72].mxu0 }
 0x786   : > { %2300 = vmax.xlane.f32.xlu1 %v7035_v44  ;;  %2306 = vmax.xlane.f32.xlu0 %v7041_v27  ;;  %v7045_v33 = vpop.f32.mrb[73].mxu0 }
 0x787   : > { %v7047_v7 = vpop.f32.mrb[74].mxu0 }
 0x788   : > { %v7049_v21 = vpop.f32.mrb[75].mxu0 }
 0x78a   : > { %2302 = vmax.xlane.f32.xlu1 %v7045_v33 }
 0x78d   : > { %v7052_v58 = vpop.f32.mrb[76].mxu0 }
 0x78e   : > { %2308 = vmax.xlane.f32.xlu1 %v7047_v7  ;;  %v7055_v42 = vpop.f32.mrb[77].mxu0 }
 0x78f   : > { %2310 = vmax.xlane.f32.xlu0 %v7055_v42  ;;  %v7058_v10 = vpop.f32.mrb[78].mxu0 }
 0x790   : > { %v7060_v20 = vpop.f32.mrb[79].mxu0 }
 0x792   : > { %2304 = vmax.xlane.f32.xlu1 %v7049_v21 }
 0x796   : > { %2314 = vmax.xlane.f32.xlu1 %v7052_v58 }
 0x79a   : > { %2316 = vmax.xlane.f32.xlu1 %v7058_v10 }
 0x7a5   : > { %2593 = vrot.lane.b32.xlu0 %v6526_v1, %s5892_s10 }
 0x7ab   : > { %2591 = vrot.lane.b32.xlu1 %v6512_v11, %s5892_s10 }
 0x7af   : > { %2569 = vrot.lane.b32.xlu1 %v6433_v32, %s5892_s10  ;;  %v7108_v32 = vpop.permute.xlu1 %2587 }
 0x7b3   : > { %2573 = vrot.lane.b32.xlu1 %v6485_v29, %s5892_s10 }
 0x7b7   : > { %2577 = vrot.lane.b32.xlu1 %v6524_v14, %s5892_s10 }
 0x7bb   : > { %2581 = vrot.lane.b32.xlu1 %v6548_v38, %s5892_s10 }
 0x7bf   : > { %2866 = vrot.lane.b32.xlu1 %v6424_v34, %s5892_s10 }
 0x7c3   : > { %2874 = vrot.lane.b32.xlu1 %v6475_v9, %s5892_s10 }
 0x7c4   : > { %2312 = vmax.xlane.f32.xlu0 %v7060_v20 }
 0x7da   : > { %2595 = vrot.lane.b32.xlu0 %v6538_v26, %s5892_s10 }
 0x7de   : > { %2597 = vrot.lane.b32.xlu0 %v6550_v39, %s5892_s10 }
 0x7e2   : > { %2567 = vrot.lane.b32.xlu0 %v6408_v19, %s5892_s10  ;;  %v7100_v19 = vpop.permute.xlu0 %2585 }
 0x7e6   : > { %2571 = vrot.lane.b32.xlu0 %v6459_v13, %s5892_s10  ;;  %v7106_v34 = vpop.permute.xlu0 %2589 }
 0x7e7   : > { %1902 = vadd.xlane.f32.xlu1 %v6902_v6 }
 0x7ea   : > { %2575 = vrot.lane.b32.xlu0 %v6509_v25, %s5892_s10 }
 0x7eb   : > { %1906 = vadd.xlane.f32.xlu1 %v6911_v47 }
 0x7ee   : > { %2579 = vrot.lane.b32.xlu0 %v6536_v23, %s5892_s10 }
 0x7f2   : > { %2864 = vrot.lane.b32.xlu0 %v6427_v56, %s5892_s10 }
 0x7f6   : > { %2868 = vrot.lane.b32.xlu0 %v6453_v53, %s5892_s10 }
 0x7fa   : > { %2870 = vrot.lane.b32.xlu0 %v6449_v4, %s5892_s10 }
 0x7fe   : > { %2872 = vrot.lane.b32.xlu0 %v6479_v41, %s5892_s10 }
 0x802   : > { %2876 = vrot.lane.b32.xlu0 %v6503_v3, %s5892_s10 }
 0x803   : > { %v2291_v13 = vpop.xlane.xlu0 %2290 }
 0x804   : > { %v2320_v29 = vsub.f32 %v7024_v43, %v2291_v13 }
 0x806   : > { %v2289_v56 = vpop.xlane.xlu1 %2288  ;;  %2878 = vrot.lane.b32.xlu0 %v6499_v57, %s5892_s10  ;;  %v2338_v1 = vmul.f32 1.442695, %v2320_v29 }
 0x807   : > { %v2319_v53 = vsub.f32 %v2226_v17, %v2289_v56  ;;  %v2287_v9 = vpop.xlane.xlu0 %2286 }
 0x808   : > { %v2318_v4 = vsub.f32 %v2223_v46, %v2287_v9 }
 0x809   : > { %v2336_v25 = vmul.f32 1.442695, %v2319_v53 }
 0x80a   : > { %v2334_v11 = vmul.f32 1.442695, %v2318_v4 }
 0x80b   : > { %5356 = vpow2.f32 %v2336_v25  ;;  %v2299_v41 = vpop.xlane.xlu1 %2298  ;;  %v2293_v14 = vpop.xlane.xlu0 %2292 }
 0x80c   : > { %5358 = vpow2.f32 %v2334_v11  ;;  %v2321_v23 = vsub.f32 %v7027_v62, %v2293_v14  ;;  %v2324_v26 = vsub.f32 %v7029_v5, %v2299_v41 }
 0x80d   : > { %5360 = vpow2.f32 %v2338_v1 }
 0x80e   : > { %v2340_v3 = vmul.f32 1.442695, %v2321_v23  ;;  %v2346_v43 = vmul.f32 1.442695, %v2324_v26  ;;  %v2624_v23 = vsel %vm1224_vm0, %v6988_v45, 0 }
 0x80f   : > { %v2295_v38 = vpop.xlane.xlu1 %2294  ;;  %v2297_v39 = vpop.xlane.xlu0 %2296 }
 0x810   : > { %v2322_v57 = vsub.f32 %v7033_v61, %v2295_v38  ;;  %v2323_v6 = vsub.f32 %v7037_v18, %v2297_v39  ;;  %5362 = vpow2.f32 %v2340_v3 }
 0x812   : > { %v2342_v47 = vmul.f32 1.442695, %v2322_v57  ;;  %v2344_v17 = vmul.f32 1.442695, %v2323_v6 }
 0x813   : > { %v2301_v46 = vpop.xlane.xlu1 %2300  ;;  %v2307_v9 = vpop.xlane.xlu0 %2306 }
 0x814   : > { %5364 = vpow2.f32 %v2342_v47  ;;  %v2325_v13 = vsub.f32 %v7035_v44, %v2301_v46  ;;  %v2328_v41 = vsub.f32 %v7041_v27, %v2307_v9 }
 0x815   : > { %v7120_v56 = vpop.eup %5356  ;;  %5366 = vpow2.f32 %v2344_v17 }
 0x816   : > { %v7122_v62 = vpop.eup %5358  ;;  %v2348_v5 = vmul.f32 1.442695, %v2325_v13  ;;  %5368 = vpow2.f32 %v2346_v43  ;;  %v2354_v39 = vmul.f32 1.442695, %v2328_v41 }
 0x817   : > { %v2303_v53 = vpop.xlane.xlu1 %2302  ;;  %v2398_v61 = vpack.c.bf16 %v7120_v56, %v7122_v62  ;;  %v7126_v18 = vpop.eup %5360 }
 0x818   : > { %5370 = vpow2.f32 %v2348_v5  ;;  %v2326_v29 = vsub.f32 %v7045_v33, %v2303_v53  ;;  %v2633_v53 = vsel %vm1224_vm0, %v7106_v34, 0 }
 0x819   : > { %4921 = vmatprep.mubr.bf16.mxu1 %v2398_v61 }
 0x81a   : > { %v7129_v4 = vpop.eup %5362  ;;  %v2350_v1 = vmul.f32 1.442695, %v2326_v29 }
 0x81b   : > { %v2309_v44 = vpop.xlane.xlu1 %2308  ;;  %v2399_v11 = vpack.c.bf16 %v7129_v4, %v7126_v18 }
 0x81c   : > { %v2329_v25 = vsub.f32 %v7047_v7, %v2309_v44  ;;  %5372 = vpow2.f32 %v2350_v1 }
 0x81d   : > { %4922 = vmatmul.mubr.bf16.vlgmr.msra.gmra.mrb[48].mxu1 %v2399_v11 }
 0x81e   : > { %v7135_v14 = vpop.eup %5364  ;;  %v2356_v33 = vmul.f32 1.442695, %v2329_v25  ;;  %4938 = vmatpush3.bf16.xpose.msra.mxu1 %v2624_v23 }
 0x81f   : > { %v7139_v3 = vpop.eup %5366  ;;  %v2305_v26 = vpop.xlane.xlu1 %2304  ;;  %5074 = vmatprep.subr.msk.bf16.mxu1 %vm1224_vm0, %v7100_v19 }
 0x820   : > { %v2327_v7 = vsub.f32 %v7049_v21, %v2305_v26  ;;  %v2400_v27 = vpack.c.bf16 %v7139_v3, %v7135_v14  ;;  %v7146_v38 = vpop.eup %5368  ;;  %5374 = vpow2.f32 %v2356_v33  ;;  %v2627_v21 = vsel %vm1224_vm0, %v7100_v19, 0 }
 0x822   : > { %v7148_v57 = vpop.eup %5370  ;;  %v2352_v45 = vmul.f32 1.442695, %v2327_v7  ;;  %4925 = vmatprep.mubr.bf16.mxu1 %v2400_v27 }
 0x823   : > { %v2401_v6 = vpack.c.bf16 %v7148_v57, %v7146_v38  ;;  %v2315_v47 = vpop.xlane.xlu1 %2314 }
 0x824   : > { %5376 = vpow2.f32 %v2352_v45 }
 0x825   : > { %5378 = vpow2.f32 %v2354_v39  ;;  %1900 = vadd.xlane.f32.xlu0 %v6904_v0  ;;  %4926 = vmatmul.mubr.bf16.gmra.mrb[52].mxu1 %v2401_v6  ;;  %v2630_v0 = vsel %vm1224_vm0, %v7108_v32, 0 }
 0x826   : > { %4940 = vmatpush3.bf16.xpose.msra.mxu1 %v2627_v21  ;;  %v7158_v17 = vpop.eup %5372 }
 0x827   : > { %5075 = vmatprep.subr.msk.bf16.mxu1 %vm1224_vm0, %v7108_v32  ;;  %v2317_v5 = vpop.xlane.xlu1 %2316  ;;  %v2311_v32 = vpop.xlane.xlu0 %2310 }
 0x828   : > { %v2330_v25 = vsub.f32 %v7055_v42, %v2311_v32  ;;  %v2333_v11 = vsub.f32 %v7058_v10, %v2317_v5 }
 0x829   : > { %1904 = vadd.xlane.f32.xlu0 %v6908_v48 }
 0x82a   : > { %v7160_v43 = vpop.eup %5374  ;;  %v2358_v41 = vmul.f32 1.442695, %v2330_v25  ;;  %v2364_v1 = vmul.f32 1.442695, %v2333_v11 }
 0x82b   : > { %v2592_v61 = vpop.permute.xlu1 %2591  ;;  %v2594_v29 = vpop.permute.xlu0 %2593 }
 0x82c   : > { %v2636_v9 = vsel %vm1224_vm0, %v2592_v61, 0  ;;  %v2639_v44 = vsel %vm1224_vm0, %v2594_v29, 0  ;;  %5380 = vpow2.f32 %v2358_v41 }
 0x82d   : > { %5382 = vpow2.f32 %v2364_v1 }
 0x82e   : > { %v7162_v46 = vpop.eup %5376  ;;  %4942 = vmatpush3.bf16.xpose.msra.mxu1 %v2630_v0 }
 0x82f   : > { %v7166_v13 = vpop.eup %5378  ;;  %v2402_v19 = vpack.c.bf16 %v7162_v46, %v7158_v17  ;;  %5076 = vmatprep.subr.msk.bf16.mxu1 %vm1224_vm0, %v7106_v34  ;;  %v2332_v34 = vsub.f32 %v7052_v58, %v2315_v47  ;;  %v2570_v42 = vpop.permute.xlu1 %2569 }
 0x830   : > { %v2403_v48 = vpack.c.bf16 %v7160_v43, %v7166_v13 }
 0x831   : > { %4929 = vmatprep.mubr.bf16.mxu1 %v2402_v19  ;;  %v2362_v26 = vmul.f32 1.442695, %v2332_v34 }
 0x832   : > { %4930 = vmatmul.mubr.bf16.gmra.mrb[56].mxu1 %v2403_v48 }
 0x833   : > { %v2574_v58 = vpop.permute.xlu1 %2573 }
 0x836   : > { %4944 = vmatpush3.bf16.xpose.msra.mxu1 %v2633_v53  ;;  %v7187_v6 = vpop.eup %5380 }
 0x837   : > { %5077 = vmatprep.subr.msk.bf16.mxu1 %vm1224_vm0, %v2592_v61  ;;  %v7190_v21 = vpop.eup %5382  ;;  %v2578_v53 = vpop.permute.xlu1 %2577 }
 0x83b   : > { %v2582_v32 = vpop.permute.xlu1 %2581 }
 0x83e   : > { %4946 = vmatpush3.bf16.xpose.msra.mxu1 %v2636_v9 }
 0x83f   : > { %5078 = vmatprep.subr.msk.bf16.mxu1 %vm1224_vm0, %v2594_v29 }
 0x846   : > { %4948 = vmatpush3.bf16.xpose.msra.mxu1 %v2639_v44  ;;  %v2867_v44 = vpop.permute.xlu1 %2866 }
 0x84a   : > { %v2875_v41 = vpop.permute.xlu1 %2874 }
 0x851   : > { %v2313_v23 = vpop.xlane.xlu0 %2312 }
 0x852   : > { %v2331_v33 = vsub.f32 %v7060_v20, %v2313_v23  ;;  %v8151_v23 = vmov 0  }
 0x854   : > { %v2360_v7 = vmul.f32 1.442695, %v2331_v33 }
 0x855   : > { %v2596_v27 = vpop.permute.xlu0 %2595 }
 0x856   : > { %5384 = vpow2.f32 %v2360_v7  ;;  %5079 = vmatprep.subr.msk.bf16.mxu1 %vm1224_vm0, %v2596_v27  ;;  %v2642_v39 = vsel %vm1224_vm0, %v2596_v27, 0 }
 0x857   : > { %5386 = vpow2.f32 %v2362_v26  ;;  %4950 = vmatpush3.bf16.xpose.msra.mxu1 %v2642_v39 }
 0x859   : > { %v2598_v10 = vpop.permute.xlu0 %2597 }
 0x85a   : > { %5080 = vmatprep.subr.msk.bf16.mxu1 %vm1224_vm0, %v2598_v10  ;;  %v2645_v20 = vsel %vm1224_vm0, %v2598_v10, 0 }
 0x85d   : > { %v2568_v45 = vpop.permute.xlu0 %2567 }
 0x85f   : > { %4952 = vmatpush3.bf16.xpose.msra.mxu1 %v2645_v20 }
 0x860   : > { %v7192_v47 = vpop.eup %5384 }
 0x861   : > { %v7194_v0 = vpop.eup %5386  ;;  %v2572_v19 = vpop.permute.xlu0 %2571  ;;  %v2404_v48 = vpack.c.bf16 %v7192_v47, %v7187_v6 }
 0x862   : > { %v2405_v5 = vpack.c.bf16 %v7190_v21, %v7194_v0 }
 0x863   : > { %4933 = vmatprep.mubr.bf16.mxu1 %v2404_v48 }
 0x864   : > { %4934 = vmatmul.mubr.bf16.gmra.mrb[60].mxu1 %v2405_v5 }
 0x865   : > { %4953 = vmatprep.mubr.msk.bf16.mxu1 %vm1224_vm0, %v2568_v45  ;;  %v2576_v61 = vpop.permute.xlu0 %2575 }
 0x869   : > { %v2580_v9 = vpop.permute.xlu0 %2579 }
 0x86c   : > { %4954 = vmatmul.mubr.msk.bf16.vlgmr.msra.gmra.mrb[64].mxu1 %vm1224_vm0, %v2570_v42 }
 0x86d   : > { %4957 = vmatprep.mubr.msk.bf16.mxu1 %vm1224_vm0, %v2572_v19  ;;  %v2865_v29 = vpop.permute.xlu0 %2864 }
 0x86e   : > { %4969 = vmatprep.subr.bf16.mxu0 %v2865_v29 }
 0x86f   : > { %4970 = vmatpush3.bf16.msra.mxu0 %v2865_v29 }
 0x870   : > { %4971 = vmatprep.subr.bf16.mxu0 %v2867_v44 }
 0x871   : > { %v2869_v25 = vpop.permute.xlu0 %2868 }
 0x873   : > { %4972 = vmatpush3.bf16.msra.mxu0 %v2867_v44 }
 0x874   : > { %4958 = vmatmul.mubr.msk.bf16.gmra.mrb[68].mxu1 %vm1224_vm0, %v2574_v58  ;;  %4973 = vmatprep.subr.bf16.mxu0 %v2869_v25  ;;  %v1903_v26 = vpop.xlane.xlu1 %1902 }
 0x875   : > { %4961 = vmatprep.mubr.msk.bf16.mxu1 %vm1224_vm0, %v2576_v61  ;;  %v2871_v11 = vpop.permute.xlu0 %2870  ;;  %5388 = vrcp.f32 %v1903_v26 }
 0x877   : > { %4974 = vmatpush3.bf16.msra.mxu0 %v2869_v25 }
 0x878   : > { %4975 = vmatprep.subr.bf16.mxu0 %v2871_v11  ;;  %v1907_v7 = vpop.xlane.xlu1 %1906 }
 0x879   : > { %v2873_v34 = vpop.permute.xlu0 %2872 }
 0x87b   : > { %4976 = vmatpush3.bf16.msra.mxu0 %v2871_v11 }
 0x87c   : > { %4962 = vmatmul.mubr.msk.bf16.gmra.mrb[72].mxu1 %vm1224_vm0, %v2578_v53  ;;  %4977 = vmatprep.subr.bf16.mxu0 %v2873_v34 }
 0x87d   : > { %4965 = vmatprep.mubr.msk.bf16.mxu1 %vm1224_vm0, %v2580_v9  ;;  %v2877_v1 = vpop.permute.xlu0 %2876 }
 0x87f   : > { %4978 = vmatpush3.bf16.msra.mxu0 %v2873_v34  ;;  %v5389_v42 = vpop.eup %5388 }
 0x880   : > { %4979 = vmatprep.subr.bf16.mxu0 %v2875_v41  ;;  %v7213_v45 = vmul.f32 %v5389_v42, %v6998_v49 }
 0x881   : > { %v2879_v33 = vpop.permute.xlu0 %2878 }
 0x883   : > { %4980 = vmatpush3.bf16.msra.mxu0 %v2875_v41 }
 0x884   : > { %4966 = vmatmul.mubr.msk.bf16.gmra.mrb[76].mxu1 %vm1224_vm0, %v2582_v32  ;;  %4981 = vmatprep.subr.bf16.mxu0 %v2877_v1 }
 0x885   : > { %3717 = vmatprep.mubr.bf16.mxu1 %v8151_v23 }
 0x887   : > { %4982 = vmatpush3.bf16.msra.mxu0 %v2877_v1 }
 0x888   : > { %4983 = vmatprep.subr.bf16.mxu0 %v2879_v33 }
 0x88b   : > { %4984 = vmatpush3.bf16.msra.mxu0 %v2879_v33 }
 0x8b2   : > { %v1901_v27 = vpop.xlane.xlu0 %1900 }
 0x8b3   : > { %5390 = vrcp.f32 %v1901_v27 }
 0x8b4   : > { %5392 = vrcp.f32 %v1907_v7 }
 0x8b6   : > { %v1905_v39 = vpop.xlane.xlu0 %1904 }
 0x8b7   : > { %5394 = vrcp.f32 %v1905_v39 }
 0x8bd   : > { %v5391_v10 = vpop.eup %5390 }
 0x8be   : > { %v7210_v58 = vmul.f32 %v5391_v10, %v6994_v55  ;;  %v5393_v20 = vpop.eup %5392 }
 0x8bf   : > { %v7221_v53 = vmul.f32 %v5393_v20, %v6996_v60 }
 0x8c1   : > { %v5395_v48 = vpop.eup %5394 }
 0x8c2   : > { %v7218_v5 = vmul.f32 %v5395_v48, %v6992_v16 }
 0x8f0   : > { %v7225_v32 = vpop.f32.mrb[48].mxu1 }
 0x8f1   : > { %v7227_v55 = vpop.f32.mrb[49].mxu1 }
 0x8f2   : > { %v7229_v49 = vpop.f32.mrb[50].mxu1 }
 0x8f3   : > { %v7231_v9 = vpop.f32.mrb[51].mxu1 }
 0x8f8   : > { %v7233_v29 = vpop.f32.mrb[52].mxu1 }
 0x8f9   : > { %v7235_v44 = vpop.f32.mrb[53].mxu1 }
 0x8fa   : > { %v7237_v16 = vpop.f32.mrb[54].mxu1 }
 0x8fb   : > { %v7239_v25 = vpop.f32.mrb[55].mxu1 }
 0x905   : > { %v7241_v60 = vpop.f32.mrb[56].mxu1 }
 0x906   : > { %v7243_v11 = vpop.f32.mrb[57].mxu1 }
 0x907   : > { %v7245_v34 = vpop.f32.mrb[58].mxu1 }
 0x908   : > { %v7247_v41 = vpop.f32.mrb[59].mxu1 }
 0x937   : > { %v7249_v1 = vpop.f32.mrb[60].mxu1 }
 0x938   : > { %8152 = vst [vmem:[#allocation57_spill] sm:$0xff] %v7249_v1  ;;  %v7251_v33 = vpop.f32.mrb[61].mxu1 }
 0x939   : > { %v7253_v26 = vpop.f32.mrb[62].mxu1 }
 0x93a   : > { %8153 = vst [vmem:[#allocation58_spill] sm:$0xff] %v7253_v26  ;;  %v7255_v7 = vpop.f32.mrb[63].mxu1 }
 0x93f   : > { %v7257_v27 = vpop.f32.mrb[64].mxu1 }
 0x940   : > { %2748 = vmax.xlane.f32.xlu1 %v7257_v27  ;;  %v7260_v39 = vpop.f32.mrb[65].mxu1 }
 0x941   : > { %2744 = vmax.xlane.f32.xlu0 %v7260_v39  ;;  %v7263_v42 = vpop.f32.mrb[66].mxu1 }
 0x942   : > { %v7265_v10 = vpop.f32.mrb[67].mxu1 }
 0x944   : > { %2368 = vadd.xlane.f32.xlu1 %v7120_v56 }
 0x945   : > { %2366 = vadd.xlane.f32.xlu0 %v7122_v62 }
 0x947   : > { %v7269_v20 = vpop.f32.mrb[68].mxu1 }
 0x948   : > { %2372 = vadd.xlane.f32.xlu1 %v7129_v4  ;;  %v7272_v48 = vpop.f32.mrb[69].mxu1 }
 0x949   : > { %2370 = vadd.xlane.f32.xlu0 %v7126_v18  ;;  %v7275_v61 = vpop.f32.mrb[70].mxu1 }
 0x94a   : > { %v7277_v19 = vpop.f32.mrb[71].mxu1 }
 0x94c   : > { %2750 = vmax.xlane.f32.xlu1 %v7263_v42 }
 0x94d   : > { %1908 = vadd.xlane.f32.xlu0 %v6917_v59 }
 0x94f   : > { %v7281_v23 = vpop.f32.mrb[72].mxu1 }
 0x950   : > { %2746 = vmax.xlane.f32.xlu1 %v7265_v10  ;;  %v7284_v56 = vpop.f32.mrb[73].mxu1 }
 0x951   : > { %2752 = vmax.xlane.f32.xlu0 %v7272_v48  ;;  %v7287_v62 = vpop.f32.mrb[74].mxu1 }
 0x952   : > { %v7289_v4 = vpop.f32.mrb[75].mxu1 }
 0x954   : > { %1910 = vadd.xlane.f32.xlu1 %v6921_v31  ;;  %v8154_v31 = vld [vmem:[#allocation20_spill] sm:$0xff] }
 0x955   : > { %1912 = vadd.xlane.f32.xlu0 %v6928_v30 }
 0x957   : > { %v7293_v18 = vpop.f32.mrb[76].mxu1 }
 0x958   : > { %2756 = vmax.xlane.f32.xlu1 %v7269_v20  ;;  %v7296_v59 = vpop.f32.mrb[77].mxu1 }
 0x959   : > { %2764 = vmax.xlane.f32.xlu0 %v7281_v23  ;;  %v7299_v26 = vpop.f32.mrb[78].mxu1 }
 0x95a   : > { %v7301_v1 = vpop.f32.mrb[79].mxu1 }
 0x95c   : > { %2758 = vmax.xlane.f32.xlu1 %v7275_v61 }
 0x95d   : > { %2760 = vmax.xlane.f32.xlu0 %v7284_v56 }
 0x960   : > { %2754 = vmax.xlane.f32.xlu1 %v7277_v19 }
 0x961   : > { %2766 = vmax.xlane.f32.xlu0 %v7287_v62 }
 0x964   : > { %1914 = vadd.xlane.f32.xlu1 %v6930_v28 }
 0x965   : > { %2374 = vadd.xlane.f32.xlu0 %v7135_v14 }
 0x968   : > { %2376 = vadd.xlane.f32.xlu1 %v7139_v3 }
 0x969   : > { %2378 = vadd.xlane.f32.xlu0 %v7146_v38 }
 0x96c   : > { %2380 = vadd.xlane.f32.xlu1 %v7148_v57 }
 0x96d   : > { %2772 = vmax.xlane.f32.xlu0 %v7293_v18 }
 0x970   : > { %2762 = vmax.xlane.f32.xlu1 %v7289_v4 }
 0x971   : > { %2768 = vmax.xlane.f32.xlu0 %v7296_v59 }
 0x974   : > { %1918 = vadd.xlane.f32.xlu1 %v6942_v8 }
 0x975   : > { %1916 = vadd.xlane.f32.xlu0 %v6938_v52 }
 0x978   : > { %1922 = vadd.xlane.f32.xlu1 %v6940_v63 }
 0x979   : > { %1920 = vadd.xlane.f32.xlu0 %v6946_v24 }
 0x97c   : > { %2774 = vmax.xlane.f32.xlu1 %v7299_v26 }
 0x97d   : > { %2382 = vadd.xlane.f32.xlu0 %v7158_v17 }
 0x980   : > { %2770 = vmax.xlane.f32.xlu1 %v7301_v1 }
 0x981   : > { %2386 = vadd.xlane.f32.xlu0 %v7166_v13 }
 0x984   : > { %2384 = vadd.xlane.f32.xlu1 %v7162_v46 }
 0x985   : > { %1924 = vadd.xlane.f32.xlu0 %v6967_v51 }
 0x988   : > { %2388 = vadd.xlane.f32.xlu1 %v7160_v43 }
 0x989   : > { %1928 = vadd.xlane.f32.xlu0 %v6974_v54 }
 0x98c   : > { %1926 = vadd.xlane.f32.xlu1 %v6972_v50 }
 0x98d   : > { %2390 = vadd.xlane.f32.xlu0 %v7187_v6 }
 0x990   : > { %1930 = vadd.xlane.f32.xlu1 %v6970_v22 }
 0x991   : > { %2394 = vadd.xlane.f32.xlu0 %v7194_v0 }
 0x994   : > { %2392 = vadd.xlane.f32.xlu1 %v7192_v47 }
 0x995   : > { %1450 = vadd.xlane.f32.xlu0 %v6674_v36  ;;  %v8155_v36 = vpack.c.bf16 %v7213_v45, %v7210_v58 }
 0x998   : > { %2396 = vadd.xlane.f32.xlu1 %v7190_v21 }
 0x999   : > { %1454 = vadd.xlane.f32.xlu0 %v6678_v15  ;;  %v8156_v15 = vpack.c.bf16 %v7221_v53, %v7218_v5 }
 0x99c   : > { %1452 = vadd.xlane.f32.xlu1 %v6676_v37 }
 0x99d   : > { %1458 = vadd.xlane.f32.xlu0 %v6704_v40 }
 0x9a0   : > { %1456 = vadd.xlane.f32.xlu1 %v6672_v35 }
 0x9a1   : > { %1462 = vadd.xlane.f32.xlu0 %v6713_v12 }
 0x9a4   : > { %1460 = vadd.xlane.f32.xlu1 %v6710_v2  ;;  %v8157_v2 = vld [vmem:[#allocation21_spill] sm:$0xff] }
 0x9a8   : > { %1464 = vadd.xlane.f32.xlu1 %v8154_v31 }
 0x9b7   : > { %3033 = vrot.lane.b32.xlu0 %v8155_v36, %s5892_s10 }
 0x9b9   : > { %3035 = vrot.lane.b32.xlu1 %v8156_v15, %s5892_s10 }
 0x9cd   : > { %v2749_v37 = vpop.xlane.xlu1 %2748 }
 0x9ce   : > { %v2745_v40 = vpop.xlane.xlu0 %2744  ;;  %v2778_v51 = vsub.f32 %v7257_v27, %v2749_v37 }
 0x9cf   : > { %v2776_v52 = vsub.f32 %v7260_v39, %v2745_v40 }
 0x9d0   : > { %v2796_v17 = vmul.f32 1.442695, %v2778_v51 }
 0x9d1   : > { %v2369_v30 = vpop.xlane.xlu1 %2368  ;;  %v2792_v22 = vmul.f32 1.442695, %v2776_v52 }
 0x9d2   : > { %v2367_v35 = vpop.xlane.xlu0 %2366  ;;  %5396 = vrcp.f32 %v2369_v30 }
 0x9d3   : > { %5398 = vrcp.f32 %v2367_v35 }
 0x9d5   : > { %v2373_v12 = vpop.xlane.xlu1 %2372 }
 0x9d6   : > { %5400 = vrcp.f32 %v2373_v12  ;;  %1468 = vadd.xlane.f32.xlu0 %v8157_v2  ;;  %v2371_v28 = vpop.xlane.xlu0 %2370 }
 0x9d7   : > { %5402 = vrcp.f32 %v2371_v28 }
 0x9d8   : > { %5404 = vpow2.f32 %v2792_v22 }
 0x9d9   : > { %v2751_v63 = vpop.xlane.xlu1 %2750 }
 0x9da   : > { %v2779_v8 = vsub.f32 %v7263_v42, %v2751_v63  ;;  %v1909_v24 = vpop.xlane.xlu0 %1908 }
 0x9db   : > { %5406 = vrcp.f32 %v1909_v24 }
 0x9dc   : > { %v2798_v50 = vmul.f32 1.442695, %v2779_v8  ;;  %v5397_v14 = vpop.eup %5396  ;;  %v8159_v8 = vld [vmem:[#allocation48_spill] sm:$0xff] }
 0x9dd   : > { %v2747_v54 = vpop.xlane.xlu1 %2746  ;;  %v5399_v57 = vpop.eup %5398  ;;  %v2544_v43 = vmul.f32 %v5397_v14, %v7231_v9 }
 0x9de   : > { %v2777_v3 = vsub.f32 %v7265_v10, %v2747_v54  ;;  %v2753_v38 = vpop.xlane.xlu0 %2752  ;;  %v2543_v6 = vmul.f32 %v5399_v57, %v7227_v55  ;;  %5408 = vpow2.f32 %v2798_v50 }
 0x9df   : > { %v2780_v39 = vsub.f32 %v7272_v48, %v2753_v38 }
 0x9e0   : > { %v5401_v46 = vpop.eup %5400  ;;  %v2794_v13 = vmul.f32 1.442695, %v2777_v3  ;;  %v2559_v58 = vpack.c.bf16 %v2544_v43, %v2543_v6 }
 0x9e1   : > { %v5403_v21 = vpop.eup %5402  ;;  %v1911_v47 = vpop.xlane.xlu1 %1910  ;;  %v2546_v0 = vmul.f32 %v5401_v46, %v7229_v49 }
 0x9e2   : > { %5410 = vpow2.f32 %v2794_v13  ;;  %v1913_v45 = vpop.xlane.xlu0 %1912  ;;  %v2545_v5 = vmul.f32 %v5403_v21, %v7225_v32  ;;  %3057 = vrot.lane.b32.xlu1 %v2559_v58, %s5891_s18  ;;  %v7361_v55 = vpop.eup %5404  ;;  %v2800_v32 = vmul.f32 1.442695, %v2780_v39 }
 0x9e3   : > { %5412 = vpow2.f32 %v2796_v17 }
 0x9e4   : > { %5414 = vrcp.f32 %v1911_v47  ;;  %v2560_v53 = vpack.c.bf16 %v2546_v0, %v2545_v5 }
 0x9e5   : > { %v2757_v9 = vpop.xlane.xlu1 %2756  ;;  %v5407_v49 = vpop.eup %5406  ;;  %5416 = vpow2.f32 %v2800_v32 }
 0x9e6   : > { %v2765_v27 = vpop.xlane.xlu0 %2764  ;;  %3059 = vrot.lane.b32.xlu1 %v2560_v53, %s5891_s18  ;;  %v2782_v15 = vsub.f32 %v7269_v20, %v2757_v9  ;;  %v8158_v20 = vld [vmem:[#allocation46_spill] sm:$0xff]  ;;  %5418 = vrcp.f32 %v1913_v45 }
 0x9e7   : > { %v7377_v63 = vmul.f32 %v5407_v49, %v8158_v20  ;;  %v2786_v6 = vsub.f32 %v7281_v23, %v2765_v27  ;;  %v8160_v23 = vld [vmem:[#allocation45_spill] sm:$0xff]  ;;  %v8161_v49 = vld [vmem:[#allocation47_spill] sm:$0xff] }
 0x9e8   : > { %v7364_v36 = vpop.eup %5408  ;;  %v2804_v52 = vmul.f32 1.442695, %v2782_v15 }
 0x9e9   : > { %v2759_v42 = vpop.xlane.xlu1 %2758 }
 0x9ea   : > { %v2783_v10 = vsub.f32 %v7275_v61, %v2759_v42  ;;  %v2761_v31 = vpop.xlane.xlu0 %2760  ;;  %v2812_v42 = vmul.f32 1.442695, %v2786_v6 }
 0x9eb   : > { %v2784_v3 = vsub.f32 %v7284_v56, %v2761_v31 }
 0x9ec   : > { %v7367_v37 = vpop.eup %5410  ;;  %v2806_v30 = vmul.f32 1.442695, %v2783_v10 }
 0x9ed   : > { %v7369_v40 = vpop.eup %5412  ;;  %v2755_v48 = vpop.xlane.xlu1 %2754  ;;  %v2856_v35 = vpack.c.bf16 %v7367_v37, %v7361_v55  ;;  %v2808_v47 = vmul.f32 1.442695, %v2784_v3 }
 0x9ee   : > { %v5415_v12 = vpop.eup %5414  ;;  %v2781_v2 = vsub.f32 %v7277_v19, %v2755_v48  ;;  %v2767_v28 = vpop.xlane.xlu0 %2766  ;;  %v2857_v61 = vpack.c.bf16 %v7364_v36, %v7369_v40  ;;  %5420 = vpow2.f32 %v2806_v30 }
 0x9ef   : > { %4985 = vmatprep.mubr.bf16.mxu0 %v2856_v35  ;;  %v7380_v24 = vmul.f32 %v5415_v12, %v8159_v8  ;;  %v7385_v38 = vpop.eup %5416  ;;  %v2787_v57 = vsub.f32 %v7287_v62, %v2767_v28 }
 0x9f0   : > { %v2802_v51 = vmul.f32 1.442695, %v2781_v2  ;;  %4986 = vmatmul.mubr.bf16.vlgmr.msra.gmra.mrb[80].mxu0 %v2857_v61  ;;  %v5419_v43 = vpop.eup %5418 }
 0x9f1   : > { %v1915_v22 = vpop.xlane.xlu1 %1914  ;;  %v2103_v19 = vpack.c.bf16 %v7380_v24, %v7377_v63  ;;  %v2814_v58 = vmul.f32 1.442695, %v2787_v57  ;;  %v2091_v27 = vmul.f32 %v5419_v43, %v8160_v23  ;;  %v8162_v57 = vld [vmem:[#allocation22_spill] sm:$0xff] }
 0x9f2   : > { %5422 = vpow2.f32 %v2802_v51  ;;  %v2375_v50 = vpop.xlane.xlu0 %2374 }
 0x9f3   : > { %5424 = vpow2.f32 %v2804_v52 }
 0x9f4   : > { %5426 = vrcp.f32 %v1915_v22 }
 0x9f5   : > { %5428 = vrcp.f32 %v2375_v50  ;;  %v2377_v54 = vpop.xlane.xlu1 %2376 }
 0x9f6   : > { %5430 = vrcp.f32 %v2377_v54  ;;  %v2379_v14 = vpop.xlane.xlu0 %2378 }
 0x9f7   : > { %5432 = vrcp.f32 %v2379_v14 }
 0x9f8   : > { %v7388_v13 = vpop.eup %5420 }
 0x9f9   : > { %v2381_v17 = vpop.xlane.xlu1 %2380 }
 0x9fa   : > { %5434 = vrcp.f32 %v2381_v17  ;;  %v2773_v46 = vpop.xlane.xlu0 %2772 }
 0x9fb   : > { %5436 = vpow2.f32 %v2808_v47  ;;  %v2790_v61 = vsub.f32 %v7293_v18, %v2773_v46 }
 0x9fc   : > { %v7391_v21 = vpop.eup %5422  ;;  %5438 = vpow2.f32 %v2814_v58 }
 0x9fd   : > { %v7393_v0 = vpop.eup %5424  ;;  %v2763_v56 = vpop.xlane.xlu1 %2762  ;;  %v2858_v45 = vpack.c.bf16 %v7391_v21, %v7385_v38  ;;  %v2820_v22 = vmul.f32 1.442695, %v2790_v61 }
 0x9fe   : > { %v5427_v5 = vpop.eup %5426  ;;  %v2785_v62 = vsub.f32 %v7289_v4, %v2763_v56  ;;  %v2769_v53 = vpop.xlane.xlu0 %2768  ;;  %v2859_v9 = vpack.c.bf16 %v7388_v13, %v7393_v0 }
 0x9ff   : > { %v5429_v39 = vpop.eup %5428  ;;  %4989 = vmatprep.mubr.bf16.mxu0 %v2858_v45  ;;  %v2092_v10 = vmul.f32 %v5427_v5, %v8161_v49  ;;  %v8163_v45 = vld [vmem:[#allocation52_spill] sm:$0xff] }
 0xa00   : > { %v5431_v31 = vpop.eup %5430  ;;  %v2810_v32 = vmul.f32 1.442695, %v2785_v62  ;;  %4990 = vmatmul.mubr.bf16.gmra.mrb[84].mxu0 %v2859_v9  ;;  %v2547_v4 = vmul.f32 %v5429_v39, %v7235_v44  ;;  %v8164_v9 = vld [vmem:[#allocation23_spill] sm:$0xff]  ;;  %v8165_v39 = vld [vmem:[#allocation50_spill] sm:$0xff] }
 0xa01   : > { %v1919_v15 = vpop.xlane.xlu1 %1918  ;;  %v2104_v30 = vpack.c.bf16 %v2092_v10, %v2091_v27  ;;  %v2548_v48 = vmul.f32 %v5431_v31, %v7239_v25  ;;  %v5433_v35 = vpop.eup %5432  ;;  %v2788_v25 = vsub.f32 %v7296_v59, %v2769_v53  ;;  %v8166_v27 = vld [vmem:[#allocation51_spill] sm:$0xff] }
 0xa02   : > { %5440 = vpow2.f32 %v2810_v32  ;;  %v1917_v12 = vpop.xlane.xlu0 %1916  ;;  %v7407_v20 = vmul.f32 %v5433_v35, %v7233_v29  ;;  %v8167_v32 = vld [vmem:[#allocation49_spill] sm:$0xff] }
 0xa03   : > { %5442 = vpow2.f32 %v2812_v42  ;;  %3039 = vrot.lane.b32.xlu0 %v2104_v30, %s5892_s10  ;;  %v2561_v2 = vpack.c.bf16 %v2548_v48, %v2547_v4  ;;  %v2816_v54 = vmul.f32 1.442695, %v2788_v25  ;;  %v8168_v30 = vld [vmem:[#allocation24_spill] sm:$0xff] }
 0xa04   : > { %v5435_v28 = vpop.eup %5434  ;;  %5444 = vrcp.f32 %v1919_v15 }
 0xa05   : > { %5446 = vrcp.f32 %v1917_v12  ;;  %v1923_v52 = vpop.xlane.xlu1 %1922  ;;  %v7410_v44 = vmul.f32 %v5435_v28, %v7237_v16  ;;  %v7416_v50 = vpop.eup %5436 }
 0xa06   : > { %5448 = vrcp.f32 %v1923_v52  ;;  %v1921_v8 = vpop.xlane.xlu0 %1920  ;;  %v7419_v16 = vpop.eup %5438 }
 0xa07   : > { %3061 = vrot.lane.b32.xlu0 %v2561_v2, %s5891_s18  ;;  %5450 = vrcp.f32 %v1921_v8  ;;  %v2562_v51 = vpack.c.bf16 %v7410_v44, %v7407_v20 }
 0xa08   : > { %5452 = vpow2.f32 %v2820_v22 }
 0xa09   : > { %v2775_v18 = vpop.xlane.xlu1 %2774  ;;  %5454 = vpow2.f32 %v2816_v54 }
 0xa0a   : > { %v2791_v29 = vsub.f32 %v7299_v26, %v2775_v18  ;;  %v2383_v14 = vpop.xlane.xlu0 %2382  ;;  %1466 = vadd.xlane.f32.xlu1 %v8162_v57 }
 0xa0b   : > { %5456 = vrcp.f32 %v2383_v14 }
 0xa0c   : > { %v7421_v3 = vpop.eup %5440  ;;  %v2822_v59 = vmul.f32 1.442695, %v2791_v29 }
 0xa0d   : > { %v7424_v17 = vpop.eup %5442  ;;  %v2771_v43 = vpop.xlane.xlu1 %2770  ;;  %v2860_v46 = vpack.c.bf16 %v7421_v3, %v7416_v50 }
 0xa0e   : > { %v5445_v6 = vpop.eup %5444  ;;  %v2789_v47 = vsub.f32 %v7301_v1, %v2771_v43  ;;  %v2387_v26 = vpop.xlane.xlu0 %2386  ;;  %v2861_v58 = vpack.c.bf16 %v7419_v16, %v7424_v17  ;;  %5458 = vpow2.f32 %v2822_v59  ;;  %1470 = vadd.xlane.f32.xlu1 %v8164_v9 }
 0xa0f   : > { %v5447_v56 = vpop.eup %5446  ;;  %4993 = vmatprep.mubr.bf16.mxu0 %v2860_v46  ;;  %v7432_v5 = vmul.f32 %v5445_v6, %v8163_v45  ;;  %5460 = vrcp.f32 %v2387_v26  ;;  %v8169_v6 = vld [vmem:[#allocation54_spill] sm:$0xff] }
 0xa10   : > { %v5449_v62 = vpop.eup %5448  ;;  %v2818_v53 = vmul.f32 1.442695, %v2789_v47  ;;  %4994 = vmatmul.mubr.bf16.gmra.mrb[88].mxu0 %v2861_v58  ;;  %v7436_v42 = vmul.f32 %v5447_v56, %v8165_v39 }
 0xa11   : > { %v5451_v1 = vpop.eup %5450  ;;  %v2385_v23 = vpop.xlane.xlu1 %2384  ;;  %v7439_v49 = vmul.f32 %v5449_v62, %v8166_v27 }
 0xa12   : > { %5462 = vpow2.f32 %v2818_v53  ;;  %v1925_v10 = vpop.xlane.xlu0 %1924  ;;  %v2105_v31 = vpack.c.bf16 %v7432_v5, %v7436_v42  ;;  %v7444_v15 = vmul.f32 %v5451_v1, %v8167_v32  ;;  %1472 = vadd.xlane.f32.xlu1 %v8168_v30  ;;  %v7449_v12 = vpop.eup %5452  ;;  %v8170_v53 = vld [vmem:[#allocation53_spill] sm:$0xff]  ;;  %v5216_v42 = vld [vmem:[#allocation8 + $0x20] sm:$0xff]  }
 0xa13   : > { %5464 = vrcp.f32 %v2385_v23  ;;  %v7451_v2 = vpop.eup %5454 }
 0xa14   : > { %5466 = vrcp.f32 %v1925_v10  ;;  %v2106_v4 = vpack.c.bf16 %v7439_v49, %v7444_v15 }
 0xa15   : > { %v2389_v48 = vpop.xlane.xlu1 %2388  ;;  %v5457_v28 = vpop.eup %5456 }
 0xa16   : > { %5468 = vrcp.f32 %v2389_v48  ;;  %v1929_v35 = vpop.xlane.xlu0 %1928  ;;  %v7462_v43 = vmul.f32 %v5457_v28, %v7243_v11  ;;  %v8172_v28 = vld [vmem:[#allocation55_spill] sm:$0xff] }
 0xa17   : > { %5470 = vrcp.f32 %v1929_v35 }
 0xa18   : > { %v7453_v52 = vpop.eup %5458 }
 0xa19   : > { %v1927_v61 = vpop.xlane.xlu1 %1926  ;;  %v5461_v8 = vpop.eup %5460  ;;  %v2863_v57 = vpack.c.bf16 %v7453_v52, %v7449_v12 }
 0xa1a   : > { %5472 = vrcp.f32 %v1927_v61  ;;  %v2391_v25 = vpop.xlane.xlu0 %2390  ;;  %v7473_v62 = vmul.f32 %v5461_v8, %v7241_v60 }
 0xa1b   : > { %5474 = vrcp.f32 %v2391_v25 }
 0xa1c   : > { %v7455_v22 = vpop.eup %5462 }
 0xa1d   : > { %v5465_v18 = vpop.eup %5464  ;;  %v1931_v54 = vpop.xlane.xlu1 %1930  ;;  %v2862_v29 = vpack.c.bf16 %v7455_v22, %v7451_v2 }
 0xa1e   : > { %v5467_v14 = vpop.eup %5466  ;;  %5476 = vrcp.f32 %v1931_v54  ;;  %v2395_v59 = vpop.xlane.xlu0 %2394  ;;  %v7465_v46 = vmul.f32 %v5465_v18, %v7247_v41  ;;  %v8173_v54 = vld [vmem:[#allocation30_spill] sm:$0xff] }
 0xa1f   : > { %4997 = vmatprep.mubr.bf16.mxu0 %v2862_v29  ;;  %v7468_v47 = vmul.f32 %v5467_v14, %v8169_v6  ;;  %v8174_v6 = vld [vmem:[#allocation57_spill] sm:$0xff] }
 0xa20   : > { %v5469_v26 = vpop.eup %5468  ;;  %4998 = vmatmul.mubr.bf16.gmra.mrb[92].mxu0 %v2863_v57  ;;  %v2563_v58 = vpack.c.bf16 %v7465_v46, %v7462_v43  ;;  %v8192_v46 = vld [vmem:[#allocation43_spill] sm:$0xff] }
 0xa21   : > { %v5471_v56 = vpop.eup %5470  ;;  %v2393_v45 = vpop.xlane.xlu1 %2392  ;;  %v7476_v11 = vmul.f32 %v5469_v26, %v7245_v34  ;;  %v8171_v34 = vld [vmem:[#allocation56_spill] sm:$0xff] }
 0xa22   : > { %5478 = vrcp.f32 %v2393_v45  ;;  %v1451_v41 = vpop.xlane.xlu0 %1450  ;;  %v7479_v9 = vmul.f32 %v5471_v56, %v8170_v53  ;;  %v8175_v56 = vld [vmem:[#allocation58_spill] sm:$0xff] }
 0xa23   : > { %5480 = vrcp.f32 %v1451_v41  ;;  %v2564_v39 = vpack.c.bf16 %v7476_v11, %v7473_v62  ;;  %3037 = vrot.lane.b32.xlu1 %v2103_v19, %s5892_s10  ;;  %v5217_v62 = vld [vmem:[#allocation8 + $0x28] sm:$0xff]   ;;  %v5218_v11 = vld [vmem:[#allocation8 + $0x30] sm:$0xff]  }
 0xa24   : > { %v5473_v1 = vpop.eup %5472  ;;  %5482 = vrcp.f32 %v2395_v59 }
 0xa25   : > { %v5475_v23 = vpop.eup %5474  ;;  %v2397_v60 = vpop.xlane.xlu1 %2396  ;;  %v7488_v27 = vmul.f32 %v5473_v1, %v8171_v34 }
 0xa26   : > { %2828 = vadd.xlane.f32.xlu0 %v7369_v40  ;;  %5484 = vrcp.f32 %v2397_v60  ;;  %v1455_v10 = vpop.xlane.xlu0 %1454  ;;  %v7492_v32 = vmul.f32 %v5475_v23, %v7251_v33  ;;  %v8177_v23 = vld [vmem:[#allocation32_spill] sm:$0xff] }
 0xa27   : > { %5486 = vrcp.f32 %v1455_v10  ;;  %v2107_v30 = vpack.c.bf16 %v7488_v27, %v7468_v47  ;;  %v8178_v10 = vld [vmem:[#allocation34_spill] sm:$0xff] }
 0xa28   : > { %v5477_v48 = vpop.eup %5476 }
 0xa29   : > { %v1453_v35 = vpop.xlane.xlu1 %1452  ;;  %v7497_v63 = vmul.f32 %v5477_v48, %v8172_v28 }
 0xa2a   : > { %2824 = vadd.xlane.f32.xlu0 %v7361_v55  ;;  %5488 = vrcp.f32 %v1453_v35  ;;  %v1459_v24 = vpop.xlane.xlu0 %1458 }
 0xa2b   : > { %5490 = vrcp.f32 %v1459_v24  ;;  %v2108_v40 = vpack.c.bf16 %v7497_v63, %v7479_v9 }
 0xa2c   : > { %v5479_v19 = vpop.eup %5478 }
 0xa2d   : > { %v5481_v33 = vpop.eup %5480  ;;  %v1457_v61 = vpop.xlane.xlu1 %1456  ;;  %v7503_v25 = vmul.f32 %v5479_v19, %v7255_v7 }
 0xa2e   : > { %v5483_v8 = vpop.eup %5482  ;;  %2836 = vadd.xlane.f32.xlu0 %v7393_v0  ;;  %5492 = vrcp.f32 %v1457_v61  ;;  %v1463_v18 = vpop.xlane.xlu0 %1462  ;;  %v1603_v29 = vmul.f32 %v5481_v33, %v8173_v54  ;;  %v8176_v0 = vld [vmem:[#allocation29_spill] sm:$0xff]  ;;  %v8179_v33 = vld [vmem:[#allocation31_spill] sm:$0xff] }
 0xa2f   : > { %5494 = vrcp.f32 %v1463_v18  ;;  %v2565_v55 = vpack.c.bf16 %v7503_v25, %v7492_v32  ;;  %v7510_v26 = vmul.f32 %v5483_v8, %v8174_v6  ;;  %v8180_v8 = vld [vmem:[#allocation33_spill] sm:$0xff] }
 0xa30   : > { %v5485_v14 = vpop.eup %5484 }
 0xa31   : > { %v5487_v59 = vpop.eup %5486  ;;  %v1461_v57 = vpop.xlane.xlu1 %1460  ;;  %v7513_v7 = vmul.f32 %v5485_v14, %v8175_v56 }
 0xa32   : > { %2832 = vadd.xlane.f32.xlu0 %v7385_v38  ;;  %5496 = vrcp.f32 %v1461_v57  ;;  %v1605_v45 = vmul.f32 %v5487_v59, %v8176_v0  ;;  %v3034_v24 = vpop.permute.xlu0 %3033  ;;  %v8181_v57 = vld [vmem:[#allocation36_spill] sm:$0xff]  ;;  %v8182_v0 = vld [vmem:[#allocation35_spill] sm:$0xff] }
 0xa33   : > { %v2566_v41 = vpack.c.bf16 %v7513_v7, %v7510_v26 }
 0xa34   : > { %v5489_v53 = vpop.eup %5488 }
 0xa35   : > { %v5491_v1 = vpop.eup %5490  ;;  %v1604_v60 = vmul.f32 %v5489_v53, %v8177_v23  ;;  %v1465_v34 = vpop.xlane.xlu1 %1464 }
 0xa36   : > { %2844 = vadd.xlane.f32.xlu0 %v7424_v17  ;;  %5498 = vrcp.f32 %v1465_v34  ;;  %v1607_v48 = vmul.f32 %v5491_v1, %v8178_v10  ;;  %v8186_v10 = vld [vmem:[#allocation26_spill] sm:$0xff] }
 0xa37   : > { %v1619_v35 = vpack.c.bf16 %v1604_v60, %v1603_v29 }
 0xa38   : > { %v5493_v28 = vpop.eup %5492 }
 0xa39   : > { %v5495_v38 = vpop.eup %5494  ;;  %v3099_v19 = vsel %vm1224_vm0, %v1619_v35, %v3034_v24  ;;  %v1606_v61 = vmul.f32 %v5493_v28, %v8179_v33  ;;  %v3036_v59 = vpop.permute.xlu1 %3035  ;;  %v8187_v28 = vld [vmem:[#allocation38_spill] sm:$0xff]  ;;  %v8188_v33 = vld [vmem:[#allocation37_spill] sm:$0xff] }
 0xa3a   : > { %2840 = vadd.xlane.f32.xlu0 %v7416_v50  ;;  %v1609_v18 = vmul.f32 %v5495_v38, %v8180_v8 }
 0xa3b   : > { %v1620_v54 = vpack.c.bf16 %v1606_v61, %v1605_v45 }
 0xa3c   : > { %v5497_v14 = vpop.eup %5496 }
 0xa3d   : > { %v3102_v17 = vsel %vm1224_vm0, %v1620_v54, %v3036_v59  ;;  %v1608_v6 = vmul.f32 %v5497_v14, %v8181_v57  ;;  %v5212_v59 = vld [vmem:[#allocation8] sm:$0xff]   ;;  %v5214_v57 = vld [vmem:[#allocation8 + $0x10] sm:$0xff]  }
 0xa3e   : > { %2852 = vadd.xlane.f32.xlu0 %v7449_v12  ;;  %5001 = vmatprep.subr.bf16.mxu0 %v5212_v59 }
 0xa3f   : > { %v1621_v29 = vpack.c.bf16 %v1608_v6, %v1607_v48  ;;  %5002 = vmatpush3.bf16.msra.mxu0 %v5212_v59 }
 0xa40   : > { %v5499_v56 = vpop.eup %5498 }
 0xa41   : > { %v1610_v53 = vmul.f32 %v5499_v56, %v8182_v0 }
 0xa42   : > { %2848 = vadd.xlane.f32.xlu0 %v7451_v2 }
 0xa43   : > { %v1622_v1 = vpack.c.bf16 %v1610_v53, %v1609_v18  ;;  %v8189_v18 = vld [vmem:[#allocation39_spill] sm:$0xff] }
 0xa47   : > { %2830 = vadd.xlane.f32.xlu1 %v7364_v36 }
 0xa4b   : > { %2826 = vadd.xlane.f32.xlu1 %v7367_v37 }
 0xa4f   : > { %2838 = vadd.xlane.f32.xlu1 %v7388_v13  ;;  %v8183_v13 = vld [vmem:[#allocation40_spill] sm:$0xff] }
 0xa53   : > { %2834 = vadd.xlane.f32.xlu1 %v7391_v21 }
 0xa54   : > { %v3058_v50 = vpop.permute.xlu1 %3057 }
 0xa55   : > { %v7536_v45 = vsel %vm3121_vm1, %v3099_v19, %v3058_v50 }
 0xa57   : > { %2846 = vadd.xlane.f32.xlu1 %v7419_v16 }
 0xa58   : > { %v3060_v12 = vpop.permute.xlu1 %3059 }
 0xa59   : > { %v7540_v23 = vsel %vm3121_vm1, %v3102_v17, %v3060_v12  ;;  %v5213_v17 = vld [vmem:[#allocation8 + $0x8] sm:$0xff]  }
 0xa5a   : > { %5003 = vmatprep.subr.bf16.mxu0 %v5213_v17 }
 0xa5b   : > { %2842 = vadd.xlane.f32.xlu1 %v7421_v3  ;;  %v8184_v3 = vld [vmem:[#allocation25_spill] sm:$0xff]  ;;  %5004 = vmatpush3.bf16.msra.mxu0 %v5213_v17 }
 0xa5c   : > { %5005 = vmatprep.subr.bf16.mxu0 %v5214_v57 }
 0xa5f   : > { %2854 = vadd.xlane.f32.xlu1 %v7453_v52  ;;  %5006 = vmatpush3.bf16.msra.mxu0 %v5214_v57 }
 0xa63   : > { %v1469_v36 = vpop.xlane.xlu0 %1468  ;;  %2850 = vadd.xlane.f32.xlu1 %v7455_v22  ;;  %v8185_v22 = vld [vmem:[#allocation28_spill] sm:$0xff] }
 0xa64   : > { %5500 = vrcp.f32 %v1469_v36 }
 0xa6e   : > { %v5501_v37 = vpop.eup %5500 }
 0xa6f   : > { %v7546_v21 = vmul.f32 %v5501_v37, %v8183_v13 }
 0xa74   : > { %3063 = vrot.lane.b32.xlu1 %v2562_v51, %s5891_s18 }
 0xa75   : > { %v3040_v2 = vpop.permute.xlu0 %3039 }
 0xa76   : > { %v7549_v60 = vsel %vm1224_vm0, %v1622_v1, %v3040_v2  ;;  %v5219_v2 = vld [vmem:[#allocation8 + $0x38] sm:$0xff]  }
 0xa79   : > { %v3062_v38 = vpop.permute.xlu0 %3061 }
 0xa97   : > { %v1467_v16 = vpop.xlane.xlu1 %1466 }
 0xa98   : > { %5502 = vrcp.f32 %v1467_v16  ;;  %1474 = vadd.xlane.f32.xlu1 %v8184_v3 }
 0xa9b   : > { %v1471_v52 = vpop.xlane.xlu1 %1470 }
 0xa9c   : > { %5504 = vrcp.f32 %v1471_v52  ;;  %1478 = vadd.xlane.f32.xlu1 %v8185_v22 }
 0xa9f   : > { %v1473_v34 = vpop.xlane.xlu1 %1472 }
 0xaa0   : > { %5506 = vrcp.f32 %v1473_v34  ;;  %1480 = vadd.xlane.f32.xlu1 %v8186_v10 }
 0xaa2   : > { %v5503_v48 = vpop.eup %5502 }
 0xaa3   : > { %v3038_v35 = vpop.permute.xlu1 %3037  ;;  %v7559_v24 = vmul.f32 %v5503_v48, %v8187_v28 }
 0xaa4   : > { %v3105_v20 = vsel %vm1224_vm0, %v1621_v29, %v3038_v35  ;;  %v5215_v29 = vld [vmem:[#allocation8 + $0x18] sm:$0xff]  }
 0xaa5   : > { %v1623_v44 = vpack.c.bf16 %v7546_v21, %v7559_v24  ;;  %v7565_v51 = vsel %vm3121_vm1, %v3105_v20, %v3062_v38  ;;  %5007 = vmatprep.subr.bf16.mxu0 %v5215_v29 }
 0xaa6   : > { %v5505_v19 = vpop.eup %5504  ;;  %5008 = vmatpush3.bf16.msra.mxu0 %v5215_v29 }
 0xaa7   : > { %v7568_v61 = vmul.f32 %v5505_v19, %v8188_v33  ;;  %5009 = vmatprep.subr.bf16.mxu0 %v5216_v42 }
 0xaaa   : > { %v5507_v8 = vpop.eup %5506  ;;  %5010 = vmatpush3.bf16.msra.mxu0 %v5216_v42 }
 0xaab   : > { %v7571_v54 = vmul.f32 %v5507_v8, %v8189_v18  ;;  %5011 = vmatprep.subr.bf16.mxu0 %v5217_v62 }
 0xaad   : > { %v1624_v14 = vpack.c.bf16 %v7571_v54, %v7568_v61 }
 0xaae   : > { %5012 = vmatpush3.bf16.msra.mxu0 %v5217_v62 }
 0xaaf   : > { %5013 = vmatprep.subr.bf16.mxu0 %v5218_v11 }
 0xab1   : > { %3041 = vrot.lane.b32.xlu1 %v2105_v31, %s5892_s10 }
 0xab2   : > { %5014 = vmatpush3.bf16.msra.mxu0 %v5218_v11 }
 0xab3   : > { %v2829_v0 = vpop.xlane.xlu0 %2828  ;;  %5015 = vmatprep.subr.bf16.mxu0 %v5219_v2 }
 0xab4   : > { %5508 = vrcp.f32 %v2829_v0 }
 0xab5   : > { %3067 = vrot.lane.b32.xlu1 %v2564_v39, %s5891_s18 }
 0xab6   : > { %5016 = vmatpush3.bf16.msra.mxu0 %v5219_v2 }
 0xab7   : > { %v2825_v31 = vpop.xlane.xlu0 %2824 }
 0xabb   : > { %v2837_v39 = vpop.xlane.xlu0 %2836 }
 0xabe   : > { %v5509_v22 = vpop.eup %5508 }
 0xabf   : > { %v2833_v13 = vpop.xlane.xlu0 %2832 }
 0xac3   : > { %v4987_v6 = vpop.f32.mrb[80].mxu0  ;;  %v2845_v3 = vpop.xlane.xlu0 %2844 }
 0xac4   : > { %v2922_v56 = vpop.f32.mrb[81].mxu0  ;;  %v3003_v10 = vmul.f32 %v5509_v22, %v4987_v6 }
 0xac5   : > { %v4988_v53 = vpop.f32.mrb[82].mxu0 }
 0xac6   : > { %v2925_v5 = vpop.f32.mrb[83].mxu0 }
 0xac7   : > { %v2841_v28 = vpop.xlane.xlu0 %2840 }
 0xad3   : > { %v4991_v1 = vpop.f32.mrb[84].mxu0 }
 0xad4   : > { %v2938_v50 = vpop.f32.mrb[85].mxu0  ;;  %v2831_v36 = vpop.xlane.xlu1 %2830 }
 0xad5   : > { %v4992_v12 = vpop.f32.mrb[86].mxu0  ;;  %5510 = vrcp.f32 %v2831_v36 }
 0xad6   : > { %v2941_v37 = vpop.f32.mrb[87].mxu0  ;;  %5512 = vrcp.f32 %v2825_v31 }
 0xad8   : > { %v2827_v16 = vpop.xlane.xlu1 %2826 }
 0xad9   : > { %5514 = vrcp.f32 %v2827_v16 }
 0xada   : > { %5516 = vrcp.f32 %v2837_v39 }
 0xadc   : > { %v2839_v52 = vpop.xlane.xlu1 %2838 }
 0xadd   : > { %5518 = vrcp.f32 %v2839_v52 }
 0xade   : > { %5520 = vrcp.f32 %v2833_v13 }
 0xadf   : > { %v5511_v34 = vpop.eup %5510 }
 0xae0   : > { %v2835_v48 = vpop.xlane.xlu1 %2834  ;;  %v3004_v35 = vmul.f32 %v5511_v34, %v4988_v53  ;;  %v5513_v20 = vpop.eup %5512 }
 0xae1   : > { %5522 = vrcp.f32 %v2835_v48  ;;  %v3001_v59 = vmul.f32 %v5513_v20, %v2922_v56  ;;  %v2853_v53 = vpop.xlane.xlu0 %2852 }
 0xae2   : > { %v3018_v33 = vpack.c.bf16 %v3004_v35, %v3003_v10  ;;  %5524 = vrcp.f32 %v2845_v3 }
 0xae3   : > { %v4995_v38 = vpop.f32.mrb[88].mxu0  ;;  %v5515_v8 = vpop.eup %5514 }
 0xae4   : > { %v2954_v19 = vpop.f32.mrb[89].mxu0  ;;  %v2847_v17 = vpop.xlane.xlu1 %2846  ;;  %3083 = vrot.lane.b32.xlu0 %v3018_v33, %s5890_s30  ;;  %v3002_v29 = vmul.f32 %v5515_v8, %v2925_v5 }
 0xae5   : > { %v4996_v18 = vpop.f32.mrb[90].mxu0  ;;  %5526 = vrcp.f32 %v2847_v17  ;;  %v5517_v0 = vpop.eup %5516 }
 0xae6   : > { %v2957_v57 = vpop.f32.mrb[91].mxu0  ;;  %v3017_v6 = vpack.c.bf16 %v3002_v29, %v3001_v59  ;;  %5528 = vrcp.f32 %v2841_v28  ;;  %v3007_v31 = vmul.f32 %v5517_v0, %v4991_v1  ;;  %v2849_v5 = vpop.xlane.xlu0 %2848 }
 0xae7   : > { %v5519_v42 = vpop.eup %5518 }
 0xae8   : > { %v2843_v62 = vpop.xlane.xlu1 %2842  ;;  %3081 = vrot.lane.b32.xlu0 %v3017_v6, %s5890_s30  ;;  %v3008_v11 = vmul.f32 %v5519_v42, %v4992_v12  ;;  %v5521_v39 = vpop.eup %5520 }
 0xae9   : > { %5530 = vrcp.f32 %v2843_v62  ;;  %v3005_v13 = vmul.f32 %v5521_v39, %v2938_v50 }
 0xaea   : > { %v3020_v36 = vpack.c.bf16 %v3008_v11, %v3007_v31  ;;  %5532 = vrcp.f32 %v2853_v53 }
 0xaeb   : > { %v5523_v56 = vpop.eup %5522 }
 0xaec   : > { %v2855_v2 = vpop.xlane.xlu1 %2854  ;;  %v3006_v16 = vmul.f32 %v5523_v56, %v2941_v37  ;;  %v5525_v3 = vpop.eup %5524 }
 0xaed   : > { %5534 = vrcp.f32 %v2855_v2  ;;  %v3011_v34 = vmul.f32 %v5525_v3, %v4995_v38  ;;  %v8193_v2 = vld [vmem:[#allocation42_spill] sm:$0xff] }
 0xaee   : > { %v3019_v52 = vpack.c.bf16 %v3006_v16, %v3005_v13  ;;  %5536 = vrcp.f32 %v2849_v5  ;;  %v8194_v5 = vld [vmem:[#allocation44_spill] sm:$0xff] }
 0xaef   : > { %v5527_v22 = vpop.eup %5526 }
 0xaf0   : > { %v3012_v1 = vmul.f32 %v5527_v22, %v4996_v18  ;;  %v2851_v10 = vpop.xlane.xlu1 %2850  ;;  %v5529_v12 = vpop.eup %5528 }
 0xaf1   : > { %5538 = vrcp.f32 %v2851_v10  ;;  %v3009_v8 = vmul.f32 %v5529_v12, %v2954_v19 }
 0xaf2   : > { %v3022_v35 = vpack.c.bf16 %v3012_v1, %v3011_v34 }
 0xaf3   : > { %v4999_v48 = vpop.f32.mrb[92].mxu0  ;;  %v5531_v20 = vpop.eup %5530 }
 0xaf4   : > { %v2970_v28 = vpop.f32.mrb[93].mxu0  ;;  %3091 = vrot.lane.b32.xlu1 %v3022_v35, %s5890_s30  ;;  %v3010_v37 = vmul.f32 %v5531_v20, %v2957_v57  ;;  %v5533_v59 = vpop.eup %5532  ;;  %v8190_v57 = vld [vmem:[#allocation27_spill] sm:$0xff] }
 0xaf5   : > { %v5000_v33 = vpop.f32.mrb[94].mxu0  ;;  %v3015_v0 = vmul.f32 %v5533_v59, %v4999_v48  ;;  %v3064_v62 = vpop.permute.xlu1 %3063  ;;  %v7650_v59 = vld [vmem:[%s8058_s6] ss:$0 sm:$0xff] }
 0xaf6   : > { %v2973_v50 = vpop.f32.mrb[95].mxu0  ;;  %v3021_v17 = vpack.c.bf16 %v3010_v37, %v3009_v8  ;;  %v3129_v11 = vsel %vm3121_vm1, %v7549_v60, %v3064_v62  ;;  %v5646_v62 = vld [vmem:[%s6186_s25 + $0x10] sm:$0xff] }
 0xaf7   : > { %v5535_v29 = vpop.eup %5534 }
 0xaf8   : > { %v3016_v6 = vmul.f32 %v5535_v29, %v5000_v33  ;;  %3047 = vrot.lane.b32.xlu1 %v2108_v40, %s5892_s10  ;;  %v5537_v38 = vpop.eup %5536 }
 0xaf9   : > { %v3013_v53 = vmul.f32 %v5537_v38, %v2970_v28 }
 0xafa   : > { %v3024_v18 = vpack.c.bf16 %v3016_v6, %v3015_v0 }
 0xafb   : > { %v5539_v42 = vpop.eup %5538 }
 0xafc   : > { %v3014_v31 = vmul.f32 %v5539_v42, %v2973_v50  ;;  %3071 = vrot.lane.b32.xlu1 %v2566_v41, %s5891_s18  ;;  %v5644_v42 = vld [vmem:[%s6186_s25] sm:$0xff] }
 0xafe   : > { %v3023_v19 = vpack.c.bf16 %v3014_v31, %v3013_v53 }
 0xb00   : > { %3095 = vrot.lane.b32.xlu1 %v3024_v18, %s5890_s30 }
 0xb07   : > { %1476 = vadd.xlane.f32.xlu0 %v8190_v57 }
 0xb1d   : > { %3085 = vrot.lane.b32.xlu0 %v3019_v52, %s5890_s30 }
 0xb21   : > { %3087 = vrot.lane.b32.xlu0 %v3020_v36, %s5890_s30 }
 0xb25   : > { %v1475_v9 = vpop.xlane.xlu1 %1474  ;;  %3043 = vrot.lane.b32.xlu0 %v2106_v4, %s5892_s10  ;;  %v8191_v4 = vld [vmem:[#allocation41_spill] sm:$0xff] }
 0xb29   : > { %v1479_v63 = vpop.xlane.xlu1 %1478  ;;  %3065 = vrot.lane.b32.xlu0 %v2563_v58, %s5891_s18 }
 0xb2a   : > { %5540 = vrcp.f32 %v1479_v63 }
 0xb2d   : > { %v1481_v40 = vpop.xlane.xlu1 %1480  ;;  %3089 = vrot.lane.b32.xlu0 %v3021_v17, %s5890_s30 }
 0xb2e   : > { %5542 = vrcp.f32 %v1481_v40  ;;  %v5647_v40 = vld [vmem:[%s6186_s25 + $0x18] sm:$0xff] }
 0xb2f   : > { %5544 = vrcp.f32 %v1475_v9 }
 0xb31   : > { %3045 = vrot.lane.b32.xlu0 %v2107_v30, %s5892_s10  ;;  %v3042_v30 = vpop.permute.xlu1 %3041  ;;  %s8201_s10 = sld [smem:[#allocation62_spill]] }
 0xb32   : > { %v3111_v34 = vsel %vm1224_vm0, %v1623_v44, %v3042_v30 }
 0xb34   : > { %v5541_v49 = vpop.eup %5540 }
 0xb35   : > { %3069 = vrot.lane.b32.xlu0 %v2565_v55, %s5891_s18  ;;  %v1617_v43 = vmul.f32 %v5541_v49, %v8191_v4 }
 0xb38   : > { %v5543_v15 = vpop.eup %5542 }
 0xb39   : > { %3093 = vrot.lane.b32.xlu0 %v3023_v19, %s5890_s30  ;;  %v1618_v58 = vmul.f32 %v5543_v15, %v8192_v46  ;;  %v5545_v36 = vpop.eup %5544  ;;  %v5645_v19 = vld [vmem:[%s6186_s25 + $0x8] sm:$0xff] }
 0xb3a   : > { %v1615_v16 = vmul.f32 %v5545_v36, %v8193_v2 }
 0xb3b   : > { %v1626_v26 = vpack.c.bf16 %v1618_v58, %v1617_v43 }
 0xb56   : > { %v3084_v7 = vpop.permute.xlu0 %3083 }
 0xb57   : > { %v3143_v27 = vsel %vm3138_vm2, %v7540_v23, %v3084_v7  ;;  %v5648_v7 = vld [vmem:[%s6186_s25 + $0x20] sm:$0xff] }
 0xb5a   : > { %v3082_v41 = vpop.permute.xlu0 %3081 }
 0xb5b   : > { %v3140_v47 = vsel %vm3138_vm2, %v7536_v45, %v3082_v41  ;;  %v3068_v45 = vpop.permute.xlu1 %3067 }
 0xb5c   : > { %5017 = vmatprep.mubr.bf16.mxu0 %v3140_v47 }
 0xb5d   : > { %5018 = vmatmul.mubr.bf16.vlgmr.msra.gmra.mrb[96].mxu0 %v3143_v27 }
 0xb66   : > { %v3092_v52 = vpop.permute.xlu1 %3091 }
 0xb6a   : > { %v3048_v1 = vpop.permute.xlu1 %3047 }
 0xb6b   : > { %v3120_v24 = vsel %vm1224_vm0, %v1626_v26, %v3048_v1  ;;  %v5655_v1 = vld [vmem:[%s6186_s25 + $0x58] sm:$0xff] }
 0xb6e   : > { %v3072_v54 = vpop.permute.xlu1 %3071 }
 0xb6f   : > { %v3137_v8 = vsel %vm3121_vm1, %v3120_v24, %v3072_v54 }
 0xb72   : > { %v3096_v20 = vpop.permute.xlu1 %3095 }
 0xb73   : > { %v3161_v37 = vsel %vm3138_vm2, %v3137_v8, %v3096_v20  ;;  %v5658_v8 = vld [vmem:[%s6186_s25 + $0x70] sm:$0xff] }
 0xb94   : > { %v1477_v32 = vpop.xlane.xlu0 %1476 }
 0xb95   : > { %5546 = vrcp.f32 %v1477_v32  ;;  %v5649_v32 = vld [vmem:[%s6186_s25 + $0x28] sm:$0xff] }
 0xb98   : > { %v3086_v25 = vpop.permute.xlu0 %3085 }
 0xb99   : > { %v3146_v55 = vsel %vm3138_vm2, %v7565_v51, %v3086_v25  ;;  %v5650_v25 = vld [vmem:[%s6186_s25 + $0x30] sm:$0xff] }
 0xb9a   : > { %5021 = vmatprep.mubr.bf16.mxu0 %v3146_v55 }
 0xb9c   : > { %v3088_v39 = vpop.permute.xlu0 %3087 }
 0xb9d   : > { %v3149_v56 = vsel %vm3138_vm2, %v3129_v11, %v3088_v39  ;;  %v5651_v11 = vld [vmem:[%s6186_s25 + $0x38] sm:$0xff] }
 0xb9e   : > { %5022 = vmatmul.mubr.bf16.gmra.mrb[100].mxu0 %v3149_v56 }
 0xb9f   : > { %v5547_v23 = vpop.eup %5546 }
 0xba0   : > { %v3044_v13 = vpop.permute.xlu0 %3043  ;;  %v1616_v3 = vmul.f32 %v5547_v23, %v8194_v5 }
 0xba1   : > { %v3114_v51 = vsel %vm1224_vm0, %v1624_v14, %v3044_v13 }
 0xba2   : > { %v1625_v22 = vpack.c.bf16 %v1616_v3, %v1615_v16  ;;  %v3133_v10 = vsel %vm3121_vm1, %v3114_v51, %v3068_v45  ;;  %v5652_v16 = vld [vmem:[%s6186_s25 + $0x40] sm:$0xff] }
 0xba3   : > { %v3155_v28 = vsel %vm3138_vm2, %v3133_v10, %v3092_v52 }
 0xba4   : > { %v3066_v60 = vpop.permute.xlu0 %3065 }
 0xba5   : > { %v3131_v48 = vsel %vm3121_vm1, %v3111_v34, %v3066_v60  ;;  %v5654_v60 = vld [vmem:[%s6186_s25 + $0x50] sm:$0xff] }
 0xba8   : > { %v3090_v12 = vpop.permute.xlu0 %3089 }
 0xba9   : > { %v3152_v35 = vsel %vm3138_vm2, %v3131_v48, %v3090_v12 }
 0xbaa   : > { %5025 = vmatprep.mubr.bf16.mxu0 %v3152_v35 }
 0xbab   : > { %5026 = vmatmul.mubr.bf16.gmra.mrb[104].mxu0 %v3155_v28 }
 0xbac   : > { %v3046_v61 = vpop.permute.xlu0 %3045 }
 0xbad   : > { %v3117_v21 = vsel %vm1224_vm0, %v1625_v22, %v3046_v61  ;;  %v5653_v22 = vld [vmem:[%s6186_s25 + $0x48] sm:$0xff] }
 0xbb0   : > { %v3070_v14 = vpop.permute.xlu0 %3069 }
 0xbb1   : > { %v3135_v44 = vsel %vm3121_vm1, %v3117_v21, %v3070_v14  ;;  %v5656_v14 = vld [vmem:[%s6186_s25 + $0x60] sm:$0xff] }
 0xbb4   : > { %v3094_v33 = vpop.permute.xlu0 %3093 }
 0xbb5   : > { %v3158_v50 = vsel %vm3138_vm2, %v3135_v44, %v3094_v33  ;;  %v5657_v44 = vld [vmem:[%s6186_s25 + $0x68] sm:$0xff] }
 0xbb6   : > { %5029 = vmatprep.mubr.bf16.mxu0 %v3158_v50 }
 0xbb7   : > { %5030 = vmatmul.mubr.bf16.gmra.mrb[108].mxu0 %v3161_v37  ;;  %v5659_v37 = vld [vmem:[%s6186_s25 + $0x78] sm:$0xff] }
 0xc30   : > { %v5019_v17 = vpop.f32.mrb[96].mxu0 }
 0xc31   : > { %v3268_v29 = vpop.f32.mrb[97].mxu0  ;;  %v3277_v18 = vadd.f32 %v5019_v17, %v7650_v59 }
 0xc32   : > { %v3269_v0 = vadd.f32 %v7650_v59, %v3268_v29  ;;  %v5020_v6 = vpop.f32.mrb[98].mxu0  ;;  %v5220_v29 = vld [vmem:[#allocation9] ss:$8 sps:$4 sm:$0xff]  }
 0xc33   : > { %v3271_v38 = vpop.f32.mrb[99].mxu0  ;;  %v7663_v9 = vadd.f32 %v5646_v62, %v3277_v18  ;;  %v3280_v63 = vadd.f32 %v5020_v6, %v7650_v59  ;;  %v5223_v6 = vld [vmem:[#allocation9 + $0x10] ss:$8 sps:$4 sm:$0xff]  }
 0xc34   : > { %v7655_v53 = vadd.f32 %v5644_v42, %v3269_v0  ;;  %v3272_v31 = vadd.f32 %v7650_v59, %v3271_v38  ;;  %v5222_v0 = vld [vmem:[#allocation9 + $0x4] ss:$8 sps:$4 sm:$0xff]  }
 0xc35   : > { %v7669_v49 = vadd.f32 %v5647_v40, %v3280_v63  ;;  %3685 = vmatprep.subr.bf16.mxu1 %v5222_v0 }
 0xc36   : > { %v7659_v57 = vadd.f32 %v5645_v19, %v3272_v31  ;;  %3349 = vadd.xlane.f32.xlu0 %v7655_v53  ;;  %3686 = vmatpush1.bf16.msra.mxu1 %v5220_v29 }
 0xc38   : > { %3351 = vadd.xlane.f32.xlu1 %v7659_v57 }
 0xc3a   : > { %3353 = vadd.xlane.f32.xlu0 %v7663_v9 }
 0xc3e   : > { %3355 = vadd.xlane.f32.xlu0 %v7669_v49 }
 0xc71   : > { %v5023_v15 = vpop.f32.mrb[100].mxu0 }
 0xc72   : > { %v3284_v4 = vpop.f32.mrb[101].mxu0  ;;  %v3293_v26 = vadd.f32 %v5023_v15, %v7650_v59 }
 0xc73   : > { %v3285_v43 = vadd.f32 %v7650_v59, %v3284_v4  ;;  %v5024_v46 = vpop.f32.mrb[102].mxu0 }
 0xc74   : > { %v3287_v58 = vpop.f32.mrb[103].mxu0  ;;  %v3296_v27 = vadd.f32 %v5024_v46, %v7650_v59  ;;  %v7684_v55 = vadd.f32 %v5650_v25, %v3293_v26  ;;  %v5231_v25 = vld [vmem:[#allocation9 + $0x34] ss:$8 sps:$4 sm:$0xff]  }
 0xc75   : > { %v7675_v41 = vadd.f32 %v5648_v7, %v3285_v43  ;;  %v3288_v47 = vadd.f32 %v7650_v59, %v3287_v58 }
 0xc76   : > { %v7688_v39 = vadd.f32 %v5651_v11, %v3296_v27  ;;  %v5228_v27 = vld [vmem:[#allocation9 + $0x24] ss:$8 sps:$4 sm:$0xff]   ;;  %v5229_v11 = vld [vmem:[#allocation9 + $0x30] ss:$8 sps:$4 sm:$0xff]  }
 0xc77   : > { %v7680_v30 = vadd.f32 %v5649_v32, %v3288_v47  ;;  %3357 = vadd.xlane.f32.xlu0 %v7675_v41  ;;  %v5226_v32 = vld [vmem:[#allocation9 + $0x20] ss:$8 sps:$4 sm:$0xff]  }
 0xc79   : > { %3359 = vadd.xlane.f32.xlu1 %v7680_v30 }
 0xc7b   : > { %3361 = vadd.xlane.f32.xlu0 %v7684_v55 }
 0xc7d   : > { %3363 = vadd.xlane.f32.xlu1 %v7688_v39 }
 0xc7e   : > { %v5027_v36 = vpop.f32.mrb[104].mxu0 }
 0xc7f   : > { %v3300_v45 = vpop.f32.mrb[105].mxu0  ;;  %v3309_v2 = vadd.f32 %v5027_v36, %v7650_v59  ;;  %v5234_v36 = vld [vmem:[#allocation9 + $0x44] ss:$8 sps:$4 sm:$0xff]  }
 0xc80   : > { %v3301_v56 = vadd.f32 %v7650_v59, %v3300_v45  ;;  %v5028_v23 = vpop.f32.mrb[106].mxu0  ;;  %v5232_v45 = vld [vmem:[#allocation9 + $0x40] ss:$8 sps:$4 sm:$0xff]  }
 0xc81   : > { %v3303_v13 = vpop.f32.mrb[107].mxu0  ;;  %v3312_v52 = vadd.f32 %v5028_v23, %v7650_v59  ;;  %v7704_v34 = vadd.f32 %v5654_v60, %v3309_v2  ;;  %v5235_v23 = vld [vmem:[#allocation9 + $0x50] ss:$8 sps:$4 sm:$0xff]   ;;  %v5238_v2 = vld [vmem:[#allocation9 + $0x60] ss:$8 sps:$4 sm:$0xff]  }
 0xc82   : > { %v7695_v5 = vadd.f32 %v5652_v16, %v3301_v56  ;;  %v3304_v3 = vadd.f32 %v7650_v59, %v3303_v13  ;;  %v5237_v56 = vld [vmem:[#allocation9 + $0x54] ss:$8 sps:$4 sm:$0xff]   ;;  %v5240_v13 = vld [vmem:[#allocation9 + $0x64] ss:$8 sps:$4 sm:$0xff]   ;;  %v5241_v16 = vld [vmem:[#allocation9 + $0x70] ss:$8 sps:$4 sm:$0xff]  }
 0xc83   : > { %v7708_v10 = vadd.f32 %v5655_v1, %v3312_v52 }
 0xc84   : > { %v7700_v51 = vadd.f32 %v5653_v22, %v3304_v3  ;;  %3365 = vadd.xlane.f32.xlu0 %v7695_v5  ;;  %v5243_v3 = vld [vmem:[#allocation9 + $0x74] ss:$8 sps:$4 sm:$0xff]  }
 0xc86   : > { %3367 = vadd.xlane.f32.xlu1 %v7700_v51 }
 0xc88   : > { %3369 = vadd.xlane.f32.xlu0 %v7704_v34 }
 0xc8a   : > { %3371 = vadd.xlane.f32.xlu1 %v7708_v10  ;;  %v5031_v48 = vpop.f32.mrb[108].mxu0 }
 0xc8b   : > { %v3316_v12 = vpop.f32.mrb[109].mxu0  ;;  %v3325_v54 = vadd.f32 %v5031_v48, %v7650_v59 }
 0xc8c   : > { %v3317_v35 = vadd.f32 %v7650_v59, %v3316_v12  ;;  %v5032_v28 = vpop.f32.mrb[110].mxu0 }
 0xc8d   : > { %v3319_v61 = vpop.f32.mrb[111].mxu0  ;;  %v3328_v24 = vadd.f32 %v5032_v28, %v7650_v59  ;;  %v7724_v50 = vadd.f32 %v5658_v8, %v3325_v54 }
 0xc8e   : > { %v7715_v20 = vadd.f32 %v5656_v14, %v3317_v35  ;;  %v3320_v21 = vadd.f32 %v7650_v59, %v3319_v61  ;;  %v5225_v59 = vld [vmem:[#allocation9 + $0x14] ss:$8 sps:$4 sm:$0xff]  }
 0xc8f   : > { %v7728_v17 = vadd.f32 %v5659_v37, %v3328_v24  ;;  %3687 = vmatprep.subr.bf16.mxu1 %v5225_v59 }
 0xc90   : > { %v7720_v33 = vadd.f32 %v5657_v44, %v3320_v21  ;;  %3373 = vadd.xlane.f32.xlu0 %v7715_v20  ;;  %3688 = vmatpush1.bf16.msra.mxu1 %v5223_v6 }
 0xc91   : > { %3689 = vmatprep.subr.bf16.mxu1 %v5228_v27 }
 0xc92   : > { %3375 = vadd.xlane.f32.xlu1 %v7720_v33 }
 0xc94   : > { %3377 = vadd.xlane.f32.xlu0 %v7724_v50  ;;  %3690 = vmatpush1.bf16.msra.mxu1 %v5226_v32 }
 0xc95   : > { %3691 = vmatprep.subr.bf16.mxu1 %v5231_v25 }
 0xc96   : > { %3379 = vadd.xlane.f32.xlu1 %v7728_v17 }
 0xc98   : > { %3692 = vmatpush1.bf16.msra.mxu1 %v5229_v11 }
 0xc99   : > { %3693 = vmatprep.subr.bf16.mxu1 %v5234_v36 }
 0xc9c   : > { %3694 = vmatpush1.bf16.msra.mxu1 %v5232_v45 }
 0xc9d   : > { %3695 = vmatprep.subr.bf16.mxu1 %v5237_v56 }
 0xca0   : > { %3696 = vmatpush1.bf16.msra.mxu1 %v5235_v23 }
 0xca1   : > { %3697 = vmatprep.subr.bf16.mxu1 %v5240_v13 }
 0xca4   : > { %3698 = vmatpush1.bf16.msra.mxu1 %v5238_v2 }
 0xca5   : > { %3699 = vmatprep.subr.bf16.mxu1 %v5243_v3 }
 0xca8   : > { %3700 = vmatpush1.bf16.msra.mxu1 %v5241_v16 }
 0xcc3   : > { %v3350_v38 = vpop.xlane.xlu0 %3349 }
 0xcc4   : > { %v3381_v18 = vmul.f32 0.0078125, %v3350_v38 }
 0xcc5   : > { %v3352_v42 = vpop.xlane.xlu1 %3351 }
 0xcc6   : > { %v7733_v31 = vsub.f32 %v7655_v53, %v3381_v18  ;;  %v3382_v19 = vmul.f32 0.0078125, %v3352_v42 }
 0xcc7   : > { %v3354_v62 = vpop.xlane.xlu0 %3353 }
 0xcc8   : > { %v7736_v63 = vsub.f32 %v7659_v57, %v3382_v19  ;;  %v3383_v40 = vmul.f32 0.0078125, %v3354_v62  ;;  %v3413_v15 = vmul.f32 %v7733_v31, %v7733_v31 }
 0xcca   : > { %v7741_v4 = vsub.f32 %v7663_v9, %v3383_v40  ;;  %3429 = vadd.xlane.f32.xlu0 %v3413_v15  ;;  %v3414_v43 = vmul.f32 %v7736_v63, %v7736_v63 }
 0xccb   : > { %v3356_v46 = vpop.xlane.xlu0 %3355 }
 0xccc   : > { %v3384_v58 = vmul.f32 0.0078125, %v3356_v46  ;;  %3431 = vadd.xlane.f32.xlu1 %v3414_v43  ;;  %v3415_v26 = vmul.f32 %v7741_v4, %v7741_v4 }
 0xcce   : > { %v7748_v7 = vsub.f32 %v7669_v49, %v3384_v58  ;;  %3433 = vadd.xlane.f32.xlu0 %v3415_v26 }
 0xcd0   : > { %v3416_v47 = vmul.f32 %v7748_v7, %v7748_v7 }
 0xcd2   : > { %3435 = vadd.xlane.f32.xlu1 %v3416_v47 }
 0xd04   : > { %v3358_v52 = vpop.xlane.xlu0 %3357 }
 0xd05   : > { %v3385_v22 = vmul.f32 0.0078125, %v3358_v52 }
 0xd06   : > { %v3360_v60 = vpop.xlane.xlu1 %3359 }
 0xd07   : > { %v7753_v1 = vsub.f32 %v7675_v41, %v3385_v22  ;;  %v3386_v48 = vmul.f32 0.0078125, %v3360_v60 }
 0xd08   : > { %v3362_v12 = vpop.xlane.xlu0 %3361 }
 0xd09   : > { %v7756_v35 = vsub.f32 %v7680_v30, %v3386_v48  ;;  %v3387_v28 = vmul.f32 0.0078125, %v3362_v12  ;;  %v3417_v61 = vmul.f32 %v7753_v1, %v7753_v1 }
 0xd0a   : > { %v3364_v54 = vpop.xlane.xlu1 %3363 }
 0xd0b   : > { %v7761_v14 = vsub.f32 %v7684_v55, %v3387_v28  ;;  %v3388_v21 = vmul.f32 0.0078125, %v3364_v54  ;;  %3437 = vadd.xlane.f32.xlu0 %v3417_v61  ;;  %v3418_v24 = vmul.f32 %v7756_v35, %v7756_v35 }
 0xd0d   : > { %v7766_v44 = vsub.f32 %v7688_v39, %v3388_v21  ;;  %3439 = vadd.xlane.f32.xlu1 %v3418_v24  ;;  %v3419_v8 = vmul.f32 %v7761_v14, %v7761_v14  ;;  %v5244_v24 = vld [vmem:[#allocation11 + $0x40] sm:$0xff]  }
 0xd0e   : > { %4649 = vmatprep.subr.bf16.mxu0 %v5244_v24  ;;  %5033 = vmatprep.subr.bf16.mxu1 %v5244_v24 }
 0xd0f   : > { %3441 = vadd.xlane.f32.xlu0 %v3419_v8  ;;  %v3420_v37 = vmul.f32 %v7766_v44, %v7766_v44  ;;  %v5245_v8 = vld [vmem:[#allocation11] sm:$0xff]  }
 0xd10   : > { %4650 = vmatpush3.bf16.msra.mxu0 %v5245_v8 }
 0xd11   : > { %3443 = vadd.xlane.f32.xlu1 %v3420_v37  ;;  %v3366_v29 = vpop.xlane.xlu0 %3365  ;;  %v5246_v37 = vld [vmem:[#allocation11 + $0x48] sm:$0xff]  }
 0xd12   : > { %v3389_v0 = vmul.f32 0.0078125, %v3366_v29  ;;  %4651 = vmatprep.subr.bf16.mxu0 %v5246_v37 }
 0xd13   : > { %v3368_v59 = vpop.xlane.xlu1 %3367 }
 0xd14   : > { %v7773_v6 = vsub.f32 %v7695_v5, %v3389_v0  ;;  %v3390_v38 = vmul.f32 0.0078125, %v3368_v59 }
 0xd15   : > { %v3370_v18 = vpop.xlane.xlu0 %3369 }
 0xd16   : > { %v7776_v42 = vsub.f32 %v7700_v51, %v3390_v38  ;;  %v3391_v19 = vmul.f32 0.0078125, %v3370_v18  ;;  %v3421_v62 = vmul.f32 %v7773_v6, %v7773_v6  ;;  %v5247_v38 = vld [vmem:[#allocation11 + $0x8] sm:$0xff]  }
 0xd17   : > { %v3372_v40 = vpop.xlane.xlu1 %3371  ;;  %4652 = vmatpush3.bf16.msra.mxu0 %v5247_v38 }
 0xd18   : > { %v7781_v15 = vsub.f32 %v7704_v34, %v3391_v19  ;;  %v3392_v43 = vmul.f32 0.0078125, %v3372_v40  ;;  %3445 = vadd.xlane.f32.xlu0 %v3421_v62  ;;  %v3422_v46 = vmul.f32 %v7776_v42, %v7776_v42 }
 0xd1a   : > { %v7786_v58 = vsub.f32 %v7708_v10, %v3392_v43  ;;  %3447 = vadd.xlane.f32.xlu1 %v3422_v46  ;;  %v3423_v26 = vmul.f32 %v7781_v15, %v7781_v15  ;;  %v7815_v46 = vld [vmem:[%s8059_s7] ss:$0 sm:$0xff] }
 0xd1c   : > { %3449 = vadd.xlane.f32.xlu0 %v3423_v26  ;;  %v3424_v47 = vmul.f32 %v7786_v58, %v7786_v58 }
 0xd1d   : > { %v3374_v27 = vpop.xlane.xlu0 %3373 }
 0xd1e   : > { %v3393_v32 = vmul.f32 0.0078125, %v3374_v27  ;;  %3451 = vadd.xlane.f32.xlu1 %v3424_v47 }
 0xd1f   : > { %v3376_v25 = vpop.xlane.xlu1 %3375 }
 0xd20   : > { %v7793_v11 = vsub.f32 %v7715_v20, %v3393_v32  ;;  %v3394_v36 = vmul.f32 0.0078125, %v3376_v25 }
 0xd21   : > { %v3378_v45 = vpop.xlane.xlu0 %3377 }
 0xd22   : > { %v7796_v56 = vsub.f32 %v7720_v33, %v3394_v36  ;;  %v3395_v23 = vmul.f32 0.0078125, %v3378_v45  ;;  %v3425_v13 = vmul.f32 %v7793_v11, %v7793_v11  ;;  %v7823_v36 = vld [vmem:[%s8195_s22] ss:$0 sm:$0xff]  ;;  %s5802_s22 = scalar_lea.vmem %s8005_s19, 2048 }
 0xd23   : > { %v3380_v2 = vpop.xlane.xlu1 %3379  ;;  %p5803_p3 = scmp.ne.s32.totalorder %s8005_s19, %s5802_s22 }
 0xd24   : > { %v7801_v16 = vsub.f32 %v7724_v50, %v3395_v23  ;;  %v3396_v3 = vmul.f32 0.0078125, %v3380_v2  ;;  %3453 = vadd.xlane.f32.xlu0 %v3425_v13  ;;  %v3426_v52 = vmul.f32 %v7796_v56, %v7796_v56 }
 0xd25   : > { %p5804_p5 = pnand %p5803_p3, %p6125_p10 }
 0xd26   : > { %v7806_v22 = vsub.f32 %v7728_v17, %v3396_v3  ;;  %3455 = vadd.xlane.f32.xlu1 %v3426_v52  ;;  %v3427_v60 = vmul.f32 %v7801_v16, %v7801_v16 }
 0xd27   : > { %p5805_p7 = pneg %p5804_p5 }
 0xd28   : > { %3457 = vadd.xlane.f32.xlu0 %v3427_v60  ;;  %v3428_v48 = vmul.f32 %v7806_v22, %v7806_v22 }
 0xd2a   : > { %3459 = vadd.xlane.f32.xlu1 %v3428_v48  ;;  %v8196_v48 = vmov 0  }
 0xd57   : > { %v3430_v12 = vpop.xlane.xlu0 %3429 }
 0xd58   : > { %v3461_v28 = vmul.f32 0.0078125, %v3430_v12 }
 0xd59   : > { %v3432_v61 = vpop.xlane.xlu1 %3431 }
 0xd5a   : > { %v3477_v54 = vadd.f32 1e-05, %v3461_v28  ;;  %v3462_v21 = vmul.f32 0.0078125, %v3432_v61 }
 0xd5b   : > { %v3434_v29 = vpop.xlane.xlu0 %3433 }
 0xd5c   : > { %5548 = vrsqrt.f32 %v3477_v54  ;;  %v3478_v0 = vadd.f32 1e-05, %v3462_v21  ;;  %v3463_v59 = vmul.f32 0.0078125, %v3434_v29 }
 0xd5e   : > { %5550 = vrsqrt.f32 %v3478_v0  ;;  %v3479_v18 = vadd.f32 1e-05, %v3463_v59 }
 0xd5f   : > { %v3436_v19 = vpop.xlane.xlu1 %3435 }
 0xd60   : > { %5552 = vrsqrt.f32 %v3479_v18  ;;  %v3464_v62 = vmul.f32 0.0078125, %v3436_v19 }
 0xd62   : > { %v3480_v40 = vadd.f32 1e-05, %v3464_v62 }
 0xd64   : > { %5554 = vrsqrt.f32 %v3480_v40 }
 0xd66   : > { %v5549_v43 = vpop.eup %5548 }
 0xd67   : > { %v3509_v26 = vmul.f32 %v5549_v43, %v7733_v31 }
 0xd68   : > { %v5551_v47 = vpop.eup %5550 }
 0xd69   : > { %v3531_v27 = vmul.f32 %v7815_v46, %v3509_v26  ;;  %v3510_v32 = vmul.f32 %v5551_v47, %v7736_v63 }
 0xd6a   : > { %v5553_v25 = vpop.eup %5552 }
 0xd6b   : > { %v3532_v45 = vmul.f32 %v7815_v46, %v3510_v32  ;;  %v3553_v23 = vadd.f32 %v7823_v36, %v3531_v27  ;;  %v3511_v2 = vmul.f32 %v5553_v25, %v7741_v4 }
 0xd6d   : > { %v3554_v13 = vadd.f32 %v7823_v36, %v3532_v45  ;;  %v3533_v63 = vmul.f32 %v7815_v46, %v3511_v2 }
 0xd6e   : > { %v5555_v31 = vpop.eup %5554 }
 0xd6f   : > { %v3569_v3 = vpack.c.bf16 %v3554_v13, %v3553_v23  ;;  %v3512_v52 = vmul.f32 %v5555_v31, %v7748_v7  ;;  %v3555_v28 = vadd.f32 %v7823_v36, %v3533_v63 }
 0xd71   : > { %3718 = vmatmul.mubr.bf16.vlgmr.msra.gmra.mrb[80].mxu1 %v3569_v3  ;;  %v3534_v60 = vmul.f32 %v7815_v46, %v3512_v52 }
 0xd72   : > { %3727 = vmatprep.mubr.bf16.mxu1 %v8196_v48  ;;  %5041 = vmatpush3.bf16.msra.mxu1 %v5245_v8 }
 0xd73   : > { %v3556_v12 = vadd.f32 %v7823_v36, %v3534_v60  ;;  %5034 = vmatprep.subr.bf16.mxu1 %v5246_v37 }
 0xd75   : > { %v3570_v61 = vpack.c.bf16 %v3556_v12, %v3555_v28 }
 0xd76   : > { %5042 = vmatpush3.bf16.msra.mxu1 %v5247_v38 }
 0xd79   : > { %3728 = vmatmul.mubr.bf16.gmra.mrb[84].mxu1 %v3570_v61 }
 0xd7a   : > { %3737 = vmatprep.mubr.bf16.mxu1 %v8196_v48 }
 0xd98   : > { %v3438_v4 = vpop.xlane.xlu0 %3437 }
 0xd99   : > { %v3465_v7 = vmul.f32 0.0078125, %v3438_v4 }
 0xd9a   : > { %v3440_v54 = vpop.xlane.xlu1 %3439 }
 0xd9b   : > { %v3481_v21 = vadd.f32 1e-05, %v3465_v7  ;;  %v3466_v24 = vmul.f32 0.0078125, %v3440_v54 }
 0xd9c   : > { %v3442_v29 = vpop.xlane.xlu0 %3441 }
 0xd9d   : > { %5556 = vrsqrt.f32 %v3481_v21  ;;  %v3482_v0 = vadd.f32 1e-05, %v3466_v24  ;;  %v3467_v59 = vmul.f32 0.0078125, %v3442_v29 }
 0xd9e   : > { %v3444_v8 = vpop.xlane.xlu1 %3443 }
 0xd9f   : > { %5558 = vrsqrt.f32 %v3482_v0  ;;  %v3483_v18 = vadd.f32 1e-05, %v3467_v59  ;;  %v3468_v37 = vmul.f32 0.0078125, %v3444_v8 }
 0xda1   : > { %5560 = vrsqrt.f32 %v3483_v18  ;;  %v3484_v19 = vadd.f32 1e-05, %v3468_v37 }
 0xda3   : > { %5562 = vrsqrt.f32 %v3484_v19 }
 0xda5   : > { %v3446_v38 = vpop.xlane.xlu0 %3445 }
 0xda6   : > { %v3469_v62 = vmul.f32 0.0078125, %v3446_v38 }
 0xda7   : > { %v5557_v40 = vpop.eup %5556  ;;  %v3448_v43 = vpop.xlane.xlu1 %3447 }
 0xda8   : > { %v3485_v26 = vadd.f32 1e-05, %v3469_v62  ;;  %v3470_v47 = vmul.f32 0.0078125, %v3448_v43  ;;  %v3513_v27 = vmul.f32 %v5557_v40, %v7753_v1 }
 0xda9   : > { %v5559_v32 = vpop.eup %5558  ;;  %v3450_v25 = vpop.xlane.xlu0 %3449 }
 0xdaa   : > { %5564 = vrsqrt.f32 %v3485_v26  ;;  %v3486_v45 = vadd.f32 1e-05, %v3470_v47  ;;  %v3471_v23 = vmul.f32 0.0078125, %v3450_v25  ;;  %v3514_v13 = vmul.f32 %v5559_v32, %v7756_v35 }
 0xdab   : > { %v5561_v2 = vpop.eup %5560  ;;  %v3452_v31 = vpop.xlane.xlu1 %3451  ;;  %v3535_v3 = vmul.f32 %v7815_v46, %v3513_v27 }
 0xdac   : > { %5566 = vrsqrt.f32 %v3486_v45  ;;  %v3472_v52 = vmul.f32 0.0078125, %v3452_v31  ;;  %v3536_v63 = vmul.f32 %v7815_v46, %v3514_v13  ;;  %v3487_v12 = vadd.f32 1e-05, %v3471_v23 }
 0xdad   : > { %v5563_v60 = vpop.eup %5562  ;;  %v3557_v28 = vadd.f32 %v7823_v36, %v3535_v3  ;;  %v3515_v4 = vmul.f32 %v5561_v2, %v7761_v14 }
 0xdae   : > { %v3488_v1 = vadd.f32 1e-05, %v3472_v52  ;;  %v3558_v61 = vadd.f32 %v7823_v36, %v3536_v63  ;;  %v3516_v7 = vmul.f32 %v5563_v60, %v7766_v44 }
 0xdaf   : > { %v3537_v29 = vmul.f32 %v7815_v46, %v3515_v4 }
 0xdb0   : > { %5568 = vrsqrt.f32 %v3488_v1  ;;  %v3571_v35 = vpack.c.bf16 %v3558_v61, %v3557_v28  ;;  %v3538_v54 = vmul.f32 %v7815_v46, %v3516_v7  ;;  %v5248_v61 = vld [vmem:[#allocation11 + $0x50] sm:$0xff]  }
 0xdb1   : > { %5570 = vrsqrt.f32 %v3487_v12  ;;  %v3454_v21 = vpop.xlane.xlu0 %3453  ;;  %v3559_v38 = vadd.f32 %v7823_v36, %v3537_v29  ;;  %v5249_v7 = vld [vmem:[#allocation11 + $0x10] sm:$0xff]   ;;  %4653 = vmatprep.subr.bf16.mxu0 %v5248_v61  ;;  %5035 = vmatprep.subr.bf16.mxu1 %v5248_v61 }
 0xdb2   : > { %v3473_v24 = vmul.f32 0.0078125, %v3454_v21  ;;  %3738 = vmatmul.mubr.bf16.gmra.mrb[88].mxu1 %v3571_v35  ;;  %v3560_v18 = vadd.f32 %v7823_v36, %v3538_v54  ;;  %4654 = vmatpush3.bf16.msra.mxu0 %v5249_v7 }
 0xdb3   : > { %v3456_v0 = vpop.xlane.xlu1 %3455  ;;  %3747 = vmatprep.mubr.bf16.mxu1 %v8196_v48  ;;  %5043 = vmatpush3.bf16.msra.mxu1 %v5249_v7 }
 0xdb4   : > { %v5565_v59 = vpop.eup %5564  ;;  %v3474_v8 = vmul.f32 0.0078125, %v3456_v0  ;;  %v3489_v14 = vadd.f32 1e-05, %v3473_v24  ;;  %v3572_v47 = vpack.c.bf16 %v3560_v18, %v3559_v38  ;;  %v5250_v24 = vld [vmem:[#allocation11 + $0x58] sm:$0xff]   ;;  %v5254_v38 = vld [vmem:[#allocation11 + $0x68] sm:$0xff]  }
 0xdb5   : > { %v3458_v19 = vpop.xlane.xlu0 %3457  ;;  %v3517_v62 = vmul.f32 %v5565_v59, %v7773_v6  ;;  %v5251_v0 = vld [vmem:[#allocation11 + $0x18] sm:$0xff]   ;;  %4655 = vmatprep.subr.bf16.mxu0 %v5250_v24  ;;  %5036 = vmatprep.subr.bf16.mxu1 %v5250_v24 }
 0xdb6   : > { %v5567_v37 = vpop.eup %5566  ;;  %v3490_v44 = vadd.f32 1e-05, %v3474_v8  ;;  %v3475_v27 = vmul.f32 0.0078125, %v3458_v19  ;;  %4656 = vmatpush3.bf16.msra.mxu0 %v5251_v0  ;;  %v5252_v8 = vld [vmem:[#allocation11 + $0x60] sm:$0xff]  }
 0xdb7   : > { %v3460_v40 = vpop.xlane.xlu1 %3459  ;;  %v3518_v43 = vmul.f32 %v5567_v37, %v7776_v42  ;;  %v3539_v45 = vmul.f32 %v7815_v46, %v3517_v62  ;;  %5044 = vmatpush3.bf16.msra.mxu1 %v5251_v0  ;;  %v5253_v37 = vld [vmem:[#allocation11 + $0x20] sm:$0xff]   ;;  %4657 = vmatprep.subr.bf16.mxu0 %v5252_v8  ;;  %v5255_v62 = vld [vmem:[#allocation11 + $0x28] sm:$0xff]  }
 0xdb8   : > { %5572 = vrsqrt.f32 %v3490_v44  ;;  %v3476_v26 = vmul.f32 0.0078125, %v3460_v40  ;;  %v3491_v42 = vadd.f32 1e-05, %v3475_v27  ;;  %5037 = vmatprep.subr.bf16.mxu1 %v5252_v8  ;;  %v5258_v27 = vld [vmem:[#allocation11 + $0x78] sm:$0xff]  }
 0xdb9   : > { %5574 = vrsqrt.f32 %v3489_v14  ;;  %v3540_v32 = vmul.f32 %v7815_v46, %v3518_v43  ;;  %v3561_v31 = vadd.f32 %v7823_v36, %v3539_v45 }
 0xdba   : > { %v5569_v25 = vpop.eup %5568  ;;  %3748 = vmatmul.mubr.bf16.gmra.mrb[92].mxu1 %v3572_v47  ;;  %v3492_v13 = vadd.f32 1e-05, %v3476_v26  ;;  %4658 = vmatpush3.bf16.msra.mxu0 %v5253_v37  ;;  %v5257_v26 = vld [vmem:[#allocation11 + $0x30] sm:$0xff]  }
 0xdbb   : > { %v5571_v23 = vpop.eup %5570  ;;  %3757 = vmatprep.mubr.bf16.mxu1 %v8196_v48  ;;  %v3562_v6 = vadd.f32 %v7823_v36, %v3540_v32  ;;  %v3520_v2 = vmul.f32 %v5569_v25, %v7786_v58  ;;  %5045 = vmatpush3.bf16.msra.mxu1 %v5253_v37  ;;  %v8198_v32 = vld [vmem:[#allocation19_spill] sm:$0xff] }
 0xdbc   : > { %v3519_v3 = vmul.f32 %v5571_v23, %v7781_v15  ;;  %5576 = vrsqrt.f32 %v3492_v13  ;;  %4659 = vmatprep.subr.bf16.mxu0 %v5254_v38  ;;  %5038 = vmatprep.subr.bf16.mxu1 %v5254_v38  ;;  %v8199_v25 = vsub.s32 0, %v8198_v32  ;;  %v8200_v45 = vsub.s32 1, %v8198_v32 }
 0xdbd   : > { %v3573_v52 = vpack.c.bf16 %v3562_v6, %v3561_v31  ;;  %v3542_v63 = vmul.f32 %v7815_v46, %v3520_v2  ;;  %5578 = vrsqrt.f32 %v3491_v42 }
 0xdbe   : > { %v3541_v12 = vmul.f32 %v7815_v46, %v3519_v3  ;;  %4660 = vmatpush3.bf16.msra.mxu0 %v5255_v62 }
 0xdbf   : > { %v3564_v1 = vadd.f32 %v7823_v36, %v3542_v63  ;;  %5046 = vmatpush3.bf16.msra.mxu1 %v5255_v62 }
 0xdc0   : > { %v3563_v4 = vadd.f32 %v7823_v36, %v3541_v12 }
 0xdc2   : > { %v5573_v60 = vpop.eup %5572  ;;  %3758 = vmatmul.mubr.bf16.gmra.mrb[96].mxu1 %v3573_v52  ;;  %v3574_v35 = vpack.c.bf16 %v3564_v1, %v3563_v4 }
 0xdc3   : > { %v5575_v28 = vpop.eup %5574  ;;  %3767 = vmatprep.mubr.bf16.mxu1 %v8196_v48  ;;  %v3522_v58 = vmul.f32 %v5573_v60, %v7796_v56 }
 0xdc4   : > { %v3521_v15 = vmul.f32 %v5575_v28, %v7793_v11 }
 0xdc5   : > { %v3544_v54 = vmul.f32 %v7815_v46, %v3522_v58 }
 0xdc6   : > { %v5577_v21 = vpop.eup %5576  ;;  %v3543_v29 = vmul.f32 %v7815_v46, %v3521_v15 }
 0xdc7   : > { %v5579_v56 = vpop.eup %5578  ;;  %v3566_v11 = vadd.f32 %v7823_v36, %v3544_v54  ;;  %v3524_v59 = vmul.f32 %v5577_v21, %v7806_v22 }
 0xdc8   : > { %v3565_v18 = vadd.f32 %v7823_v36, %v3543_v29  ;;  %v3523_v14 = vmul.f32 %v5579_v56, %v7801_v16  ;;  %v5256_v16 = vld [vmem:[#allocation11 + $0x70] sm:$0xff]  }
 0xdc9   : > { %v3546_v19 = vmul.f32 %v7815_v46, %v3524_v59  ;;  %4661 = vmatprep.subr.bf16.mxu0 %v5256_v16  ;;  %5039 = vmatprep.subr.bf16.mxu1 %v5256_v16 }
 0xdca   : > { %3768 = vmatmul.mubr.bf16.gmra.mrb[100].mxu1 %v3574_v35  ;;  %v3575_v44 = vpack.c.bf16 %v3566_v11, %v3565_v18  ;;  %v3545_v22 = vmul.f32 %v7815_v46, %v3523_v14  ;;  %4662 = vmatpush3.bf16.msra.mxu0 %v5257_v26  ;;  %v5259_v46 = vld [vmem:[#allocation11 + $0x38] sm:$0xff]  }
 0xdcb   : > { %3777 = vmatprep.mubr.bf16.mxu1 %v8196_v48  ;;  %v3568_v40 = vadd.f32 %v7823_v36, %v3546_v19  ;;  %5047 = vmatpush3.bf16.msra.mxu1 %v5257_v26 }
 0xdcc   : > { %v3567_v43 = vadd.f32 %v7823_v36, %v3545_v22  ;;  %4663 = vmatprep.subr.bf16.mxu0 %v5258_v27  ;;  %5040 = vmatprep.subr.bf16.mxu1 %v5258_v27 }
 0xdce   : > { %v3576_v47 = vpack.c.bf16 %v3568_v40, %v3567_v43  ;;  %4664 = vmatpush3.bf16.msra.mxu0 %v5259_v46 }
 0xdcf   : > { %5048 = vmatpush3.bf16.msra.mxu1 %v5259_v46 }
 0xdd2   : > { %3778 = vmatmul.mubr.bf16.gmra.mrb[104].mxu1 %v3575_v44 }
 0xdd3   : > { %3787 = vmatprep.mubr.bf16.mxu1 %v8196_v48  ;;  %v3593_v48 = vld [vmem:[%s8197_s17] sm:$0x3]  ;;  %s5808_s17 = scalar_lea.vmem %s5807_s3, 4096 }
 0xdd4   : > { %v7882_v36 = vrot.slane %v3593_v48, %v8199_v25  ;;  %v7886_v23 = vrot.slane %v3593_v48, %v8200_v45  ;;  %p5810_p2 = scmp.lt.s32.totalorder %s5808_s17, %s5802_s22 }
 0xdd6   : > { %p5811_p1 = por %p5810_p2, %p5809_p12 }
 0xdd8   : > { %p5812_p13 = pnand %p5811_p1, %p5805_p7 }
 0xdda   : > { %3788 = vmatmul.mubr.bf16.gmra.mrb[108].mxu1 %v3576_v47 }
 0xe44   : > { %v3719_v13 = vpop.f32.mrb[80].mxu1 }
 0xe45   : > { %v3720_v6 = vadd.f32 %v3719_v13, %v7882_v36  ;;  %v3721_v2 = vpop.f32.mrb[81].mxu1 }
 0xe46   : > { %v3722_v42 = vadd.f32 %v3721_v2, %v7886_v23  ;;  %v3723_v31 = vpop.f32.mrb[82].mxu1 }
 0xe47   : > { %v3830_v3 = vmul.f32 0.70710677, %v3720_v6  ;;  %v3724_v52 = vadd.f32 %v3723_v31, %v7882_v36  ;;  %v3725_v63 = vpop.f32.mrb[83].mxu1  ;;  %v3798_v44 = vmul.f32 0.5, %v3720_v6 }
 0xe48   : > { %v3831_v60 = vmul.f32 0.70710677, %v3722_v42  ;;  %v3726_v12 = vadd.f32 %v3725_v63, %v7886_v23  ;;  %v3799_v22 = vmul.f32 0.5, %v3722_v42 }
 0xe49   : > { %5580 = verf.f32 %v3830_v3  ;;  %v3832_v28 = vmul.f32 0.70710677, %v3724_v52  ;;  %v3800_v19 = vmul.f32 0.5, %v3724_v52 }
 0xe4a   : > { %5582 = verf.f32 %v3831_v60  ;;  %v3833_v1 = vmul.f32 0.70710677, %v3726_v12  ;;  %v3801_v62 = vmul.f32 0.5, %v3726_v12 }
 0xe4b   : > { %5584 = verf.f32 %v3832_v28 }
 0xe4c   : > { %5586 = verf.f32 %v3833_v1  ;;  %v3729_v58 = vpop.f32.mrb[84].mxu1 }
 0xe4d   : > { %v3730_v61 = vadd.f32 %v3729_v58, %v7882_v36  ;;  %v3731_v4 = vpop.f32.mrb[85].mxu1 }
 0xe4e   : > { %v3732_v15 = vadd.f32 %v3731_v4, %v7886_v23  ;;  %v3733_v7 = vpop.f32.mrb[86].mxu1 }
 0xe4f   : > { %v3834_v35 = vmul.f32 0.70710677, %v3730_v61  ;;  %v3734_v54 = vadd.f32 %v3733_v7, %v7882_v36  ;;  %v3735_v21 = vpop.f32.mrb[87].mxu1  ;;  %v3802_v31 = vmul.f32 0.5, %v3730_v61 }
 0xe50   : > { %v3835_v24 = vmul.f32 0.70710677, %v3732_v15  ;;  %v3736_v29 = vadd.f32 %v3735_v21, %v7886_v23  ;;  %v3803_v42 = vmul.f32 0.5, %v3732_v15 }
 0xe51   : > { %5588 = verf.f32 %v3834_v35  ;;  %v3836_v0 = vmul.f32 0.70710677, %v3734_v54  ;;  %v3804_v6 = vmul.f32 0.5, %v3734_v54 }
 0xe52   : > { %5590 = verf.f32 %v3835_v24  ;;  %v3837_v56 = vmul.f32 0.70710677, %v3736_v29  ;;  %v3805_v52 = vmul.f32 0.5, %v3736_v29 }
 0xe53   : > { %v5581_v11 = vpop.eup %5580  ;;  %5592 = verf.f32 %v3836_v0 }
 0xe54   : > { %v5583_v59 = vpop.eup %5582  ;;  %v3894_v8 = vadd.f32 1.0, %v5581_v11  ;;  %5594 = verf.f32 %v3837_v56 }
 0xe55   : > { %v5585_v18 = vpop.eup %5584  ;;  %v3895_v14 = vadd.f32 1.0, %v5583_v59 }
 0xe56   : > { %v5587_v37 = vpop.eup %5586  ;;  %v3896_v38 = vadd.f32 1.0, %v5585_v18  ;;  %v3926_v16 = vmul.f32 %v3894_v8, %v3798_v44 }
 0xe57   : > { %v3897_v40 = vadd.f32 1.0, %v5587_v37  ;;  %v3927_v26 = vmul.f32 %v3895_v14, %v3799_v22 }
 0xe58   : > { %v3928_v43 = vmul.f32 %v3896_v38, %v3800_v19 }
 0xe59   : > { %v3929_v47 = vmul.f32 %v3897_v40, %v3801_v62 }
 0xe5a   : > { %v3958_v27 = vpack.c.bf16 %v3928_v43, %v3926_v16 }
 0xe5b   : > { %v5589_v46 = vpop.eup %5588  ;;  %v3959_v48 = vpack.c.bf16 %v3929_v47, %v3927_v26 }
 0xe5c   : > { %v5591_v32 = vpop.eup %5590  ;;  %v3898_v25 = vadd.f32 1.0, %v5589_v46 }
 0xe5d   : > { %v5593_v45 = vpop.eup %5592  ;;  %v3899_v13 = vadd.f32 1.0, %v5591_v32  ;;  %4141 = vmatprep.mubr.bf16.mxu0 %v3959_v48 }
 0xe5e   : > { %v5595_v2 = vpop.eup %5594  ;;  %v3900_v3 = vadd.f32 1.0, %v5593_v45  ;;  %4142 = vmatmul.mubr.bf16.vlgmr.msra.gmra.mrb[112].mxu0 %v3958_v27  ;;  %v3930_v60 = vmul.f32 %v3898_v25, %v3802_v31 }
 0xe5f   : > { %v3901_v63 = vadd.f32 1.0, %v5595_v2  ;;  %v3931_v28 = vmul.f32 %v3899_v13, %v3803_v42 }
 0xe60   : > { %v3932_v12 = vmul.f32 %v3900_v3, %v3804_v6 }
 0xe61   : > { %v3933_v1 = vmul.f32 %v3901_v63, %v3805_v52 }
 0xe62   : > { %v3960_v58 = vpack.c.bf16 %v3932_v12, %v3930_v60 }
 0xe63   : > { %v3961_v4 = vpack.c.bf16 %v3933_v1, %v3931_v28 }
 0xe65   : > { %4149 = vmatprep.mubr.bf16.mxu0 %v3961_v4 }
 0xe66   : > { %4150 = vmatmul.mubr.bf16.gmra.mrb[116].mxu0 %v3960_v58 }
 0xe85   : > { %v3739_v7 = vpop.f32.mrb[88].mxu1 }
 0xe86   : > { %v3740_v35 = vadd.f32 %v3739_v7, %v7882_v36  ;;  %v3741_v21 = vpop.f32.mrb[89].mxu1 }
 0xe87   : > { %v3742_v61 = vadd.f32 %v3741_v21, %v7886_v23  ;;  %v3743_v54 = vpop.f32.mrb[90].mxu1 }
 0xe88   : > { %v3838_v24 = vmul.f32 0.70710677, %v3740_v35  ;;  %v3744_v15 = vadd.f32 %v3743_v54, %v7882_v36  ;;  %v3745_v29 = vpop.f32.mrb[91].mxu1  ;;  %v3806_v2 = vmul.f32 0.5, %v3740_v35 }
 0xe89   : > { %v3839_v0 = vmul.f32 0.70710677, %v3742_v61  ;;  %v3746_v56 = vadd.f32 %v3745_v29, %v7886_v23  ;;  %v3807_v52 = vmul.f32 0.5, %v3742_v61 }
 0xe8a   : > { %5596 = verf.f32 %v3838_v24  ;;  %v3840_v11 = vmul.f32 0.70710677, %v3744_v15  ;;  %v3808_v31 = vmul.f32 0.5, %v3744_v15 }
 0xe8b   : > { %5598 = verf.f32 %v3839_v0  ;;  %v3841_v59 = vmul.f32 0.70710677, %v3746_v56  ;;  %v3809_v63 = vmul.f32 0.5, %v3746_v56 }
 0xe8c   : > { %5600 = verf.f32 %v3840_v11 }
 0xe8d   : > { %5602 = verf.f32 %v3841_v59  ;;  %v3749_v8 = vpop.f32.mrb[92].mxu1 }
 0xe8e   : > { %v3750_v18 = vadd.f32 %v3749_v8, %v7882_v36  ;;  %v3751_v14 = vpop.f32.mrb[93].mxu1 }
 0xe8f   : > { %v3752_v37 = vadd.f32 %v3751_v14, %v7886_v23  ;;  %v3753_v44 = vpop.f32.mrb[94].mxu1 }
 0xe90   : > { %v3842_v19 = vmul.f32 0.70710677, %v3750_v18  ;;  %v3754_v38 = vadd.f32 %v3753_v44, %v7882_v36  ;;  %v3755_v22 = vpop.f32.mrb[95].mxu1 }
 0xe91   : > { %v3843_v62 = vmul.f32 0.70710677, %v3752_v37  ;;  %v3756_v40 = vadd.f32 %v3755_v22, %v7886_v23 }
 0xe92   : > { %5604 = verf.f32 %v3842_v19  ;;  %v3844_v16 = vmul.f32 0.70710677, %v3754_v38 }
 0xe93   : > { %5606 = verf.f32 %v3843_v62  ;;  %v3845_v43 = vmul.f32 0.70710677, %v3756_v40  ;;  %v3810_v62 = vmul.f32 0.5, %v3750_v18 }
 0xe94   : > { %v5597_v26 = vpop.eup %5596  ;;  %5608 = verf.f32 %v3844_v16  ;;  %v3812_v16 = vmul.f32 0.5, %v3754_v38 }
 0xe95   : > { %v5599_v47 = vpop.eup %5598  ;;  %v3902_v27 = vadd.f32 1.0, %v5597_v26  ;;  %5610 = verf.f32 %v3845_v43  ;;  %v3759_v46 = vpop.f32.mrb[96].mxu1 }
 0xe96   : > { %v5601_v48 = vpop.eup %5600  ;;  %v3903_v32 = vadd.f32 1.0, %v5599_v47  ;;  %v7905_v25 = vadd.f32 %v3759_v46, %v7882_v36  ;;  %v3761_v45 = vpop.f32.mrb[97].mxu1  ;;  %v3813_v46 = vmul.f32 0.5, %v3756_v40 }
 0xe97   : > { %v5603_v13 = vpop.eup %5602  ;;  %v3904_v6 = vadd.f32 1.0, %v5601_v48  ;;  %v7908_v3 = vadd.f32 %v3761_v45, %v7886_v23  ;;  %v3763_v42 = vpop.f32.mrb[98].mxu1  ;;  %v3934_v1 = vmul.f32 %v3902_v27, %v3806_v2  ;;  %v3811_v27 = vmul.f32 0.5, %v3752_v37 }
 0xe98   : > { %v3905_v60 = vadd.f32 1.0, %v5603_v13  ;;  %v3846_v12 = vmul.f32 0.70710677, %v7905_v25  ;;  %v3765_v28 = vpop.f32.mrb[99].mxu1  ;;  %v3764_v7 = vadd.f32 %v3763_v42, %v7882_v36  ;;  %v3935_v21 = vmul.f32 %v3903_v32, %v3807_v52 }
 0xe99   : > { %v3936_v58 = vmul.f32 %v3904_v6, %v3808_v31  ;;  %v3847_v4 = vmul.f32 0.70710677, %v7908_v3  ;;  %v3766_v54 = vadd.f32 %v3765_v28, %v7886_v23 }
 0xe9a   : > { %v3937_v35 = vmul.f32 %v3905_v60, %v3809_v63  ;;  %5612 = verf.f32 %v3846_v12  ;;  %v3848_v24 = vmul.f32 0.70710677, %v3764_v7 }
 0xe9b   : > { %5614 = verf.f32 %v3847_v4  ;;  %v3962_v15 = vpack.c.bf16 %v3936_v58, %v3934_v1  ;;  %v3849_v29 = vmul.f32 0.70710677, %v3766_v54 }
 0xe9c   : > { %v5605_v61 = vpop.eup %5604  ;;  %v3963_v0 = vpack.c.bf16 %v3937_v35, %v3935_v21  ;;  %5616 = verf.f32 %v3848_v24  ;;  %v3814_v35 = vmul.f32 0.5, %v7905_v25 }
 0xe9d   : > { %v5607_v56 = vpop.eup %5606  ;;  %v3906_v11 = vadd.f32 1.0, %v5605_v61  ;;  %v3769_v59 = vpop.f32.mrb[100].mxu1  ;;  %5618 = verf.f32 %v3849_v29 }
 0xe9e   : > { %v5609_v8 = vpop.eup %5608  ;;  %v3907_v14 = vadd.f32 1.0, %v5607_v56  ;;  %v7915_v44 = vadd.f32 %v3769_v59, %v7882_v36  ;;  %v3771_v19 = vpop.f32.mrb[101].mxu1  ;;  %4157 = vmatprep.mubr.bf16.mxu0 %v3963_v0  ;;  %v3815_v0 = vmul.f32 0.5, %v7908_v3  ;;  %v3816_v56 = vmul.f32 0.5, %v3764_v7 }
 0xe9f   : > { %v5611_v22 = vpop.eup %5610  ;;  %v3908_v43 = vadd.f32 1.0, %v5609_v8  ;;  %v7918_v26 = vadd.f32 %v3771_v19, %v7886_v23  ;;  %v3773_v47 = vpop.f32.mrb[102].mxu1  ;;  %4158 = vmatmul.mubr.bf16.gmra.mrb[120].mxu0 %v3962_v15  ;;  %v3938_v13 = vmul.f32 %v3906_v11, %v3810_v62 }
 0xea0   : > { %v3909_v48 = vadd.f32 1.0, %v5611_v22  ;;  %v3850_v32 = vmul.f32 0.70710677, %v7915_v44  ;;  %v3775_v45 = vpop.f32.mrb[103].mxu1  ;;  %v3774_v6 = vadd.f32 %v3773_v47, %v7882_v36  ;;  %v3939_v18 = vmul.f32 %v3907_v14, %v3811_v27 }
 0xea1   : > { %v3940_v2 = vmul.f32 %v3908_v43, %v3812_v16  ;;  %v3851_v31 = vmul.f32 0.70710677, %v7918_v26  ;;  %v3776_v42 = vadd.f32 %v3775_v45, %v7886_v23  ;;  %v3817_v14 = vmul.f32 0.5, %v3766_v54 }
 0xea2   : > { %v3941_v38 = vmul.f32 %v3909_v48, %v3813_v46  ;;  %5620 = verf.f32 %v3850_v32  ;;  %v3852_v52 = vmul.f32 0.70710677, %v3774_v6 }
 0xea3   : > { %5622 = verf.f32 %v3851_v31  ;;  %v3964_v63 = vpack.c.bf16 %v3940_v2, %v3938_v13  ;;  %v3853_v40 = vmul.f32 0.70710677, %v3776_v42 }
 0xea4   : > { %v5613_v37 = vpop.eup %5612  ;;  %v3965_v60 = vpack.c.bf16 %v3941_v38, %v3939_v18  ;;  %5624 = verf.f32 %v3852_v52  ;;  %v3818_v38 = vmul.f32 0.5, %v7915_v44 }
 0xea5   : > { %v5615_v12 = vpop.eup %5614  ;;  %v3779_v28 = vpop.f32.mrb[104].mxu1  ;;  %v3910_v1 = vadd.f32 1.0, %v5613_v37  ;;  %5626 = verf.f32 %v3853_v40 }
 0xea6   : > { %v7925_v58 = vadd.f32 %v3779_v28, %v7882_v36  ;;  %v3781_v4 = vpop.f32.mrb[105].mxu1  ;;  %4165 = vmatprep.mubr.bf16.mxu0 %v3965_v60  ;;  %v5617_v21 = vpop.eup %5616  ;;  %v3911_v24 = vadd.f32 1.0, %v5615_v12  ;;  %v3819_v60 = vmul.f32 0.5, %v7918_v26  ;;  %v3820_v12 = vmul.f32 0.5, %v3774_v6 }
 0xea7   : > { %v7929_v15 = vadd.f32 %v3781_v4, %v7886_v23  ;;  %v3783_v61 = vpop.f32.mrb[106].mxu1  ;;  %4166 = vmatmul.mubr.bf16.gmra.mrb[124].mxu0 %v3964_v63  ;;  %v5619_v29 = vpop.eup %5618  ;;  %v3912_v11 = vadd.f32 1.0, %v5617_v21  ;;  %v3942_v62 = vmul.f32 %v3910_v1, %v3814_v35  ;;  %v3821_v21 = vmul.f32 0.5, %v3776_v42 }
 0xea8   : > { %v3854_v59 = vmul.f32 0.70710677, %v7925_v58  ;;  %v3785_v8 = vpop.f32.mrb[107].mxu1  ;;  %v3913_v19 = vadd.f32 1.0, %v5619_v29  ;;  %v3784_v25 = vadd.f32 %v3783_v61, %v7882_v36  ;;  %v3943_v47 = vmul.f32 %v3911_v24, %v3815_v0 }
 0xea9   : > { %v3855_v22 = vmul.f32 0.70710677, %v7929_v15  ;;  %v3944_v16 = vmul.f32 %v3912_v11, %v3816_v56  ;;  %v3786_v43 = vadd.f32 %v3785_v8, %v7886_v23 }
 0xeaa   : > { %5628 = verf.f32 %v3854_v59  ;;  %v3945_v27 = vmul.f32 %v3913_v19, %v3817_v14  ;;  %v3856_v3 = vmul.f32 0.70710677, %v3784_v25 }
 0xeab   : > { %5630 = verf.f32 %v3855_v22  ;;  %v3857_v46 = vmul.f32 0.70710677, %v3786_v43  ;;  %v3966_v48 = vpack.c.bf16 %v3944_v16, %v3942_v62  ;;  %v3822_v16 = vmul.f32 0.5, %v7925_v58 }
 0xeac   : > { %v5621_v7 = vpop.eup %5620  ;;  %5632 = verf.f32 %v3856_v3  ;;  %v3967_v45 = vpack.c.bf16 %v3945_v27, %v3943_v47  ;;  %v3824_v47 = vmul.f32 0.5, %v3784_v25  ;;  %v3823_v27 = vmul.f32 0.5, %v7929_v15 }
 0xead   : > { %v5623_v32 = vpop.eup %5622  ;;  %v3789_v54 = vpop.f32.mrb[108].mxu1  ;;  %v3914_v13 = vadd.f32 1.0, %v5621_v7  ;;  %5634 = verf.f32 %v3857_v46  ;;  %v3825_v3 = vmul.f32 0.5, %v3786_v43 }
 0xeae   : > { %v3790_v2 = vadd.f32 %v3789_v54, %v7882_v36  ;;  %v3791_v31 = vpop.f32.mrb[109].mxu1  ;;  %v5625_v18 = vpop.eup %5624  ;;  %v3915_v52 = vadd.f32 1.0, %v5623_v32  ;;  %4173 = vmatprep.mubr.bf16.mxu0 %v3967_v45 }
 0xeaf   : > { %v3792_v63 = vadd.f32 %v3791_v31, %v7886_v23  ;;  %v3793_v37 = vpop.f32.mrb[110].mxu1  ;;  %v5627_v40 = vpop.eup %5626  ;;  %v3916_v28 = vadd.f32 1.0, %v5625_v18  ;;  %4174 = vmatmul.mubr.bf16.gmra.mrb[128].mxu0 %v3966_v48  ;;  %v3946_v29 = vmul.f32 %v3914_v13, %v3818_v38 }
 0xeb0   : > { %v3858_v1 = vmul.f32 0.70710677, %v3790_v2  ;;  %v3795_v4 = vpop.f32.mrb[111].mxu1  ;;  %v3917_v35 = vadd.f32 1.0, %v5627_v40  ;;  %v3794_v61 = vadd.f32 %v3793_v37, %v7882_v36  ;;  %v3947_v56 = vmul.f32 %v3915_v52, %v3819_v60 }
 0xeb1   : > { %v3859_v24 = vmul.f32 0.70710677, %v3792_v63  ;;  %v3948_v44 = vmul.f32 %v3916_v28, %v3820_v12  ;;  %v3796_v0 = vadd.f32 %v3795_v4, %v7886_v23  ;;  %v3826_v25 = vmul.f32 0.5, %v3790_v2  ;;  %v7947_v2 = vld [vmem:[%s8201_s10] ss:$0 sm:$0xff] }
 0xeb2   : > { %5636 = verf.f32 %v3858_v1  ;;  %v3949_v11 = vmul.f32 %v3917_v35, %v3821_v21  ;;  %v3860_v59 = vmul.f32 0.70710677, %v3794_v61  ;;  %v3828_v40 = vmul.f32 0.5, %v3794_v61 }
 0xeb3   : > { %5638 = verf.f32 %v3859_v24  ;;  %v3861_v6 = vmul.f32 0.70710677, %v3796_v0  ;;  %v3968_v8 = vpack.c.bf16 %v3948_v44, %v3946_v29  ;;  %v3827_v15 = vmul.f32 0.5, %v3792_v63 }
 0xeb4   : > { %v5629_v26 = vpop.eup %5628  ;;  %5640 = verf.f32 %v3860_v59  ;;  %v3969_v19 = vpack.c.bf16 %v3949_v11, %v3947_v56  ;;  %v3829_v43 = vmul.f32 0.5, %v3796_v0 }
 0xeb5   : > { %v5631_v14 = vpop.eup %5630  ;;  %v3918_v42 = vadd.f32 1.0, %v5629_v26  ;;  %5642 = verf.f32 %v3861_v6 }
 0xeb6   : > { %v5633_v22 = vpop.eup %5632  ;;  %v3919_v62 = vadd.f32 1.0, %v5631_v14  ;;  %4181 = vmatprep.mubr.bf16.mxu0 %v3969_v19 }
 0xeb7   : > { %v5635_v36 = vpop.eup %5634  ;;  %v3920_v23 = vadd.f32 1.0, %v5633_v22  ;;  %4182 = vmatmul.mubr.bf16.gmra.mrb[132].mxu0 %v3968_v8  ;;  %v3950_v46 = vmul.f32 %v3918_v42, %v3822_v16 }
 0xeb8   : > { %v3921_v7 = vadd.f32 1.0, %v5635_v36  ;;  %v3951_v32 = vmul.f32 %v3919_v62, %v3823_v27 }
 0xeb9   : > { %v3952_v48 = vmul.f32 %v3920_v23, %v3824_v47 }
 0xeba   : > { %v3953_v54 = vmul.f32 %v3921_v7, %v3825_v3 }
 0xebb   : > { %v3970_v13 = vpack.c.bf16 %v3952_v48, %v3950_v46 }
 0xebc   : > { %v5637_v45 = vpop.eup %5636  ;;  %v3971_v18 = vpack.c.bf16 %v3953_v54, %v3951_v32 }
 0xebd   : > { %v5639_v31 = vpop.eup %5638  ;;  %v3922_v38 = vadd.f32 1.0, %v5637_v45 }
 0xebe   : > { %v5641_v52 = vpop.eup %5640  ;;  %v3923_v37 = vadd.f32 1.0, %v5639_v31  ;;  %4189 = vmatprep.mubr.bf16.mxu1 %v3971_v18 }
 0xebf   : > { %v5643_v58 = vpop.eup %5642  ;;  %v3924_v60 = vadd.f32 1.0, %v5641_v52  ;;  %4190 = vmatmul.mubr.bf16.vlgmr.msra.gmra.mrb[112].mxu1 %v3970_v13  ;;  %v3954_v28 = vmul.f32 %v3922_v38, %v3826_v25 }
 0xec0   : > { %v3925_v12 = vadd.f32 1.0, %v5643_v58  ;;  %v3955_v4 = vmul.f32 %v3923_v37, %v3827_v15 }
 0xec1   : > { %v3956_v1 = vmul.f32 %v3924_v60, %v3828_v40 }
 0xec2   : > { %v3957_v21 = vmul.f32 %v3925_v12, %v3829_v43 }
 0xec3   : > { %v3972_v35 = vpack.c.bf16 %v3956_v1, %v3954_v28 }
 0xec4   : > { %v3973_v24 = vpack.c.bf16 %v3957_v21, %v3955_v4 }
 0xec6   : > { %4197 = vmatprep.mubr.bf16.mxu1 %v3973_v24 }
 0xec7   : > { %4198 = vmatmul.mubr.bf16.gmra.mrb[116].mxu1 %v3972_v35 }
 0xf31   : > { %v4665_v29 = vpop.f32.mrb[112].mxu0 }
 0xf32   : > { %v4666_v61 = vpop.f32.mrb[113].mxu0 }
 0xf33   : > { %v4667_v44 = vadd.f32 %v4666_v61, %v4665_v29  ;;  %v4668_v63 = vpop.f32.mrb[114].mxu0 }
 0xf34   : > { %v4669_v0 = vpop.f32.mrb[115].mxu0 }
 0xf35   : > { %v4144_v56 = vadd.f32 %v4667_v44, %v7947_v2  ;;  %v4670_v11 = vadd.f32 %v4669_v0, %v4668_v63 }
 0xf37   : > { %v4206_v59 = vadd.f32 %v4144_v56, %v7655_v53  ;;  %v4147_v26 = vadd.f32 %v4670_v11, %v7947_v2 }
 0xf39   : > { %4222 = vst [vmem:[%s7954_s23] sm:$0xff] %v4206_v59  ;;  %v4207_v6 = vadd.f32 %v4147_v26, %v7659_v57  ;;  %v4671_v8 = vpop.f32.mrb[116].mxu0 }
 0xf3a   : > { %v4672_v14 = vpop.f32.mrb[117].mxu0 }
 0xf3b   : > { %4223 = vst [vmem:[%s7954_s23 + $0x8] sm:$0xff] %v4207_v6  ;;  %v4673_v19 = vadd.f32 %v4672_v14, %v4671_v8  ;;  %v4674_v42 = vpop.f32.mrb[118].mxu0 }
 0xf3c   : > { %v4675_v22 = vpop.f32.mrb[119].mxu0 }
 0xf3d   : > { %v4152_v53 = vadd.f32 %v4673_v19, %v7947_v2  ;;  %v4676_v62 = vadd.f32 %v4675_v22, %v4674_v42 }
 0xf3f   : > { %v4208_v36 = vadd.f32 %v4152_v53, %v7663_v9  ;;  %v4155_v16 = vadd.f32 %v4676_v62, %v7947_v2 }
 0xf41   : > { %4224 = vst [vmem:[%s7954_s23 + $0x10] sm:$0xff] %v4208_v36  ;;  %v4209_v47 = vadd.f32 %v4155_v16, %v7669_v49 }
 0xf43   : > { %4225 = vst [vmem:[%s7954_s23 + $0x18] sm:$0xff] %v4209_v47 }
 0xf72   : > { %v4677_v57 = vpop.f32.mrb[120].mxu0 }
 0xf73   : > { %v4678_v23 = vpop.f32.mrb[121].mxu0 }
 0xf74   : > { %v4679_v27 = vadd.f32 %v4678_v23, %v4677_v57  ;;  %v4680_v3 = vpop.f32.mrb[122].mxu0 }
 0xf75   : > { %v4681_v7 = vpop.f32.mrb[123].mxu0 }
 0xf76   : > { %v4160_v46 = vadd.f32 %v4679_v27, %v7947_v2  ;;  %v4682_v48 = vadd.f32 %v4681_v7, %v4680_v3 }
 0xf78   : > { %v4210_v32 = vadd.f32 %v4160_v46, %v7675_v41  ;;  %v4163_v9 = vadd.f32 %v4682_v48, %v7947_v2 }
 0xf7a   : > { %4226 = vst [vmem:[%s7954_s23 + $0x20] sm:$0xff] %v4210_v32  ;;  %v4211_v54 = vadd.f32 %v4163_v9, %v7680_v30  ;;  %v4683_v45 = vpop.f32.mrb[124].mxu0 }
 0xf7b   : > { %v4684_v49 = vpop.f32.mrb[125].mxu0 }
 0xf7c   : > { %4227 = vst [vmem:[%s7954_s23 + $0x28] sm:$0xff] %v4211_v54  ;;  %v4685_v13 = vadd.f32 %v4684_v49, %v4683_v45  ;;  %v4686_v31 = vpop.f32.mrb[126].mxu0 }
 0xf7d   : > { %v4687_v18 = vpop.f32.mrb[127].mxu0 }
 0xf7e   : > { %v4168_v38 = vadd.f32 %v4685_v13, %v7947_v2  ;;  %v4688_v52 = vadd.f32 %v4687_v18, %v4686_v31 }
 0xf80   : > { %v4212_v37 = vadd.f32 %v4168_v38, %v7684_v55  ;;  %v4171_v41 = vadd.f32 %v4688_v52, %v7947_v2 }
 0xf82   : > { %4228 = vst [vmem:[%s7954_s23 + $0x30] sm:$0xff] %v4212_v37  ;;  %v4213_v58 = vadd.f32 %v4171_v41, %v7688_v39  ;;  %v4689_v25 = vpop.f32.mrb[128].mxu0 }
 0xf83   : > { %v4690_v30 = vpop.f32.mrb[129].mxu0 }
 0xf84   : > { %4229 = vst [vmem:[%s7954_s23 + $0x38] sm:$0xff] %v4213_v58  ;;  %v4691_v40 = vadd.f32 %v4690_v30, %v4689_v25  ;;  %v4692_v60 = vpop.f32.mrb[130].mxu0 }
 0xf85   : > { %v4693_v15 = vpop.f32.mrb[131].mxu0 }
 0xf86   : > { %v4176_v43 = vadd.f32 %v4691_v40, %v7947_v2  ;;  %v4694_v12 = vadd.f32 %v4693_v15, %v4692_v60 }
 0xf88   : > { %v4214_v28 = vadd.f32 %v4176_v43, %v7695_v5  ;;  %v4179_v55 = vadd.f32 %v4694_v12, %v7947_v2 }
 0xf8a   : > { %4230 = vst [vmem:[%s7954_s23 + $0x40] sm:$0xff] %v4214_v28  ;;  %v4215_v1 = vadd.f32 %v4179_v55, %v7700_v51  ;;  %v4695_v4 = vpop.f32.mrb[132].mxu0 }
 0xf8b   : > { %v4696_v39 = vpop.f32.mrb[133].mxu0 }
 0xf8c   : > { %4231 = vst [vmem:[%s7954_s23 + $0x48] sm:$0xff] %v4215_v1  ;;  %v4697_v21 = vadd.f32 %v4696_v39, %v4695_v4  ;;  %v4698_v35 = vpop.f32.mrb[134].mxu0 }
 0xf8d   : > { %v4699_v24 = vpop.f32.mrb[135].mxu0 }
 0xf8e   : > { %v4184_v29 = vadd.f32 %v4697_v21, %v7947_v2  ;;  %v4700_v61 = vadd.f32 %v4699_v24, %v4698_v35 }
 0xf90   : > { %v4216_v44 = vadd.f32 %v4184_v29, %v7704_v34  ;;  %v4187_v5 = vadd.f32 %v4700_v61, %v7947_v2 }
 0xf92   : > { %4232 = vst [vmem:[%s7954_s23 + $0x50] sm:$0xff] %v4216_v44  ;;  %v4217_v63 = vadd.f32 %v4187_v5, %v7708_v10  ;;  %v4701_v0 = vpop.f32.mrb[112].mxu1 }
 0xf93   : > { %v4702_v51 = vpop.f32.mrb[113].mxu1 }
 0xf94   : > { %4233 = vst [vmem:[%s7954_s23 + $0x58] sm:$0xff] %v4217_v63  ;;  %v4703_v56 = vadd.f32 %v4702_v51, %v4701_v0  ;;  %v4704_v11 = vpop.f32.mrb[114].mxu1 }
 0xf95   : > { %v4705_v59 = vpop.f32.mrb[115].mxu1 }
 0xf96   : > { %v4192_v26 = vadd.f32 %v4703_v56, %v7947_v2  ;;  %v4706_v6 = vadd.f32 %v4705_v59, %v4704_v11 }
 0xf98   : > { %v4218_v8 = vadd.f32 %v4192_v26, %v7715_v20  ;;  %v4195_v34 = vadd.f32 %v4706_v6, %v7947_v2 }
 0xf9a   : > { %4234 = vst [vmem:[%s7954_s23 + $0x60] sm:$0xff] %v4218_v8  ;;  %v4219_v14 = vadd.f32 %v4195_v34, %v7720_v33  ;;  %v4707_v10 = vpop.f32.mrb[116].mxu1 }
 0xf9b   : > { %v4708_v19 = vpop.f32.mrb[117].mxu1 }
 0xf9c   : > { %4235 = vst [vmem:[%s7954_s23 + $0x68] sm:$0xff] %v4219_v14  ;;  %v4709_v42 = vadd.f32 %v4708_v19, %v4707_v10  ;;  %v4710_v22 = vpop.f32.mrb[118].mxu1 }
 0xf9d   : > { %v4711_v53 = vpop.f32.mrb[119].mxu1 }
 0xf9e   : > { %v4200_v62 = vadd.f32 %v4709_v42, %v7947_v2  ;;  %v4712_v36 = vadd.f32 %v4711_v53, %v4710_v22 }
 0xfa0   : > { %v4220_v20 = vadd.f32 %v4200_v62, %v7724_v50  ;;  %v4203_v16 = vadd.f32 %v4712_v36, %v7947_v2 }
 0xfa2   : > { %4236 = vst [vmem:[%s7954_s23 + $0x70] sm:$0xff] %v4220_v20  ;;  %v4221_v33 = vadd.f32 %v4203_v16, %v7728_v17 }
 0xfa4   : > { %4237 = vst [vmem:[%s7954_s23 + $0x78] sm:$0xff] %v4221_v33 }
 0xfa5   : > { %5815 = shalt.err (!%p5812_p13)
}
 0xfa6   : > { %s5816_s30 = scalar_lea.hbm %s8003_s16, 2048  ;;  %s5820_s23 = scalar_lea.hbm %s8202_s14, 4096 }
 0xfa7   : > { %p5817_p9 = scmp.ne.s32.totalorder %s8003_s16, %s5816_s30  ;;  %p5821_p4 = scmp.lt.u32.totalorder %s8003_s16, %s8202_s14 }
 0xfa8   : > { %p5822_p8 = scmp.lt.u32.totalorder %s5820_s23, %s5816_s30  ;;  %p5824_p3 = scmp.lt.u32.totalorder %s5816_s30, %s8003_s16 }
 0xfa9   : > { %p5818_p0 = pnand %p5817_p9, %p6125_p10 }
 0xfaa   : > { %p5823_p6 = por %p5822_p8, %p5821_p4 }
 0xfab   : > { %p5819_p11 = pneg %p5818_p0 }
 0xfac   : > { %p5825_p5 = por %p5824_p3, %p5823_p6 }
 0xfae   : > { %p5826_p7 = pnand %p5825_p5, %p5819_p11 }
 0xfb0   : > { %5829 = shalt.err (!%p5826_p7)
}
 0xfb1   : > { %s5894_s25 = smov 128   ;;  %s5895_s22 = smov 8  }
 0xfb2   : > { %5099 = dma.vmem_to_hbm [thread:$0]  (%p6125_p10), %s8005_s19, 2048, %s8003_s16, %s4239_s29, %s5894_s25, %s5894_s25, %s5895_s22  }
 0xfb3 PF: > { %s8203_s21 = sld [smem:[#allocation17_spill]]  ;;  %s8204_s3 = sld [smem:[#allocation18_spill]] }
 0xfb4   : > { %p8206_p2 = scmp.ge.s32.totalorder %s5876_s28, 2 }
 0xfb9   : > { %s4267_s17 = sand.u32 1, %s8203_s21   ;;  %p8205_p12 = scmp.ne.s32.totalorder %s8204_s3, 0 }
 0xfba   : > { %s4268_s30 = scalar_lea.sflag [#allocation5], %s4267_s17 }
 0xfbb   : > { %p5119_p1 = pnand %p8206_p2, %p8205_p12 }
 0xfbd   : > { %5859 = dma.done.wait (!%p5119_p1), %s4268_s30, 2048  }
 0xfbe   : > { %5861 = vsyncadd (!%p5119_p1), %s4268_s30, 4294965248  ;;  %p28_p13 = scmp.ge.s32.totalorder %s6115_s15, 4   ;;  %s8207_s25 = smov %s5868_s26 }
 0xfbf   : > { %s8208_s26 = smov %s5872_s27  ;;  %s8209_s27 = smov %s6131_s24 }
 0xfc0   : > { %s8210_s28 = smov %s6115_s15  ;;  %30 = sbr.rel (!%p28_p13) target bundleno = 13 (0xd), region = 133 }
 0xfc7   :  { %4273 = vsyncpa [#allocation4], 1 }
 0xfc8   :  { %4275 = vsyncpa [#allocation4 + $0x1], 1 }
 0xfc9   :  { %4276 = vsyncpa [#allocation7], 1 }
 0xfca   :  { %4277 = vsyncpa [#allocation10], 1 }
 0xfcb   :  { %4278 = vsyncpa [#allocation5], 1 }
 0xfcc   :  { %4280 = vsyncpa [#allocation5 + $0x1], 1 }

</bundles_post_ra>
